<compile_context>
chip_gen: v5e
topology: v5e:2x2
jax: 0.10.0
libtpu: 0.0.40
codegen_flags: <defaults>
</compile_context>

<pallas_src>
import functools

import jax
import jax.numpy as jnp
from jax.experimental import pallas as pl
from jax.experimental.pallas import tpu as pltpu

SIGMA_MIN = 0.001
RAW_SIGMA_BIAS = 0.25
TEMPERATURE = 1.0
GEN_BIAS_INIT = 0.0


def _softplus(x):
    # numerically stable softplus, elementwise (VPU/EUP)
    return jnp.maximum(x, 0.0) + jnp.log(1.0 + jnp.exp(-jnp.abs(x)))


def gmvae_kernel(
    # batch-tiled inputs
    x_ref,        # (TB, D)   bf16 (or f32)
    noise_ref,    # (TB, K+L) f32 == [gumbel | eps]
    # VMEM-resident packed weights / biases (constant index maps)
    wx_ref, bx_ref,   # (D, 2L+K), (1, 2L+K) == [Wqx_mu | Wqx_sig | Wy], [bq_mu | bq_sig | by]
    wy_ref, by_ref,   # (K, 4L),   (1, 4L)   == [Wqy_mu | Wqy_sig | Wp_mu | Wp_sig], [0 | 0 | bp_mu | bp_sig]
    wd_ref, bd_ref,   # (L, D),    (1, D)
    # single lane-dense output
    out_ref,          # (TB, 2D + ceil(2K+5L,128)) == [logits_x | probs_x | narrow slab]
    *, n_mix, latent_dim, input_dim,
):
    K, L, D = n_mix, latent_dim, input_dim
    x = x_ref[...]
    tb = x.shape[0]

    # ---- packed x-side matmul: x @ [Wqx_mu | Wqx_sig | Wy]  (f32 accumulation) ----
    xp = jnp.dot(x, wx_ref[...], preferred_element_type=jnp.float32) + bx_ref[...]
    logits_y = xp[:, 2 * L:2 * L + K]

    # ---- y ~ RelaxedOneHotCategorical(temperature, logits) (gumbel-softmax sample) ----
    gumbel = noise_ref[:, :K]
    eps = noise_ref[:, K:]
    scores = (logits_y + gumbel) * (1.0 / TEMPERATURE)
    scores = scores - jnp.max(scores, axis=-1, keepdims=True)
    expd = jnp.exp(scores)
    # exact divide: keeps y an exact simplex point (approx reciprocal previously broke row-sum==1)
    y = expd / jnp.sum(expd, axis=-1, keepdims=True)

    # ---- packed y-side matmul: y @ [Wqy_mu | Wqy_sig | Wp_mu | Wp_sig]  (K, 4L) ----
    yp = jnp.dot(y.astype(wy_ref.dtype), wy_ref[...],
                 preferred_element_type=jnp.float32) + by_ref[...]

    # q(z | x, y): Linear over concat([x, y]) == x @ Wqx + y @ Wqy  (offset-matched 2L-lane add)
    q_lin = xp[:, :2 * L] + yp[:, :2 * L]
    mu_q = q_lin[:, :L]
    sig_q = jnp.maximum(_softplus(q_lin[:, L:] + RAW_SIGMA_BIAS), SIGMA_MIN)

    # p(z | y): GMM prior, contiguous 2L-lane slice of yp
    mu_p = yp[:, 2 * L:3 * L]
    sig_p = jnp.maximum(_softplus(yp[:, 3 * L:] + RAW_SIGMA_BIAS), SIGMA_MIN)

    # z = q(z|x,y).rsample()
    z = mu_q + sig_q * eps

    # ---- p(x | z): Bernoulli(logits = z @ Wd + bd) ----
    logits_x = jnp.dot(z.astype(wd_ref.dtype), wd_ref[...],
                       preferred_element_type=jnp.float32) + bd_ref[...]
    # EUP-friendly sigmoid; identical to 1/(1+exp(-x)) but with no inf intermediate
    probs_x = 0.5 * (jnp.tanh(0.5 * logits_x) + 1.0)

    # ---- single lane-dense output: stores to 128-aligned, 128-multiple-wide slices ----
    out_ref[:, :D] = logits_x
    out_ref[:, D:2 * D] = probs_x
    pieces = [mu_q, sig_q, z, mu_p, sig_p, logits_y, y]
    pad_w = out_ref.shape[-1] - 2 * D - (2 * K + 5 * L)
    if pad_w:
        pieces.append(jnp.zeros((tb, pad_w), jnp.float32))
    out_ref[:, 2 * D:] = jnp.concatenate(pieces, axis=-1)


def gmvae_forward(x, gumbel, eps, params, *, block_b=None, use_bf16=True):
    """x: (B, D) f32; gumbel: (B, K); eps: (B, L). Returns dict of distribution params."""
    B, D = x.shape
    K = gumbel.shape[-1]
    L = eps.shape[-1]
    f32 = jnp.float32
    mxu_dtype = jnp.bfloat16 if use_bf16 else f32

    # ---- pack weights / biases once in the wrapper (layout plumbing, offset-matched) ----
    wx_pack = jnp.concatenate(
        [params["wqx_mu"], params["wqx_sig"], params["wy"]], axis=1).astype(mxu_dtype)   # (D, 2L+K)
    bx_pack = jnp.concatenate(
        [params["bq_mu"], params["bq_sig"], params["by"]], axis=1).astype(f32)            # (1, 2L+K)
    wy_pack = jnp.concatenate(
        [params["wqy_mu"], params["wqy_sig"], params["wp_mu"], params["wp_sig"]],
        axis=1).astype(mxu_dtype)                                                         # (K, 4L)
    by_pack = jnp.concatenate(
        [jnp.zeros((1, 2 * L), f32), params["bp_mu"], params["bp_sig"]], axis=1)          # (1, 4L)
    wd_c = params["wd"].astype(mxu_dtype)                                                 # (L, D)
    bd_c = params["bd"].astype(f32)                                                       # (1, D)

    # ---- batch tile: largest tile that still leaves >= 2 grid steps (dual-TC v7x), ----
    # ---- near-optimal on single-TC v5e/v6e (only ~0.35us extra per step).          ----
    if block_b is None:
        block_b = max(256, 8 * pl.cdiv(pl.cdiv(B, 2), 8))
    tb = block_b
    n_blocks = pl.cdiv(B, tb)
    Bp = n_blocks * tb

    x_in = x.astype(mxu_dtype)
    noise = jnp.concatenate([gumbel, eps], axis=-1).astype(f32)    # (B, K+L) coalesced noise stream
    if Bp != B:
        pad = Bp - B
        x_in = jnp.pad(x_in, ((0, pad), (0, 0)))
        noise = jnp.pad(noise, ((0, pad), (0, 0)))

    NARROW = 2 * K + 5 * L                       # mu_q|sig_q|z|mu_p|sig_p|logits_y|y
    NARROW_PAD = 128 * pl.cdiv(NARROW, 128)      # pad to a lane-dense multiple of 128
    OUT_W = 2 * D + NARROW_PAD                   # logits_x | probs_x | narrow slab

    inputs = (x_in, noise, wx_pack, bx_pack, wy_pack, by_pack, wd_c, bd_c)
    out_shape = jax.ShapeDtypeStruct((Bp, OUT_W), f32)

    tiled = lambda w: pl.BlockSpec((tb, w), lambda i: (i, 0))          # noqa: E731
    const = lambda r, c: pl.BlockSpec((r, c), lambda i: (0, 0))        # noqa: E731

    in_specs = [
        tiled(D), tiled(K + L),
        const(D, 2 * L + K), const(1, 2 * L + K),
        const(K, 4 * L), const(1, 4 * L),
        const(L, D), const(1, D),
    ]
    out_specs = tiled(OUT_W)

    flops = 2 * Bp * (D * (2 * L + K) + K * 4 * L + L * D)
    transcendentals = Bp * (K + 4 * L + D)
    bytes_accessed = (
        sum(int(a.size) * a.dtype.itemsize for a in inputs) + int(Bp) * OUT_W * 4
    )

    kernel = functools.partial(gmvae_kernel, n_mix=K, latent_dim=L, input_dim=D)

    out = pl.pallas_call(
        kernel,
        out_shape=out_shape,
        grid=(n_blocks,),
        in_specs=in_specs,
        out_specs=out_specs,
        compiler_params=pltpu.CompilerParams(
            dimension_semantics=("parallel",)),
        cost_estimate=pl.CostEstimate(
            flops=flops, transcendentals=transcendentals,
            bytes_accessed=bytes_accessed),
    )(*inputs)

    # un-pack the single lane-dense output (and drop batch padding) in the wrapper
    out = out[:B]
    logits_x = out[:, :D]
    probs_x = out[:, D:2 * D]
    off = 2 * D

    def take(w):
        nonlocal off
        v = out[:, off:off + w]
        off += w
        return v

    mu_q = take(L); sig_q = take(L); z = take(L)
    mu_p = take(L); sig_p = take(L)
    logits_y = take(K); y = take(K)

    return dict(
        logits_y=logits_y, y=y,
        mu_p=mu_p, sigma_p=sig_p,
        mu_q=mu_q, sigma_q=sig_q, z=z,
        logits_x=logits_x, probs_x=probs_x,
    )


def init_params(key, input_dim, latent_dim, n_mix):
    """Deterministic synthetic parameter init mimicking torch.nn.Linear (uniform +- 1/sqrt(in))."""
    def linear(k, fan_in, fan_out):
        bound = 1.0 / jnp.sqrt(jnp.float32(fan_in))
        kw, kb = jax.random.split(k)
        w = jax.random.uniform(kw, (fan_in, fan_out), jnp.float32, -bound, bound)
        b = jax.random.uniform(kb, (1, fan_out), jnp.float32, -bound, bound)
        return w, b

    keys = jax.random.split(key, 4)
    # encoder_y: Linear(D -> K)
    wy, by = linear(keys[0], input_dim, n_mix)
    # prior_gmm: Linear(K -> 2L), split into mu / raw_sigma halves
    wp, bp = linear(keys[1], n_mix, 2 * latent_dim)
    # encoder_gmm: Linear(D+K -> 2L); split input dim into x-part / y-part, output into mu / raw_sigma
    wq, bq = linear(keys[2], input_dim + n_mix, 2 * latent_dim)
    # decoder: Linear(L -> D), bias initialized to gen_bias_init
    wd, _ = linear(keys[3], latent_dim, input_dim)
    bd = jnp.full((1, input_dim), GEN_BIAS_INIT, jnp.float32)

    return dict(
        wy=wy, by=by,
        wp_mu=wp[:, :latent_dim], wp_sig=wp[:, latent_dim:],
        bp_mu=bp[:, :latent_dim], bp_sig=bp[:, latent_dim:],
        wqx_mu=wq[:input_dim, :latent_dim], wqx_sig=wq[:input_dim, latent_dim:],
        wqy_mu=wq[input_dim:, :latent_dim], wqy_sig=wq[input_dim:, latent_dim:],
        bq_mu=bq[:, :latent_dim], bq_sig=bq[:, latent_dim:],
        wd=wd, bd=bd,
    )


def reference_forward(x, gumbel, eps, params, use_bf16=True):
    """Pure-JAX reference with the same bf16 operand rounding as the kernel."""
    f32 = jnp.float32
    rnd = (lambda a: a.astype(jnp.bfloat16).astype(f32)) if use_bf16 else (lambda a: a)
    xq = rnd(x)
    logits_y = xq @ rnd(params["wy"]) + params["by"]
    sc = (logits_y + gumbel) / TEMPERATURE
    sc = sc - sc.max(-1, keepdims=True)
    e = jnp.exp(sc)
    y = e / e.sum(-1, keepdims=True)
    yq = rnd(y)
    mu_p = yq @ rnd(params["wp_mu"]) + params["bp_mu"]
    sig_p = jnp.maximum(
        jax.nn.softplus(yq @ rnd(params["wp_sig"]) + params["bp_sig"] + RAW_SIGMA_BIAS), SIGMA_MIN)
    mu_q = xq @ rnd(params["wqx_mu"]) + yq @ rnd(params["wqy_mu"]) + params["bq_mu"]
    raw_q = xq @ rnd(params["wqx_sig"]) + yq @ rnd(params["wqy_sig"]) + params["bq_sig"]
    sig_q = jnp.maximum(jax.nn.softplus(raw_q + RAW_SIGMA_BIAS), SIGMA_MIN)
    z = mu_q + sig_q * eps
    logits_x = rnd(z) @ rnd(params["wd"]) + params["bd"]
    probs_x = jax.nn.sigmoid(logits_x)
    return dict(logits_y=logits_y, y=y, mu_p=mu_p, sigma_p=sig_p,
                mu_q=mu_q, sigma_q=sig_q, z=z, logits_x=logits_x, probs_x=probs_x)


if __name__ == "__main__":
    # Small shapes consistent with the module's (batch_size, data_size) flat-vector interface.
    B, D, K, L = 512, 128, 16, 32  # batch, input_dim, n_mix_components, latent_dim

    key = jax.random.PRNGKey(0)
    kx, kp, kg, ke = jax.random.split(key, 4)

    x = jax.random.uniform(kx, (B, D), jnp.float32)        # "binarized-ish" data in [0,1]
    params = init_params(kp, D, L, K)
    gumbel = jax.random.gumbel(kg, (B, K), jnp.float32)    # noise for RelaxedOneHotCategorical.sample
    eps = jax.random.normal(ke, (B, L), jnp.float32)       # noise for Normal.rsample

    out = gmvae_forward(x, gumbel, eps, params, use_bf16=True)
    jax.block_until_ready(out)

    # sanity checks
    for name, v in out.items():
        assert bool(jnp.all(jnp.isfinite(v))), f"non-finite output in {name}"
    assert bool(jnp.allclose(jnp.sum(out["y"], axis=-1), 1.0, atol=1e-3))  # y is a simplex point
    assert bool(jnp.all(out["sigma_q"] >= SIGMA_MIN)) and bool(jnp.all(out["sigma_p"] >= SIGMA_MIN))

    # cross-check against the pure-JAX reference (loose tolerance: bf16 MXU operands)
    ref = reference_forward(x, gumbel, eps, params, use_bf16=True)
    for name in out:
        assert bool(jnp.allclose(out[name], ref[name], atol=2e-2, rtol=2e-2)), f"mismatch in {name}"

    print("KERNEL_OK")
</pallas_src>

<mosaic_0001>
module attributes {stable_mosaic.version = 11 : i64} {
  func.func @gmvae_kernel(%arg0: i32, %arg1: memref<256x128xbf16, #tpu.memory_space<vmem>>, %arg2: memref<256x48xf32, #tpu.memory_space<vmem>>, %arg3: memref<128x80xbf16, #tpu.memory_space<vmem>>, %arg4: memref<1x80xf32, #tpu.memory_space<vmem>>, %arg5: memref<16x128xbf16, #tpu.memory_space<vmem>>, %arg6: memref<1x128xf32, #tpu.memory_space<vmem>>, %arg7: memref<32x128xbf16, #tpu.memory_space<vmem>>, %arg8: memref<1x128xf32, #tpu.memory_space<vmem>>, %arg9: memref<256x512xf32, #tpu.memory_space<vmem>>) attributes {dimension_semantics = [#tpu.dimension_semantics<parallel>], iteration_bounds = array<i64: 2>, scalar_prefetch = 0 : i64, scratch_operands = 0 : i64, tpu.core_type = #tpu.core_type<tc>, window_params = [{transform_indices = @transform_0, window_bounds = array<i64: 256, 128>}, {transform_indices = @transform_1, window_bounds = array<i64: 256, 48>}, {pipeline_mode = #tpu.pipeline_mode<synchronous>, transform_indices = @transform_2, window_bounds = array<i64: 128, 80>}, {pipeline_mode = #tpu.pipeline_mode<synchronous>, transform_indices = @transform_3, window_bounds = array<i64: 1, 80>}, {pipeline_mode = #tpu.pipeline_mode<synchronous>, transform_indices = @transform_4, window_bounds = array<i64: 16, 128>}, {pipeline_mode = #tpu.pipeline_mode<synchronous>, transform_indices = @transform_5, window_bounds = array<i64: 1, 128>}, {pipeline_mode = #tpu.pipeline_mode<synchronous>, transform_indices = @transform_6, window_bounds = array<i64: 32, 128>}, {pipeline_mode = #tpu.pipeline_mode<synchronous>, transform_indices = @transform_7, window_bounds = array<i64: 1, 128>}, {transform_indices = @transform_8, window_bounds = array<i64: 256, 512>}]} {
    %c0 = arith.constant 0 : index
    %c0_0 = arith.constant 0 : index
    %0 = vector.load %arg1[%c0, %c0_0] : memref<256x128xbf16, #tpu.memory_space<vmem>>, vector<256x128xbf16>
    %c0_1 = arith.constant 0 : index
    %c0_2 = arith.constant 0 : index
    %1 = vector.load %arg3[%c0_1, %c0_2] : memref<128x80xbf16, #tpu.memory_space<vmem>>, vector<128x80xbf16>
    %cst = arith.constant dense<0.000000e+00> : vector<256x80xf32>
    %2 = tpu.matmul %0, %1, %cst {dimension_numbers = #tpu.dot_dimension_numbers<[1], [0], [0], [1], [0, 0, 1, 1], [], []>} : vector<256x128xbf16>, vector<128x80xbf16>, vector<256x80xf32> -> vector<256x80xf32>
    %c0_3 = arith.constant 0 : index
    %c0_4 = arith.constant 0 : index
    %3 = vector.load %arg4[%c0_3, %c0_4] : memref<1x80xf32, #tpu.memory_space<vmem>>, vector<1x80xf32>
    %4 = vector.broadcast %3 : vector<1x80xf32> to vector<256x80xf32>
    %5 = arith.addf %2, %4 : vector<256x80xf32>
    %6 = vector.extract_strided_slice %5 {offsets = [0, 64], sizes = [256, 16], strides = [1, 1]} : vector<256x80xf32> to vector<256x16xf32>
    %c0_5 = arith.constant 0 : index
    %c0_6 = arith.constant 0 : index
    %7 = vector.load %arg2[%c0_5, %c0_6] : memref<256x48xf32, #tpu.memory_space<vmem>>, vector<256x16xf32>
    %c0_7 = arith.constant 0 : index
    %c16 = arith.constant 16 : index
    %8 = vector.load %arg2[%c0_7, %c16] : memref<256x48xf32, #tpu.memory_space<vmem>>, vector<256x32xf32>
    %9 = arith.addf %6, %7 : vector<256x16xf32>
    %cst_8 = arith.constant 1.000000e+00 : f32
    %10 = vector.broadcast %cst_8 : f32 to vector<256x16xf32>
    %11 = arith.mulf %9, %10 : vector<256x16xf32>
    %cst_9 = arith.constant dense<0xFF800000> : vector<256xf32>
    %12 = vector.multi_reduction <maximumf>, %11, %cst_9 [1] : vector<256x16xf32> to vector<256xf32>
    %13 = vector.shape_cast %12 : vector<256xf32> to vector<256x1xf32>
    %14 = vector.broadcast %13 : vector<256x1xf32> to vector<256x16xf32>
    %15 = arith.subf %11, %14 : vector<256x16xf32>
    %16 = math.exp %15 : vector<256x16xf32>
    %cst_10 = arith.constant dense<0.000000e+00> : vector<256xf32>
    %17 = vector.multi_reduction <add>, %16, %cst_10 [1] : vector<256x16xf32> to vector<256xf32>
    %18 = vector.shape_cast %17 : vector<256xf32> to vector<256x1xf32>
    %19 = vector.broadcast %18 : vector<256x1xf32> to vector<256x16xf32>
    %20 = arith.divf %16, %19 : vector<256x16xf32>
    %21 = arith.truncf %20 : vector<256x16xf32> to vector<256x16xbf16>
    %c0_11 = arith.constant 0 : index
    %c0_12 = arith.constant 0 : index
    %22 = vector.load %arg5[%c0_11, %c0_12] : memref<16x128xbf16, #tpu.memory_space<vmem>>, vector<16x128xbf16>
    %cst_13 = arith.constant dense<0.000000e+00> : vector<256x128xf32>
    %23 = tpu.matmul %21, %22, %cst_13 {dimension_numbers = #tpu.dot_dimension_numbers<[1], [0], [0], [1], [0, 0, 1, 1], [], []>} : vector<256x16xbf16>, vector<16x128xbf16>, vector<256x128xf32> -> vector<256x128xf32>
    %c0_14 = arith.constant 0 : index
    %c0_15 = arith.constant 0 : index
    %24 = vector.load %arg6[%c0_14, %c0_15] : memref<1x128xf32, #tpu.memory_space<vmem>>, vector<1x128xf32>
    %25 = vector.broadcast %24 : vector<1x128xf32> to vector<256x128xf32>
    %26 = arith.addf %23, %25 : vector<256x128xf32>
    %27 = vector.extract_strided_slice %5 {offsets = [0, 0], sizes = [256, 64], strides = [1, 1]} : vector<256x80xf32> to vector<256x64xf32>
    %28 = vector.extract_strided_slice %26 {offsets = [0, 0], sizes = [256, 64], strides = [1, 1]} : vector<256x128xf32> to vector<256x64xf32>
    %29 = arith.addf %27, %28 : vector<256x64xf32>
    %30 = vector.extract_strided_slice %29 {offsets = [0, 0], sizes = [256, 32], strides = [1, 1]} : vector<256x64xf32> to vector<256x32xf32>
    %31 = vector.extract_strided_slice %29 {offsets = [0, 32], sizes = [256, 32], strides = [1, 1]} : vector<256x64xf32> to vector<256x32xf32>
    %cst_16 = arith.constant 2.500000e-01 : f32
    %32 = vector.broadcast %cst_16 : f32 to vector<256x32xf32>
    %33 = arith.addf %31, %32 : vector<256x32xf32>
    %cst_17 = arith.constant 0.000000e+00 : f32
    %34 = vector.broadcast %cst_17 : f32 to vector<256x32xf32>
    %35 = arith.maximumf %33, %34 : vector<256x32xf32>
    %36 = math.absf %33 : vector<256x32xf32>
    %cst_18 = arith.constant 0.000000e+00 : f32
    %37 = vector.broadcast %cst_18 : f32 to vector<256x32xf32>
    %38 = arith.subf %37, %36 : vector<256x32xf32>
    %39 = math.exp %38 : vector<256x32xf32>
    %cst_19 = arith.constant 1.000000e+00 : f32
    %40 = vector.broadcast %cst_19 : f32 to vector<256x32xf32>
    %41 = arith.addf %40, %39 : vector<256x32xf32>
    %42 = math.log %41 : vector<256x32xf32>
    %43 = arith.addf %35, %42 : vector<256x32xf32>
    %cst_20 = arith.constant 1.000000e-03 : f32
    %44 = vector.broadcast %cst_20 : f32 to vector<256x32xf32>
    %45 = arith.maximumf %43, %44 : vector<256x32xf32>
    %46 = vector.extract_strided_slice %26 {offsets = [0, 64], sizes = [256, 32], strides = [1, 1]} : vector<256x128xf32> to vector<256x32xf32>
    %47 = vector.extract_strided_slice %26 {offsets = [0, 96], sizes = [256, 32], strides = [1, 1]} : vector<256x128xf32> to vector<256x32xf32>
    %cst_21 = arith.constant 2.500000e-01 : f32
    %48 = vector.broadcast %cst_21 : f32 to vector<256x32xf32>
    %49 = arith.addf %47, %48 : vector<256x32xf32>
    %cst_22 = arith.constant 0.000000e+00 : f32
    %50 = vector.broadcast %cst_22 : f32 to vector<256x32xf32>
    %51 = arith.maximumf %49, %50 : vector<256x32xf32>
    %52 = math.absf %49 : vector<256x32xf32>
    %cst_23 = arith.constant 0.000000e+00 : f32
    %53 = vector.broadcast %cst_23 : f32 to vector<256x32xf32>
    %54 = arith.subf %53, %52 : vector<256x32xf32>
    %55 = math.exp %54 : vector<256x32xf32>
    %cst_24 = arith.constant 1.000000e+00 : f32
    %56 = vector.broadcast %cst_24 : f32 to vector<256x32xf32>
    %57 = arith.addf %56, %55 : vector<256x32xf32>
    %58 = math.log %57 : vector<256x32xf32>
    %59 = arith.addf %51, %58 : vector<256x32xf32>
    %cst_25 = arith.constant 1.000000e-03 : f32
    %60 = vector.broadcast %cst_25 : f32 to vector<256x32xf32>
    %61 = arith.maximumf %59, %60 : vector<256x32xf32>
    %62 = arith.mulf %45, %8 : vector<256x32xf32>
    %63 = arith.addf %30, %62 : vector<256x32xf32>
    %64 = arith.truncf %63 : vector<256x32xf32> to vector<256x32xbf16>
    %c0_26 = arith.constant 0 : index
    %c0_27 = arith.constant 0 : index
    %65 = vector.load %arg7[%c0_26, %c0_27] : memref<32x128xbf16, #tpu.memory_space<vmem>>, vector<32x128xbf16>
    %cst_28 = arith.constant dense<0.000000e+00> : vector<256x128xf32>
    %66 = tpu.matmul %64, %65, %cst_28 {dimension_numbers = #tpu.dot_dimension_numbers<[1], [0], [0], [1], [0, 0, 1, 1], [], []>} : vector<256x32xbf16>, vector<32x128xbf16>, vector<256x128xf32> -> vector<256x128xf32>
    %c0_29 = arith.constant 0 : index
    %c0_30 = arith.constant 0 : index
    %67 = vector.load %arg8[%c0_29, %c0_30] : memref<1x128xf32, #tpu.memory_space<vmem>>, vector<1x128xf32>
    %68 = vector.broadcast %67 : vector<1x128xf32> to vector<256x128xf32>
    %69 = arith.addf %66, %68 : vector<256x128xf32>
    %cst_31 = arith.constant 5.000000e-01 : f32
    %70 = vector.broadcast %cst_31 : f32 to vector<256x128xf32>
    %71 = arith.mulf %70, %69 : vector<256x128xf32>
    %72 = math.tanh %71 : vector<256x128xf32>
    %cst_32 = arith.constant 1.000000e+00 : f32
    %73 = vector.broadcast %cst_32 : f32 to vector<256x128xf32>
    %74 = arith.addf %72, %73 : vector<256x128xf32>
    %cst_33 = arith.constant 5.000000e-01 : f32
    %75 = vector.broadcast %cst_33 : f32 to vector<256x128xf32>
    %76 = arith.mulf %75, %74 : vector<256x128xf32>
    %c0_34 = arith.constant 0 : index
    %c0_35 = arith.constant 0 : index
    %77 = vector.load %arg9[%c0_34, %c0_35] : memref<256x512xf32, #tpu.memory_space<vmem>>, vector<256x128xf32>
    tpu.vector_store %arg9[%c0_34, %c0_35], %69 {strides = array<i32>} : memref<256x512xf32, #tpu.memory_space<vmem>>, vector<256x128xf32>,
    %c0_36 = arith.constant 0 : index
    %c128 = arith.constant 128 : index
    %78 = vector.load %arg9[%c0_36, %c128] : memref<256x512xf32, #tpu.memory_space<vmem>>, vector<256x128xf32>
    tpu.vector_store %arg9[%c0_36, %c128], %76 {strides = array<i32>} : memref<256x512xf32, #tpu.memory_space<vmem>>, vector<256x128xf32>,
    %cst_37 = arith.constant 0.000000e+00 : f32
    %79 = vector.broadcast %cst_37 : f32 to vector<256x64xf32>
    %80 = tpu.concatenate %30, %45, %63, %46, %61, %6, %20, %79 in 1 : vector<256x32xf32>, vector<256x32xf32>, vector<256x32xf32>, vector<256x32xf32>, vector<256x32xf32>, vector<256x16xf32>, vector<256x16xf32>, vector<256x64xf32> -> vector<256x256xf32>
    %c0_38 = arith.constant 0 : index
    %c256 = arith.constant 256 : index
    %81 = vector.load %arg9[%c0_38, %c256] : memref<256x512xf32, #tpu.memory_space<vmem>>, vector<256x256xf32>
    tpu.vector_store %arg9[%c0_38, %c256], %80 {strides = array<i32>} : memref<256x512xf32, #tpu.memory_space<vmem>>, vector<256x256xf32>,
    return
  }
  func.func @transform_0(%arg0: i32) -> (i32, i32) {
    %c0_i32 = arith.constant 0 : i32
    %c0_i32_0 = arith.constant 0 : i32
    return %arg0, %c0_i32 : i32, i32
  }
  func.func @transform_1(%arg0: i32) -> (i32, i32) {
    %c0_i32 = arith.constant 0 : i32
    %c0_i32_0 = arith.constant 0 : i32
    return %arg0, %c0_i32 : i32, i32
  }
  func.func @transform_2(%arg0: i32) -> (i32, i32) {
    %c0_i32 = arith.constant 0 : i32
    %c0_i32_0 = arith.constant 0 : i32
    %c0_i32_1 = arith.constant 0 : i32
    return %c0_i32, %c0_i32_0 : i32, i32
  }
  func.func @transform_3(%arg0: i32) -> (i32, i32) {
    %c0_i32 = arith.constant 0 : i32
    %c0_i32_0 = arith.constant 0 : i32
    %c0_i32_1 = arith.constant 0 : i32
    return %c0_i32, %c0_i32_0 : i32, i32
  }
  func.func @transform_4(%arg0: i32) -> (i32, i32) {
    %c0_i32 = arith.constant 0 : i32
    %c0_i32_0 = arith.constant 0 : i32
    %c0_i32_1 = arith.constant 0 : i32
    return %c0_i32, %c0_i32_0 : i32, i32
  }
  func.func @transform_5(%arg0: i32) -> (i32, i32) {
    %c0_i32 = arith.constant 0 : i32
    %c0_i32_0 = arith.constant 0 : i32
    %c0_i32_1 = arith.constant 0 : i32
    return %c0_i32, %c0_i32_0 : i32, i32
  }
  func.func @transform_6(%arg0: i32) -> (i32, i32) {
    %c0_i32 = arith.constant 0 : i32
    %c0_i32_0 = arith.constant 0 : i32
    %c0_i32_1 = arith.constant 0 : i32
    return %c0_i32, %c0_i32_0 : i32, i32
  }
  func.func @transform_7(%arg0: i32) -> (i32, i32) {
    %c0_i32 = arith.constant 0 : i32
    %c0_i32_0 = arith.constant 0 : i32
    %c0_i32_1 = arith.constant 0 : i32
    return %c0_i32, %c0_i32_0 : i32, i32
  }
  func.func @transform_8(%arg0: i32) -> (i32, i32) {
    %c0_i32 = arith.constant 0 : i32
    %c0_i32_0 = arith.constant 0 : i32
    return %arg0, %c0_i32 : i32, i32
  }
}

</mosaic_0001>

<bundles_post_ra>
// kernel: tpu_custom_call.1
= control target key start
LH: loop header
LB: loop body
LE: loop exit
PB: predicated region body
PF: predicated region fallthrough
CT: control target
= control target key end

     0   :  { %13 = vsyncpa [#allocation3], 0  ;;  %s8574_s0 = inlined_call_operand.vmem [shape: bf16[512,128], index: 0, kind: input, shape index: {}]   ;;  %s8575_s1 = inlined_call_operand.vmem [shape: f32[512,48], index: 1, kind: input, shape index: {}]   ;;  %s8576_s2 = inlined_call_operand.vmem [shape: bf16[128,80], index: 2, kind: input, shape index: {}]   ;;  %s8577_s3 = inlined_call_operand.vmem [shape: f32[1,80], index: 3, kind: input, shape index: {}]   ;;  %s8578_s4 = inlined_call_operand.vmem [shape: bf16[16,128], index: 4, kind: input, shape index: {}]   ;;  %s8579_s5 = inlined_call_operand.vmem [shape: f32[1,128], index: 5, kind: input, shape index: {}]   ;;  %s8580_s6 = inlined_call_operand.vmem [shape: bf16[32,128], index: 6, kind: input, shape index: {}]   ;;  %s8581_s7 = inlined_call_operand.vmem [shape: f32[1,128], index: 7, kind: input, shape index: {}]   ;;  %s8582_s8 = inlined_call_operand.hbm [shape: f32[512,512], index: 8, kind: output, shape index: {}]  }
   0x1   :  { %15 = vsyncpa [#allocation3 + $0x1], 0  ;;  %s5107_s27 = smov 0   ;;  %s5109_s28 = smov 0  }
   0x2   :  { %s5111_s29 = smov 0   ;;  %s5113_s30 = smov 0  }
   0x3 LB: > { %s5128_s9 = sadd.s32 4294967295, %s5054_s30   ;;  %s4298_s10 = sadd.s32 4294967294, %s5054_s30   ;;  %s5054_s30 = sphi %s5113_s30, %s9218_s30   ;;  %s5050_s29 = sphi %s5111_s29, %s9217_s29   ;;  %s5046_s28 = sphi %s5109_s28, %s9216_s28   ;;  %s5042_s27 = sphi %s5107_s27, %s9215_s27  }
   0x4   : > { %s5132_s11 = sadd.s32 1, %s5054_s30   ;;  %s206_s12 = sadd.s32 1, %s5050_s29 }
   0x5   : > { %s203_s13 = ssub.s32 %s5054_s30, %s5132_s11  ;;  %p216_p0 = scmp.ne.s32.totalorder %s5050_s29, %s5046_s28 }
   0x6   : > { %p204_p1 = scmp.eq.s32.totalorder %s203_s13, 0  ;;  %p217_p2 = scmp.eq.s32.totalorder %s5128_s9, 1 }
   0x7   : > { %p222_p3 = scmp.ne.s32.totalorder %s5046_s28, %s5042_s27  ;;  %p223_p4 = scmp.eq.s32.totalorder %s4298_s10, 1 }
   0x8   : > { %s5143_s14 = scalar_select %p204_p1, %s5050_s29, %s206_s12  }
   0x9   : > { %p5145_p5 = por %p217_p2, %p216_p0  ;;  %p5149_p6 = por %p223_p4, %p222_p3 }
   0xa   : > { %p4301_p7 = scmp.ge.s32.totalorder %s5054_s30, 1  ;;  %p277_p8 = scmp.lt.s32.totalorder %s5054_s30, 3 }
   0xc   : > { %p278_p9 = pnand %p4301_p7, %p277_p8 }
   0xe   : > { %281 = sbr.rel (%p278_p9) target bundleno = 1937 (0x791), region = 52 }
  0x13   : > { %v4476_v0 = vld [vmem:[%s8576_s2 + $0x38] sm:$0xff]  ;;  %s4303_s19 = sshll.u32 %s5128_s9, 5  ;;  %v4475_v1 = vld [vmem:[%s8576_s2 + $0x30] sm:$0xff]  ;;  %v4474_v2 = vld [vmem:[%s8576_s2 + $0x28] sm:$0xff]  ;;  %s5056_s12 = smov 64   ;;  %vm807_vm0 = vcmask 654848  }
  0x14   : > { %p317_p10 = scmp.lt.s32.totalorder %s4303_s19, 63  ;;  %526 = vmatpush.bf16.msra.mxu0 %v4476_v0  ;;  %4482 = vmatpush.bf16.msra.mxu3 %v4476_v0  ;;  %v4473_v6 = vld [vmem:[%s8576_s2 + $0x20] sm:$0xff]  ;;  %v4472_v10 = vld [vmem:[%s8576_s2 + $0x18] sm:$0xff]  ;;  %v4471_v11 = vld [vmem:[%s8576_s2 + $0x10] sm:$0xff]  ;;  %s5057_s20 = smov 16   ;;  %vm1128_vm1 = vcmask 130048  }
  0x15   : > { %v4470_v15 = vld [vmem:[%s8576_s2 + $0x8] sm:$0xff]  ;;  %v4469_v16 = vld [vmem:[%s8576_s2] sm:$0xff]  ;;  %s5059_s13 = smov 32  }
  0x16   : > { %s9220_s19 = smov (!%p317_p10, %s4303_s19), 63  ;;  %v5421_v63 = vld [vmem:[%s8577_s3] ss:$0 sm:$0xff] }
  0x17   : > { %s4306_s22 = sshll.u32 %s9220_s19, 3  ;;  %s4304_s26 = sshll.u32 %s9220_s19, 2 }
  0x18   : > { %527 = vmatpush.bf16.msra.mxu0 %v4475_v1  ;;  %4483 = vmatpush.bf16.msra.mxu3 %v4475_v1  ;;  %s5168_s25 = scalar_lea.vmem %s8575_s1, %s4306_s22  ;;  %s5237_s19 = scalar_lea.vmem %s8574_s0, %s4304_s26 }
  0x19   : > { %v5174_v3 = vld [vmem:[%s5168_s25 + $0x20] sm:$0xff]  ;;  %v5177_v4 = vld [vmem:[%s5168_s25 + $0x10] sm:$0xff]  ;;  %v5192_v7 = vld [vmem:[%s5168_s25 + $0x28] sm:$0xff]  ;;  %s5058_s22 = smov 96   ;;  %s313_s26 = sand.u32 1, %s5046_s28  }
  0x1a   : > { %v5180_v5 = vld [vmem:[%s5168_s25] sm:$0xff]  ;;  %687 = vrot.lane.b32.xlu2 %v5174_v3, %s5056_s12  ;;  %683 = vrot.lane.b32.xlu1 %v5177_v4, %s5056_s12  ;;  %v5195_v8 = vld [vmem:[%s5168_s25 + $0x18] sm:$0xff]  ;;  %s4302_s10 = sshll.u32 %s313_s26, 10  ;;  %s4208_s17 = scalar_lea.sflag [#allocation3], %s313_s26 }
  0x1b   : > { %679 = vrot.lane.b32.xlu0 %v5180_v5, %s5056_s12  ;;  %v5198_v9 = vld [vmem:[%s5168_s25 + $0x8] sm:$0xff]  ;;  %v5213_v12 = vld [vmem:[%s5168_s25 + $0x40] sm:$0xff]  ;;  %v5216_v13 = vld [vmem:[%s5168_s25 + $0x38] sm:$0xff] }
  0x1c   : > { %528 = vmatpush.bf16.msra.mxu0 %v4474_v2  ;;  %4484 = vmatpush.bf16.msra.mxu3 %v4474_v2  ;;  %v5219_v14 = vld [vmem:[%s5168_s25 + $0x30] sm:$0xff]  ;;  %v5240_v17 = vld [vmem:[%s5168_s25 + $0x58] sm:$0xff]  ;;  %v4453_v19 = vld [vmem:[%s5237_s19] sm:$0xff] }
  0x1d   : > { %v5243_v18 = vld [vmem:[%s5168_s25 + $0x50] sm:$0xff]  ;;  %v5247_v20 = vld [vmem:[%s5168_s25 + $0x48] sm:$0xff]  ;;  %v4465_v21 = vld [vmem:[%s5237_s19 + $0x60] sm:$0xff] }
  0x1e   : > { %v5257_v22 = vld [vmem:[%s5168_s25 + $0x70] sm:$0xff]  ;;  %v5260_v23 = vld [vmem:[%s5168_s25 + $0x68] sm:$0xff]  ;;  %v5263_v24 = vld [vmem:[%s5168_s25 + $0x60] sm:$0xff] }
  0x1f   : > { %v5272_v25 = vld [vmem:[%s5168_s25 + $0x88] sm:$0xff]  ;;  %v5275_v26 = vld [vmem:[%s5168_s25 + $0x80] sm:$0xff]  ;;  %v5279_v28 = vld [vmem:[%s5168_s25 + $0x78] sm:$0xff] }
  0x20   : > { %529 = vmatpush.bf16.msra.mxu0 %v4473_v6  ;;  %4485 = vmatpush.bf16.msra.mxu3 %v4473_v6  ;;  %v4454_v27 = vld [vmem:[%s5237_s19 + $0x8] sm:$0xff]  ;;  %v5289_v30 = vld [vmem:[%s5168_s25 + $0xa0] sm:$0xff]  ;;  %v5292_v31 = vld [vmem:[%s5168_s25 + $0x98] sm:$0xff] }
  0x21   : > { %v4466_v29 = vld [vmem:[%s5237_s19 + $0x68] sm:$0xff]  ;;  %v5295_v32 = vld [vmem:[%s5168_s25 + $0x90] sm:$0xff]  ;;  %v5304_v33 = vld [vmem:[%s5168_s25 + $0xb8] sm:$0xff] }
  0x22   : > { %689 = vrot.lane.b32.xlu2 %v5192_v7, %s5056_s12  ;;  %685 = vrot.lane.b32.xlu1 %v5195_v8, %s5056_s12  ;;  %v5307_v34 = vld [vmem:[%s5168_s25 + $0xb0] sm:$0xff]  ;;  %v5311_v36 = vld [vmem:[%s5168_s25 + $0xa8] sm:$0xff] }
  0x23   : > { %681 = vrot.lane.b32.xlu0 %v5198_v9, %s5056_s12  ;;  %v4455_v35 = vld [vmem:[%s5237_s19 + $0x10] sm:$0xff]  ;;  %v5324_v39 = vld [vmem:[%s5168_s25 + $0xc8] sm:$0xff]  ;;  %v5327_v40 = vld [vmem:[%s5168_s25 + $0xc0] sm:$0xff] }
  0x24   : > { %530 = vmatpush.bf16.msra.mxu0 %v4472_v10  ;;  %4486 = vmatpush.bf16.msra.mxu3 %v4472_v10  ;;  %v4467_v37 = vld [vmem:[%s5237_s19 + $0x70] sm:$0xff]  ;;  %v5336_v41 = vld [vmem:[%s5168_s25 + $0xe8] sm:$0xff]  ;;  %v4456_v42 = vld [vmem:[%s5237_s19 + $0x18] sm:$0xff] }
  0x25   : > { %v5321_v38 = vld [vmem:[%s5168_s25 + $0xd0] sm:$0xff]  ;;  %v5340_v43 = vld [vmem:[%s5168_s25 + $0xe0] sm:$0xff]  ;;  %v5343_v44 = vld [vmem:[%s5168_s25 + $0xd8] sm:$0xff] }
  0x26   : > { %v4468_v45 = vld [vmem:[%s5237_s19 + $0x78] sm:$0xff]  ;;  %v5356_v47 = vld [vmem:[%s5168_s25 + $0xf0] sm:$0xff]  ;;  %v4457_v48 = vld [vmem:[%s5237_s19 + $0x20] sm:$0xff] }
  0x27   : > { %v5353_v46 = vld [vmem:[%s5168_s25 + $0xf8] sm:$0xff]  ;;  %v4458_v49 = vld [vmem:[%s5237_s19 + $0x28] sm:$0xff]  ;;  %v4459_v52 = vld [vmem:[%s5237_s19 + $0x30] sm:$0xff] }
  0x28   : > { %531 = vmatpush.bf16.msra.mxu0 %v4471_v11  ;;  %4487 = vmatpush.bf16.msra.mxu3 %v4471_v11  ;;  %v4460_v57 = vld [vmem:[%s5237_s19 + $0x38] sm:$0xff]  ;;  %v4461_v0 = vld [vmem:[%s5237_s19 + $0x40] sm:$0xff] }
  0x2a   : > { %695 = vrot.lane.b32.xlu2 %v5213_v12, %s5056_s12  ;;  %693 = vrot.lane.b32.xlu1 %v5216_v13, %s5056_s12 }
  0x2b   : > { %691 = vrot.lane.b32.xlu0 %v5219_v14, %s5056_s12 }
  0x2c   : > { %532 = vmatpush.bf16.msra.mxu0 %v4470_v15  ;;  %4488 = vmatpush.bf16.msra.mxu3 %v4470_v15 }
  0x30   : > { %533 = vmatpush.bf16.msra.mxu0 %v4469_v16  ;;  %4489 = vmatpush.bf16.msra.mxu3 %v4469_v16 }
  0x32   : > { %701 = vrot.lane.b32.xlu2 %v5240_v17, %s5056_s12  ;;  %699 = vrot.lane.b32.xlu1 %v5243_v18, %s5056_s12 }
  0x33   : > { %697 = vrot.lane.b32.xlu0 %v5247_v20, %s5056_s12  ;;  %534 = vmatmul.bf16.vlgmr.msra.gmra.mxu0 %v4453_v19 }
  0x34   : > { %594 = vmatmul.bf16.vlgmr.msra.gmra.mxu3 %v4465_v21 }
  0x3a   : > { %707 = vrot.lane.b32.xlu2 %v5257_v22, %s5056_s12  ;;  %705 = vrot.lane.b32.xlu1 %v5260_v23, %s5056_s12 }
  0x3b   : > { %703 = vrot.lane.b32.xlu0 %v5263_v24, %s5056_s12 }
  0x42   : > { %713 = vrot.lane.b32.xlu2 %v5272_v25, %s5056_s12  ;;  %711 = vrot.lane.b32.xlu1 %v5275_v26, %s5056_s12 }
  0x43   : > { %709 = vrot.lane.b32.xlu0 %v5279_v28, %s5056_s12  ;;  %539 = vmatmul.bf16.gmra.mxu0 %v4454_v27 }
  0x44   : > { %599 = vmatmul.bf16.gmra.mxu3 %v4466_v29  ;;  %v4463_v29 = vld [vmem:[%s5237_s19 + $0x50] sm:$0xff] }
  0x4a   : > { %719 = vrot.lane.b32.xlu2 %v5289_v30, %s5056_s12  ;;  %717 = vrot.lane.b32.xlu1 %v5292_v31, %s5056_s12 }
  0x4b   : > { %715 = vrot.lane.b32.xlu0 %v5295_v32, %s5056_s12 }
  0x52   : > { %725 = vrot.lane.b32.xlu2 %v5304_v33, %s5056_s12  ;;  %723 = vrot.lane.b32.xlu1 %v5307_v34, %s5056_s12 }
  0x53   : > { %721 = vrot.lane.b32.xlu0 %v5311_v36, %s5056_s12  ;;  %544 = vmatmul.bf16.gmra.mxu0 %v4455_v35 }
  0x54   : > { %604 = vmatmul.bf16.gmra.mxu3 %v4467_v37 }
  0x5a   : > { %731 = vrot.lane.b32.xlu2 %v5321_v38, %s5056_s12  ;;  %729 = vrot.lane.b32.xlu1 %v5324_v39, %s5056_s12 }
  0x5b   : > { %727 = vrot.lane.b32.xlu0 %v5327_v40, %s5056_s12 }
  0x62   : > { %737 = vrot.lane.b32.xlu2 %v5336_v41, %s5056_s12  ;;  %735 = vrot.lane.b32.xlu1 %v5340_v43, %s5056_s12 }
  0x63   : > { %733 = vrot.lane.b32.xlu0 %v5343_v44, %s5056_s12  ;;  %549 = vmatmul.bf16.gmra.mxu0 %v4456_v42 }
  0x64   : > { %609 = vmatmul.bf16.gmra.mxu3 %v4468_v45 }
  0x6a   : > { %2656 = vrot.lane.b32.xlu2 %v5198_v9, %s5057_s20  ;;  %741 = vrot.lane.b32.xlu1 %v5353_v46, %s5056_s12 }
  0x6b   : > { %739 = vrot.lane.b32.xlu0 %v5356_v47, %s5056_s12 }
  0x72   : > { %2662 = vrot.lane.b32.xlu2 %v5174_v3, %s5057_s20  ;;  %2654 = vrot.lane.b32.xlu1 %v5180_v5, %s5057_s20 }
  0x73   : > { %2658 = vrot.lane.b32.xlu0 %v5177_v4, %s5057_s20  ;;  %554 = vmatmul.bf16.gmra.mxu0 %v4457_v48 }
  0x74   : > { %v5416_v62 = vpop.permute.xlu2 %687 }
  0x7a   : > { %2668 = vrot.lane.b32.xlu2 %v5216_v13, %s5057_s20  ;;  %2660 = vrot.lane.b32.xlu1 %v5195_v8, %s5057_s20  ;;  %v4462_v13 = vld [vmem:[%s5237_s19 + $0x48] sm:$0xff] }
  0x7b   : > { %2664 = vrot.lane.b32.xlu0 %v5192_v7, %s5057_s20 }
  0x7c   : > { %v5434_v6 = vpop.permute.xlu2 %689 }
  0x82   : > { %2674 = vrot.lane.b32.xlu2 %v5243_v18, %s5057_s20  ;;  %2666 = vrot.lane.b32.xlu1 %v5219_v14, %s5057_s20 }
  0x83   : > { %2670 = vrot.lane.b32.xlu0 %v5213_v12, %s5057_s20  ;;  %559 = vmatmul.bf16.gmra.mxu0 %v4458_v49 }
  0x84   : > { %v5449_v15 = vpop.permute.xlu2 %695 }
  0x8a   : > { %2680 = vrot.lane.b32.xlu2 %v5260_v23, %s5057_s20  ;;  %2672 = vrot.lane.b32.xlu1 %v5247_v20, %s5057_s20 }
  0x8b   : > { %2676 = vrot.lane.b32.xlu0 %v5240_v17, %s5057_s20 }
  0x8c   : > { %v684_v50 = vpop.permute.xlu1 %683 }
  0x8d   : > { %v680_v51 = vpop.permute.xlu0 %679 }
  0x92   : > { %2686 = vrot.lane.b32.xlu2 %v5275_v26, %s5057_s20  ;;  %2678 = vrot.lane.b32.xlu1 %v5263_v24, %s5057_s20 }
  0x93   : > { %2682 = vrot.lane.b32.xlu0 %v5257_v22, %s5057_s20  ;;  %564 = vmatmul.bf16.gmra.mxu0 %v4459_v52  ;;  %v5463_v22 = vpop.permute.xlu2 %701 }
  0x94   : > { %v5397_v53 = vpop.permute.xlu1 %685 }
  0x95   : > { %v682_v54 = vpop.permute.xlu0 %681 }
  0x9a   : > { %2684 = vrot.lane.b32.xlu1 %v5279_v28, %s5057_s20 }
  0x9b   : > { %2688 = vrot.lane.b32.xlu0 %v5272_v25, %s5057_s20  ;;  %v5482_v45 = vpop.permute.xlu2 %707 }
  0x9c   : > { %v5403_v55 = vpop.permute.xlu1 %693 }
  0x9d   : > { %v5405_v56 = vpop.permute.xlu0 %691 }
  0xa3   : > { %569 = vmatmul.bf16.gmra.mxu0 %v4460_v57  ;;  %v5488_v49 = vpop.permute.xlu2 %713 }
  0xa4   : > { %v5408_v58 = vpop.permute.xlu1 %699 }
  0xa5   : > { %v5410_v59 = vpop.permute.xlu0 %697 }
  0xab   : > { %v5493_v52 = vpop.permute.xlu2 %719 }
  0xac   : > { %v5412_v60 = vpop.permute.xlu1 %705 }
  0xad   : > { %v5414_v61 = vpop.permute.xlu0 %703 }
  0xb0   : > { %v535_v1 = vpop.f32.mrf.mxu0 }
  0xb1   : > { %v5425_v2 = vadd.f32 %v5421_v63, %v535_v1 }
  0xb3   : > { %8744 = vst [vmem:[#allocation5_spill] sm:$0xff] %v5425_v2  ;;  %574 = vmatmul.bf16.gmra.mxu0 %v4461_v0  ;;  %v5432_v5 = vadd.f32 %v680_v51, %v5425_v2  ;;  %v4464_v51 = vld [vmem:[%s5237_s19 + $0x58] sm:$0xff]  ;;  %s7669_s19 = scalar_lea.vmem [#allocation2], %s4302_s10 }
  0xb4   : > { %v5427_v3 = vpop.permute.xlu1 %711  ;;  %s4221_s24 = sshll.u32 %s7669_s19, 4  ;;  %s4222_s24 = int_to_ptr.vmem [resolvable:$true] %s4221_s24 }
  0xb5   : > { %v5429_v4 = vpop.permute.xlu0 %709  ;;  %v808_v8 = vsel %vm807_vm0, %v5432_v5, -inf }
  0xb7   : > { %v595_v12 = vpop.f32.mrf.mxu3 }
  0xb8   : > { %v537_v7 = vpop.f32.mrf.mxu0  ;;  %v5461_v21 = vadd.f32 %v5421_v63, %v595_v12 }
  0xb9   : > { %v5439_v9 = vadd.f32 %v5421_v63, %v537_v7 }
  0xba   : > { %8747 = vst [vmem:[#allocation8_spill] sm:$0xff] %v5461_v21 }
  0xbb   : > { %809 = vmax.xlane.f32.xlu2 %v808_v8  ;;  %8745 = vst [vmem:[#allocation6_spill] sm:$0xff] %v5439_v9  ;;  %v5447_v14 = vadd.f32 %v682_v54, %v5439_v9 }
  0xbc   : > { %v5441_v10 = vpop.permute.xlu1 %717 }
  0xbd   : > { %v5443_v11 = vpop.permute.xlu0 %715  ;;  %v811_v17 = vsel %vm807_vm0, %v5447_v14, -inf }
  0xbf   : > { %v597_v19 = vpop.f32.mrf.mxu3 }
  0xc0   : > { %v5458_v20 = vadd.f32 %v5421_v63, %v597_v19  ;;  %v540_v24 = vpop.f32.mrf.mxu0 }
  0xc1   : > { %v5475_v35 = vadd.f32 %v5421_v63, %v540_v24 }
  0xc2   : > { %8746 = vst [vmem:[#allocation7_spill] sm:$0xff] %v5458_v20 }
  0xc3   : > { %579 = vmatmul.bf16.gmra.mxu0 %v4462_v13  ;;  %8748 = vst [vmem:[#allocation9_spill] sm:$0xff] %v5475_v35  ;;  %v5480_v42 = vadd.f32 %v684_v50, %v5475_v35  ;;  %v5497_v50 = vpop.permute.xlu2 %725 }
  0xc4   : > { %v5451_v16 = vpop.permute.xlu1 %723 }
  0xc5   : > { %v5455_v18 = vpop.permute.xlu0 %721  ;;  %812 = vmax.xlane.f32.xlu0 %v811_v17  ;;  %v814_v48 = vsel %vm807_vm0, %v5480_v42, -inf }
  0xc7   : > { %v600_v54 = vpop.f32.mrf.mxu3 }
  0xc8   : > { %v5500_v57 = vadd.f32 %v5421_v63, %v600_v54  ;;  %v542_v7 = vpop.f32.mrf.mxu0 }
  0xca   : > { %8749 = vst [vmem:[#allocation10_spill] sm:$0xff] %v5500_v57 }
  0xcb   : > { %v732_v0 = vpop.permute.xlu2 %731 }
  0xcc   : > { %v730_v23 = vpop.permute.xlu1 %729 }
  0xcd   : > { %v5466_v25 = vadd.f32 %v730_v23, %v5458_v20  ;;  %v728_v26 = vpop.permute.xlu0 %727 }
  0xce   : > { %v5469_v27 = vadd.f32 %v728_v26, %v5461_v21 }
  0xcf   : > { %v883_v28 = vsel %vm807_vm0, %v5466_v25, -inf  ;;  %v602_v8 = vpop.f32.mrf.mxu3 }
  0xd0   : > { %v880_v37 = vsel %vm807_vm0, %v5469_v27, -inf  ;;  %884 = vmax.xlane.f32.xlu2 %v883_v28  ;;  %v545_v12 = vpop.f32.mrf.mxu0  ;;  %v5520_v19 = vadd.f32 %v5421_v63, %v602_v8 }
  0xd1   : > { %881 = vmax.xlane.f32.xlu1 %v880_v37  ;;  %v5515_v13 = vadd.f32 %v5421_v63, %v545_v12 }
  0xd2   : > { %8752 = vst [vmem:[#allocation13_spill] sm:$0xff] %v5520_v19 }
  0xd3   : > { %584 = vmatmul.bf16.gmra.mxu0 %v4463_v29  ;;  %8751 = vst [vmem:[#allocation12_spill] sm:$0xff] %v5515_v13  ;;  %v5524_v24 = vadd.f32 %v5416_v62, %v5515_v13  ;;  %v738_v12 = vpop.permute.xlu2 %737 }
  0xd4   : > { %v736_v37 = vpop.permute.xlu1 %735 }
  0xd5   : > { %v734_v23 = vpop.permute.xlu0 %733  ;;  %v820_v29 = vsel %vm807_vm0, %v5524_v24, -inf }
  0xd7   : > { %v605_v26 = vpop.f32.mrf.mxu3 }
  0xd8   : > { %v5532_v28 = vadd.f32 %v5421_v63, %v605_v26 }
  0xd9   : > { %815 = vmax.xlane.f32.xlu1 %v814_v48  ;;  %2694 = vrot.lane.b32.xlu0 %v5289_v30, %s5057_s20  ;;  %v5503_v30 = vadd.f32 %v732_v0, %v5500_v57 }
  0xda   : > { %8753 = vst [vmem:[#allocation14_spill] sm:$0xff] %v5532_v28  ;;  %v5539_v62 = vadd.f32 %v736_v37, %v5532_v28 }
  0xdb   : > { %v886_v1 = vsel %vm807_vm0, %v5503_v30, -inf }
  0xe3   : > { %589 = vmatmul.bf16.gmra.mxu0 %v4464_v51  ;;  %v892_v51 = vsel %vm807_vm0, %v5539_v62, -inf }
  0xe8   : > { %2692 = vrot.lane.b32.xlu2 %v5292_v31, %s5057_s20  ;;  %v5508_v31 = vadd.f32 %v5421_v63, %v542_v7 }
  0xea   : > { %8750 = vst [vmem:[#allocation11_spill] sm:$0xff] %v5508_v31 }
  0xf2   : > { %2690 = vrot.lane.b32.xlu1 %v5295_v32, %s5057_s20  ;;  %v5512_v32 = vadd.f32 %v5397_v53, %v5508_v31  ;;  %v5527_v53 = vadd.f32 %v734_v23, %v5520_v19 }
  0xf4   : > { %v817_v17 = vsel %vm807_vm0, %v5512_v32, -inf  ;;  %v889_v48 = vsel %vm807_vm0, %v5527_v53, -inf }
 0x103   : > { %887 = vmax.xlane.f32.xlu0 %v886_v1  ;;  %v607_v1 = vpop.f32.mrf.mxu3 }
 0x104   : > { %v5555_v7 = vadd.f32 %v5421_v63, %v607_v1 }
 0x106   : > { %8755 = vst [vmem:[#allocation16_spill] sm:$0xff] %v5555_v7 }
 0x10b   : > { %v610_v23 = vpop.f32.mrf.mxu3 }
 0x111   : > { %818 = vmax.xlane.f32.xlu2 %v817_v17 }
 0x117   : > { %2700 = vrot.lane.b32.xlu0 %v5304_v33, %s5057_s20  ;;  %v547_v33 = vpop.f32.mrf.mxu0 }
 0x118   : > { %v5546_v54 = vadd.f32 %v5421_v63, %v547_v33  ;;  %v612_v33 = vpop.f32.mrf.mxu3 }
 0x119   : > { %821 = vmax.xlane.f32.xlu2 %v820_v29 }
 0x11a   : > { %8754 = vst [vmem:[#allocation15_spill] sm:$0xff] %v5546_v54  ;;  %v5552_v0 = vadd.f32 %v5434_v6, %v5546_v54 }
 0x11c   : > { %890 = vmax.xlane.f32.xlu1 %v889_v48  ;;  %v823_v8 = vsel %vm807_vm0, %v5552_v0, -inf }
 0x121   : > { %893 = vmax.xlane.f32.xlu2 %v892_v51  ;;  %v5581_v51 = vadd.f32 %v5421_v63, %v610_v23 }
 0x123   : > { %8756 = vst [vmem:[#allocation17_spill] sm:$0xff] %v5581_v51 }
 0x135   : > { %2696 = vrot.lane.b32.xlu1 %v5311_v36, %s5057_s20  ;;  %v5560_v36 = vadd.f32 %v738_v12, %v5555_v7  ;;  %v5586_v12 = vadd.f32 %v5421_v63, %v612_v33 }
 0x137   : > { %v895_v17 = vsel %vm807_vm0, %v5560_v36, -inf  ;;  %8757 = vst [vmem:[#allocation18_spill] sm:$0xff] %v5586_v12 }
 0x139   : > { %2698 = vrot.lane.b32.xlu2 %v5307_v34, %s5057_s20  ;;  %v550_v34 = vpop.f32.mrf.mxu0 }
 0x13a   : > { %v5565_v6 = vadd.f32 %v5421_v63, %v550_v34 }
 0x13c   : > { %v5572_v37 = vadd.f32 %v5405_v56, %v5565_v6 }
 0x13e   : > { %v826_v1 = vsel %vm807_vm0, %v5572_v37, -inf }
 0x141   : > { %824 = vmax.xlane.f32.xlu0 %v823_v8  ;;  %v552_v26 = vpop.f32.mrf.mxu0  ;;  %v740_v8 = vpop.permute.xlu0 %739 }
 0x142   : > { %v5568_v29 = vadd.f32 %v5421_v63, %v552_v26 }
 0x144   : > { %v5578_v48 = vadd.f32 %v5403_v55, %v5568_v29  ;;  %v5591_v55 = vadd.f32 %v740_v8, %v5581_v51 }
 0x146   : > { %v829_v56 = vsel %vm807_vm0, %v5578_v48, -inf  ;;  %v898_v34 = vsel %vm807_vm0, %v5591_v55, -inf }
 0x149   : > { %896 = vmax.xlane.f32.xlu0 %v895_v17  ;;  %v555_v26 = vpop.f32.mrf.mxu0  ;;  %v5650_v51 = vpop.permute.xlu0 %2658 }
 0x14a   : > { %v5601_v33 = vadd.f32 %v5421_v63, %v555_v26  ;;  %8764 = vst [vmem:[#allocation25_spill] sm:$0xff] %v5650_v51 }
 0x15d   : > { %2706 = vrot.lane.b32.xlu0 %v5321_v38, %s5057_s20  ;;  %v742_v38 = vpop.permute.xlu1 %741 }
 0x15e   : > { %v5594_v17 = vadd.f32 %v742_v38, %v5586_v12  ;;  %v5613_v38 = vpop.permute.xlu2 %2656 }
 0x15f   : > { %827 = vmax.xlane.f32.xlu1 %v826_v1  ;;  %v5609_v1 = vadd.f32 %v5449_v15, %v5601_v33  ;;  %8758 = vst [vmem:[#allocation19_spill] sm:$0xff] %v5613_v38 }
 0x160   : > { %v901_v23 = vsel %vm807_vm0, %v5594_v17, -inf }
 0x161   : > { %v832_v8 = vsel %vm807_vm0, %v5609_v1, -inf }
 0x162   : > { %830 = vmax.xlane.f32.xlu2 %v829_v56  ;;  %v557_v56 = vpop.f32.mrf.mxu0 }
 0x167   : > { %899 = vmax.xlane.f32.xlu1 %v898_v34 }
 0x16a   : > { %902 = vmax.xlane.f32.xlu2 %v901_v23  ;;  %v560_v34 = vpop.f32.mrf.mxu0  ;;  %v5617_v23 = vpop.permute.xlu2 %2662 }
 0x16b   : > { %8759 = vst [vmem:[#allocation20_spill] sm:$0xff] %v5617_v23 }
 0x172   : > { %v562_v15 = vpop.f32.mrf.mxu0  ;;  %v5633_v20 = vpop.permute.xlu2 %2668 }
 0x173   : > { %8760 = vst [vmem:[#allocation21_spill] sm:$0xff] %v5633_v20  ;;  %v5644_v23 = vadd.f32 %v5421_v63, %v562_v15 }
 0x175   : > { %8763 = vst [vmem:[#allocation24_spill] sm:$0xff] %v5644_v23 }
 0x17a   : > { %v5639_v21 = vpop.permute.xlu2 %2674 }
 0x17b   : > { %8761 = vst [vmem:[#allocation22_spill] sm:$0xff] %v5639_v21 }
 0x180   : > { %2702 = vrot.lane.b32.xlu1 %v5327_v40, %s5057_s20  ;;  %v5620_v40 = vadd.f32 %v5421_v63, %v557_v56 }
 0x182   : > { %2704 = vrot.lane.b32.xlu2 %v5324_v39, %s5057_s20  ;;  %v5623_v39 = vadd.f32 %v5421_v63, %v560_v34  ;;  %v5627_v26 = vadd.f32 %v5410_v59, %v5620_v40  ;;  %v565_v34 = vpop.f32.mrf.mxu0  ;;  %v5641_v59 = vpop.permute.xlu2 %2680 }
 0x183   : > { %8762 = vst [vmem:[#allocation23_spill] sm:$0xff] %v5641_v59 }
 0x187   : > { %833 = vmax.xlane.f32.xlu0 %v832_v8  ;;  %v5631_v8 = vadd.f32 %v5408_v58, %v5623_v39  ;;  %v5648_v58 = vadd.f32 %v5463_v22, %v5644_v23  ;;  %v5663_v22 = vpop.permute.xlu1 %2654 }
 0x188   : > { %8767 = vst [vmem:[#allocation28_spill] sm:$0xff] %v5663_v22 }
 0x189   : > { %v838_v56 = vsel %vm807_vm0, %v5631_v8, -inf  ;;  %v841_v15 = vsel %vm807_vm0, %v5648_v58, -inf }
 0x18a   : > { %v567_v12 = vpop.f32.mrf.mxu0 }
 0x192   : > { %v570_v20 = vpop.f32.mrf.mxu0 }
 0x19b   : > { %2712 = vrot.lane.b32.xlu0 %v5336_v41, %s5057_s20  ;;  %v835_v41 = vsel %vm807_vm0, %v5627_v26, -inf }
 0x1aa   : > { %836 = vmax.xlane.f32.xlu1 %v835_v41  ;;  %v5657_v41 = vadd.f32 %v5421_v63, %v570_v20 }
 0x1ab   : > { %839 = vmax.xlane.f32.xlu2 %v838_v56  ;;  %v5661_v56 = vpop.permute.xlu2 %2686 }
 0x1ac   : > { %8765 = vst [vmem:[#allocation26_spill] sm:$0xff] %v5657_v41  ;;  %v5667_v59 = vadd.f32 %v5482_v45, %v5657_v41 }
 0x1ad   : > { %8766 = vst [vmem:[#allocation27_spill] sm:$0xff] %v5661_v56 }
 0x1b3   : > { %v810_v20 = vpop.xlane.xlu2 %809 }
 0x1b4   : > { %v904_v56 = vsub.f32 %v5432_v5, %v810_v20  ;;  %v5695_v5 = vadd.f32 %v5421_v63, %v567_v12 }
 0x1b6   : > { %v936_v21 = vmul.f32 1.442695, %v904_v56  ;;  %8775 = vst [vmem:[#allocation36_spill] sm:$0xff] %v5695_v5  ;;  %v5698_v56 = vadd.f32 %v5421_v63, %v565_v34 }
 0x1b8   : > { %4541 = vpow2.f32 %v936_v21  ;;  %v5704_v21 = vadd.f32 %v5412_v60, %v5695_v5 }
 0x1ba   : > { %v847_v12 = vsel %vm807_vm0, %v5704_v21, -inf }
 0x1c3   : > { %2708 = vrot.lane.b32.xlu1 %v5343_v44, %s5057_s20  ;;  %2710 = vrot.lane.b32.xlu2 %v5340_v43, %s5057_s20  ;;  %v850_v43 = vsel %vm807_vm0, %v5667_v59, -inf  ;;  %v5675_v44 = vpop.permute.xlu0 %2664 }
 0x1c4   : > { %8768 = vst [vmem:[#allocation29_spill] sm:$0xff] %v5675_v44 }
 0x1c5   : > { %842 = vmax.xlane.f32.xlu0 %v841_v15  ;;  %v5677_v15 = vpop.permute.xlu1 %2660 }
 0x1c6   : > { %8769 = vst [vmem:[#allocation30_spill] sm:$0xff] %v5677_v15  ;;  %v885_v15 = vpop.xlane.xlu2 %884 }
 0x1cb   : > { %2714 = vrot.lane.b32.xlu1 %v5356_v47, %s5057_s20  ;;  %2716 = vrot.lane.b32.xlu2 %v5353_v46, %s5057_s20  ;;  %v5680_v45 = vpop.permute.xlu0 %2670  ;;  %v5684_v47 = vpop.eup %4541  ;;  %s5060_s20 = smov 112  }
 0x1cc   : > { %8770 = vst [vmem:[#allocation31_spill] sm:$0xff] %v5680_v45  ;;  %v5708_v45 = vadd.f32 %v5414_v61, %v5698_v56 }
 0x1cd   : > { %851 = vmax.xlane.f32.xlu0 %v850_v43  ;;  %v5682_v7 = vpop.permute.xlu1 %2666  ;;  %v572_v43 = vpop.f32.mrf.mxu0 }
 0x1ce   : > { %8771 = vst [vmem:[#allocation32_spill] sm:$0xff] %v5682_v7  ;;  %v5716_v34 = vadd.f32 %v5421_v63, %v572_v43  ;;  %v5749_v57 = vpop.permute.xlu2 %2692 }
 0x1cf   : > { %8782 = vst [vmem:[#allocation43_spill] sm:$0xff] %v5749_v57 }
 0x1d3   : > { %v5686_v46 = vpop.permute.xlu0 %2676 }
 0x1d4   : > { %8772 = vst [vmem:[#allocation33_spill] sm:$0xff] %v5686_v46 }
 0x1d5   : > { %v5690_v44 = vpop.permute.xlu1 %2672  ;;  %v575_v46 = vpop.f32.mrf.mxu0 }
 0x1d6   : > { %8773 = vst [vmem:[#allocation34_spill] sm:$0xff] %v5690_v44  ;;  %v5711_v44 = vadd.f32 %v5421_v63, %v575_v46  ;;  %v5730_v46 = vadd.f32 %v5429_v4, %v5716_v34 }
 0x1d8   : > { %8777 = vst [vmem:[#allocation38_spill] sm:$0xff] %v5711_v44  ;;  %v5724_v61 = vadd.f32 %v5427_v3, %v5711_v44  ;;  %v853_v7 = vsel %vm807_vm0, %v5730_v46, -inf }
 0x1da   : > { %v856_v43 = vsel %vm807_vm0, %v5724_v61, -inf }
 0x1db   : > { %v5692_v28 = vpop.permute.xlu0 %2682 }
 0x1dc   : > { %8774 = vst [vmem:[#allocation35_spill] sm:$0xff] %v5692_v28  ;;  %v844_v28 = vsel %vm807_vm0, %v5708_v45, -inf }
 0x1dd   : > { %v5700_v20 = vpop.permute.xlu1 %2678 }
 0x1de   : > { %8776 = vst [vmem:[#allocation37_spill] sm:$0xff] %v5700_v20 }
 0x1e1   : > { %1032 = vrot.lane.b32.xlu0 %v5684_v47, %s5056_s12 }
 0x1e3   : > { %v5720_v60 = vpop.permute.xlu0 %2688 }
 0x1e4   : > { %8778 = vst [vmem:[#allocation39_spill] sm:$0xff] %v5720_v60 }
 0x1e5   : > { %v5726_v20 = vpop.permute.xlu1 %2684 }
 0x1e6   : > { %8779 = vst [vmem:[#allocation40_spill] sm:$0xff] %v5726_v20 }
 0x1ed   : > { %v882_v60 = vpop.xlane.xlu1 %881 }
 0x1ee   : > { %v928_v20 = vsub.f32 %v5469_v27, %v882_v60 }
 0x1f0   : > { %v984_v38 = vmul.f32 1.442695, %v928_v20 }
 0x1f2   : > { %4543 = vpow2.f32 %v984_v38  ;;  %v819_v38 = vpop.xlane.xlu2 %818 }
 0x1f4   : > { %848 = vmax.xlane.f32.xlu2 %v847_v12  ;;  %v813_v12 = vpop.xlane.xlu0 %812 }
 0x1f5   : > { %845 = vmax.xlane.f32.xlu1 %v844_v28  ;;  %v577_v28 = vpop.f32.mrf.mxu0  ;;  %v905_v51 = vsub.f32 %v5447_v14, %v813_v12 }
 0x1f6   : > { %v5737_v3 = vadd.f32 %v5421_v63, %v577_v28  ;;  %v929_v28 = vsub.f32 %v5466_v25, %v885_v15  ;;  %v907_v25 = vsub.f32 %v5512_v32, %v819_v38 }
 0x1f7   : > { %v938_v22 = vmul.f32 1.442695, %v905_v51 }
 0x1f8   : > { %8780 = vst [vmem:[#allocation41_spill] sm:$0xff] %v5737_v3  ;;  %v5744_v4 = vadd.f32 %v5488_v49, %v5737_v3  ;;  %v5754_v14 = vpop.eup %4543  ;;  %v986_v20 = vmul.f32 1.442695, %v929_v28 }
 0x1f9   : > { %4545 = vpow2.f32 %v938_v22 }
 0x1fc   : > { %857 = vmax.xlane.f32.xlu2 %v856_v43  ;;  %v5740_v19 = vpop.permute.xlu0 %2694  ;;  %v816_v43 = vpop.xlane.xlu1 %815 }
 0x1fd   : > { %854 = vmax.xlane.f32.xlu1 %v853_v7  ;;  %8781 = vst [vmem:[#allocation42_spill] sm:$0xff] %v5740_v19  ;;  %v859_v7 = vsel %vm807_vm0, %v5744_v4, -inf  ;;  %v906_v27 = vsub.f32 %v5480_v42, %v816_v43  ;;  %v580_v32 = vpop.f32.mrf.mxu0 }
 0x1ff   : > { %v940_v19 = vmul.f32 1.442695, %v906_v27  ;;  %v5758_v51 = vpop.eup %4545 }
 0x201   : > { %4547 = vpow2.f32 %v940_v19 }
 0x202   : > { %4549 = vpow2.f32 %v986_v20 }
 0x204   : > { %v888_v60 = vpop.xlane.xlu0 %887 }
 0x205   : > { %v930_v49 = vsub.f32 %v5503_v30, %v888_v60  ;;  %v942_v30 = vmul.f32 1.442695, %v907_v25  ;;  %v582_v43 = vpop.f32.mrf.mxu0  ;;  %v5785_v60 = vadd.f32 %v5421_v63, %v580_v32 }
 0x206   : > { %v5782_v27 = vadd.f32 %v5421_v63, %v582_v43  ;;  %v822_v43 = vpop.xlane.xlu2 %821 }
 0x207   : > { %v988_v12 = vmul.f32 1.442695, %v930_v49  ;;  %v5763_v42 = vpop.eup %4547  ;;  %8785 = vst [vmem:[#allocation46_spill] sm:$0xff] %v5785_v60  ;;  %v5793_v20 = vadd.f32 %v5443_v11, %v5785_v60 }
 0x208   : > { %v5767_v22 = vpop.eup %4549  ;;  %8784 = vst [vmem:[#allocation45_spill] sm:$0xff] %v5782_v27  ;;  %v5789_v28 = vadd.f32 %v5441_v10, %v5782_v27 }
 0x209   : > { %4551 = vpow2.f32 %v988_v12  ;;  %v862_v25 = vsel %vm807_vm0, %v5793_v20, -inf }
 0x20a   : > { %4553 = vpow2.f32 %v942_v30  ;;  %v865_v12 = vsel %vm807_vm0, %v5789_v28, -inf }
 0x20b   : > { %860 = vmax.xlane.f32.xlu0 %v859_v7  ;;  %v5779_v7 = vpop.permute.xlu1 %2690 }
 0x20c   : > { %8783 = vst [vmem:[#allocation44_spill] sm:$0xff] %v5779_v7  ;;  %v5802_v32 = vpop.permute.xlu0 %2700 }
 0x20d   : > { %v585_v38 = vpop.f32.mrf.mxu0  ;;  %8787 = vst [vmem:[#allocation48_spill] sm:$0xff] %v5802_v32 }
 0x20e   : > { %v5800_v30 = vadd.f32 %v5421_v63, %v585_v38  ;;  %v908_v38 = vsub.f32 %v5524_v24, %v822_v43 }
 0x20f   : > { %v5769_v15 = vpop.eup %4551 }
 0x210   : > { %v5775_v19 = vpop.eup %4553  ;;  %8786 = vst [vmem:[#allocation47_spill] sm:$0xff] %v5800_v30  ;;  %v5808_v11 = vadd.f32 %v5493_v52, %v5800_v30  ;;  %v944_v60 = vmul.f32 1.442695, %v908_v38  ;;  %v894_v52 = vpop.xlane.xlu2 %893 }
 0x213   : > { %v891_v49 = vpop.xlane.xlu1 %890 }
 0x214   : > { %1080 = vrot.lane.b32.xlu2 %v5754_v14, %s5056_s12  ;;  %v931_v57 = vsub.f32 %v5527_v53, %v891_v49  ;;  %v825_v7 = vpop.xlane.xlu0 %824  ;;  %v932_v53 = vsub.f32 %v5539_v62, %v894_v52 }
 0x215   : > { %v909_v32 = vsub.f32 %v5552_v0, %v825_v7 }
 0x216   : > { %1034 = vrot.lane.b32.xlu1 %v5758_v51, %s5056_s12  ;;  %v990_v27 = vmul.f32 1.442695, %v931_v57  ;;  %v992_v57 = vmul.f32 1.442695, %v932_v53 }
 0x217   : > { %v946_v30 = vmul.f32 1.442695, %v909_v32 }
 0x218   : > { %4555 = vpow2.f32 %v990_v27  ;;  %v5842_v27 = vpop.permute.xlu2 %2698 }
 0x219   : > { %4557 = vpow2.f32 %v944_v60  ;;  %8789 = vst [vmem:[#allocation50_spill] sm:$0xff] %v5842_v27  ;;  %v587_v60 = vpop.f32.mrf.mxu0 }
 0x21a   : > { %4559 = vpow2.f32 %v946_v30 }
 0x21b   : > { %v5804_v10 = vpop.permute.xlu1 %2696 }
 0x21c   : > { %1036 = vrot.lane.b32.xlu2 %v5763_v42, %s5056_s12  ;;  %8788 = vst [vmem:[#allocation49_spill] sm:$0xff] %v5804_v10  ;;  %v897_v3 = vpop.xlane.xlu0 %896 }
 0x21d   : > { %v933_v24 = vsub.f32 %v5560_v36, %v897_v3 }
 0x21e   : > { %1082 = vrot.lane.b32.xlu1 %v5767_v22, %s5056_s12  ;;  %v5817_v41 = vpop.eup %4555 }
 0x21f   : > { %1084 = vrot.lane.b32.xlu0 %v5769_v15, %s5056_s12  ;;  %v5822_v0 = vpop.eup %4557 }
 0x220   : > { %v5826_v62 = vpop.eup %4559  ;;  %v831_v30 = vpop.xlane.xlu2 %830 }
 0x221   : > { %v590_v43 = vpop.f32.mrf.mxu0 }
 0x222   : > { %v5847_v38 = vadd.f32 %v5421_v63, %v590_v43 }
 0x224   : > { %8791 = vst [vmem:[#allocation52_spill] sm:$0xff] %v5847_v38  ;;  %v5853_v53 = vadd.f32 %v5451_v16, %v5847_v38 }
 0x227   : > { %1038 = vrot.lane.b32.xlu0 %v5775_v19, %s5056_s12 }
 0x245   : > { %866 = vmax.xlane.f32.xlu2 %v865_v12  ;;  %v868_v12 = vsel %vm807_vm0, %v5808_v11, -inf }
 0x248   : > { %863 = vmax.xlane.f32.xlu1 %v862_v25  ;;  %v828_v25 = vpop.xlane.xlu1 %827 }
 0x249   : > { %v910_v10 = vsub.f32 %v5572_v37, %v828_v25  ;;  %v994_v37 = vmul.f32 1.442695, %v933_v24  ;;  %v5849_v25 = vpop.permute.xlu0 %2706  ;;  %v592_v24 = vpop.f32.mrf.mxu0 }
 0x24a   : > { %8792 = vst [vmem:[#allocation53_spill] sm:$0xff] %v5849_v25 }
 0x24b   : > { %v948_v49 = vmul.f32 1.442695, %v910_v10 }
 0x24d   : > { %4561 = vpow2.f32 %v948_v49  ;;  %v5856_v49 = vadd.f32 %v5421_v63, %v587_v60 }
 0x24e   : > { %4563 = vpow2.f32 %v992_v57 }
 0x24f   : > { %4565 = vpow2.f32 %v994_v37  ;;  %8793 = vst [vmem:[#allocation54_spill] sm:$0xff] %v5856_v49  ;;  %v874_v37 = vsel %vm807_vm0, %v5853_v53, -inf  ;;  %v5867_v43 = vadd.f32 %v5455_v18, %v5856_v49 }
 0x250   : > { %v900_v32 = vpop.xlane.xlu1 %899 }
 0x251   : > { %869 = vmax.xlane.f32.xlu0 %v868_v12  ;;  %v903_v12 = vpop.xlane.xlu2 %902  ;;  %v834_v27 = vpop.xlane.xlu0 %833  ;;  %v871_v60 = vsel %vm807_vm0, %v5867_v43, -inf }
 0x253   : > { %v5828_v7 = vpop.eup %4561 }
 0x254   : > { %v5834_v36 = vpop.eup %4563 }
 0x255   : > { %v5838_v3 = vpop.eup %4565 }
 0x258   : > { %v5844_v10 = vpop.permute.xlu1 %2702 }
 0x259   : > { %8790 = vst [vmem:[#allocation51_spill] sm:$0xff] %v5844_v10  ;;  %v5858_v57 = vpop.permute.xlu2 %2704  ;;  %v5863_v10 = vadd.f32 %v5421_v63, %v592_v24  ;;  %v934_v24 = vsub.f32 %v5591_v55, %v900_v32 }
 0x25a   : > { %8794 = vst [vmem:[#allocation55_spill] sm:$0xff] %v5858_v57 }
 0x25b   : > { %8795 = vst [vmem:[#allocation56_spill] sm:$0xff] %v5863_v10  ;;  %v5875_v57 = vadd.f32 %v5497_v50, %v5863_v10  ;;  %v996_v49 = vmul.f32 1.442695, %v934_v24  ;;  %v911_v50 = vsub.f32 %v5578_v48, %v831_v30 }
 0x25d   : > { %1086 = vrot.lane.b32.xlu2 %v5817_v41, %s5056_s12  ;;  %v877_v63 = vsel %vm807_vm0, %v5875_v57, -inf  ;;  %4567 = vpow2.f32 %v996_v49  ;;  %v950_v23 = vmul.f32 1.442695, %v911_v50 }
 0x260   : > { %v837_v52 = vpop.xlane.xlu1 %836 }
 0x261   : > { %1040 = vrot.lane.b32.xlu1 %v5822_v0, %s5056_s12  ;;  %v840_v38 = vpop.xlane.xlu2 %839 }
 0x265   : > { %1042 = vrot.lane.b32.xlu0 %v5826_v62, %s5056_s12  ;;  %1044 = vrot.lane.b32.xlu2 %v5828_v7, %s5056_s12 }
 0x268   : > { %v5869_v16 = vpop.permute.xlu1 %2708 }
 0x269   : > { %1088 = vrot.lane.b32.xlu1 %v5834_v36, %s5056_s12  ;;  %8796 = vst [vmem:[#allocation57_spill] sm:$0xff] %v5869_v16  ;;  %v912_v16 = vsub.f32 %v5609_v1, %v834_v27  ;;  %v5885_v25 = vpop.permute.xlu2 %2710  ;;  %v935_v1 = vsub.f32 %v5594_v17, %v903_v12 }
 0x26a   : > { %8799 = vst [vmem:[#allocation60_spill] sm:$0xff] %v5885_v25 }
 0x26b   : > { %v952_v44 = vmul.f32 1.442695, %v912_v16  ;;  %v998_v30 = vmul.f32 1.442695, %v935_v1 }
 0x26d   : > { %1090 = vrot.lane.b32.xlu0 %v5838_v3, %s5056_s12  ;;  %4569 = vpow2.f32 %v952_v44 }
 0x26e   : > { %4571 = vpow2.f32 %v950_v23 }
 0x270   : > { %v5882_v18 = vpop.permute.xlu1 %2714 }
 0x271   : > { %8798 = vst [vmem:[#allocation59_spill] sm:$0xff] %v5882_v18  ;;  %v5893_v27 = vpop.permute.xlu2 %2716 }
 0x272   : > { %8800 = vst [vmem:[#allocation61_spill] sm:$0xff] %v5893_v27 }
 0x278   : > { %v846_v5 = vpop.xlane.xlu1 %845 }
 0x279   : > { %v916_v48 = vsub.f32 %v5708_v45, %v846_v5  ;;  %v914_v45 = vsub.f32 %v5631_v8, %v840_v38  ;;  %v849_v16 = vpop.xlane.xlu2 %848 }
 0x27b   : > { %v956_v24 = vmul.f32 1.442695, %v914_v45 }
 0x280   : > { %v855_v23 = vpop.xlane.xlu1 %854 }
 0x281   : > { %v919_v5 = vsub.f32 %v5730_v46, %v855_v23  ;;  %v917_v46 = vsub.f32 %v5704_v21, %v849_v16 }
 0x283   : > { %v962_v38 = vmul.f32 1.442695, %v917_v46 }
 0x28e   : > { %875 = vmax.xlane.f32.xlu2 %v874_v37  ;;  %v5880_v37 = vpop.permute.xlu0 %2712 }
 0x28f   : > { %8797 = vst [vmem:[#allocation58_spill] sm:$0xff] %v5880_v37 }
 0x293   : > { %872 = vmax.xlane.f32.xlu1 %v871_v60  ;;  %v913_v60 = vsub.f32 %v5627_v26, %v837_v52 }
 0x295   : > { %v954_v55 = vmul.f32 1.442695, %v913_v60  ;;  %v966_v60 = vmul.f32 1.442695, %v919_v5 }
 0x296   : > { %v843_v10 = vpop.xlane.xlu0 %842 }
 0x297   : > { %878 = vmax.xlane.f32.xlu0 %v877_v63  ;;  %v915_v32 = vsub.f32 %v5648_v58, %v843_v10  ;;  %v5890_v63 = vpop.eup %4567  ;;  %4573 = vpow2.f32 %v954_v55  ;;  %v960_v58 = vmul.f32 1.442695, %v916_v48 }
 0x298   : > { %v5898_v49 = vpop.eup %4569 }
 0x299   : > { %v958_v26 = vmul.f32 1.442695, %v915_v32  ;;  %v5900_v44 = vpop.eup %4571  ;;  %v858_v32 = vpop.xlane.xlu2 %857 }
 0x29a   : > { %v920_v21 = vsub.f32 %v5724_v61, %v858_v32 }
 0x29b   : > { %4575 = vpow2.f32 %v958_v26 }
 0x29c   : > { %4577 = vpow2.f32 %v998_v30  ;;  %v968_v26 = vmul.f32 1.442695, %v920_v21 }
 0x29d   : > { %v5907_v10 = vpop.eup %4573  ;;  %4579 = vpow2.f32 %v960_v58 }
 0x29e   : > { %v852_v52 = vpop.xlane.xlu0 %851 }
 0x29f   : > { %v918_v17 = vsub.f32 %v5667_v59, %v852_v52 }
 0x2a1   : > { %v964_v12 = vmul.f32 1.442695, %v918_v17  ;;  %v5913_v50 = vpop.eup %4575  ;;  %v1035_v17 = vpop.permute.xlu1 %1034 }
 0x2a2   : > { %v5915_v59 = vpop.eup %4577  ;;  %v1132_v23 = vsel %vm1128_vm1, %v1035_v17, 0.0  ;;  %v1081_v45 = vpop.permute.xlu2 %1080 }
 0x2a3   : > { %4581 = vpow2.f32 %v964_v12  ;;  %v5921_v8 = vpop.eup %4579  ;;  %v1201_v12 = vsel %vm1128_vm1, %v1081_v45, 0.0 }
 0x2a4   : > { %4583 = vpow2.f32 %v956_v24 }
 0x2a5   : > { %4585 = vpow2.f32 %v966_v60 }
 0x2a6   : > { %1092 = vrot.lane.b32.xlu2 %v5890_v63, %s5056_s12  ;;  %4587 = vpow2.f32 %v962_v38  ;;  %v1033_v58 = vpop.permute.xlu0 %1032 }
 0x2a7   : > { %4589 = vpow2.f32 %v968_v26  ;;  %v1129_v61 = vsel %vm1128_vm1, %v1033_v58, 0.0 }
 0x2a9   : > { %v5926_v55 = vpop.eup %4581  ;;  %v1083_v5 = vpop.permute.xlu1 %1082 }
 0x2aa   : > { %v5928_v1 = vpop.eup %4583  ;;  %v1204_v16 = vsel %vm1128_vm1, %v1083_v5, 0.0  ;;  %v1037_v46 = vpop.permute.xlu2 %1036 }
 0x2ab   : > { %1048 = vrot.lane.b32.xlu0 %v5898_v49, %s5056_s12  ;;  %v5934_v48 = vpop.eup %4585  ;;  %v1135_v32 = vsel %vm1128_vm1, %v1037_v46, 0.0 }
 0x2ac   : > { %1046 = vrot.lane.b32.xlu1 %v5900_v44, %s5056_s12  ;;  %v5939_v30 = vpop.eup %4587 }
 0x2ad   : > { %v5943_v52 = vpop.eup %4589 }
 0x2ae   : > { %1050 = vrot.lane.b32.xlu2 %v5907_v10, %s5056_s12  ;;  %v861_v24 = vpop.xlane.xlu0 %860 }
 0x2af   : > { %v921_v60 = vsub.f32 %v5744_v4, %v861_v24 }
 0x2b1   : > { %v970_v21 = vmul.f32 1.442695, %v921_v60 }
 0x2b3   : > { %1054 = vrot.lane.b32.xlu0 %v5913_v50, %s5056_s12  ;;  %4591 = vpow2.f32 %v970_v21 }
 0x2b4   : > { %1094 = vrot.lane.b32.xlu1 %v5915_v59, %s5056_s12 }
 0x2b6   : > { %1056 = vrot.lane.b32.xlu2 %v5921_v8, %s5056_s12  ;;  %v1085_v58 = vpop.permute.xlu0 %1084 }
 0x2b8   : > { %v867_v4 = vpop.xlane.xlu2 %866 }
 0x2bb   : > { %1060 = vrot.lane.b32.xlu0 %v5926_v55, %s5056_s12  ;;  %v864_v38 = vpop.xlane.xlu1 %863 }
 0x2bc   : > { %1052 = vrot.lane.b32.xlu1 %v5928_v1, %s5056_s12  ;;  %v922_v26 = vsub.f32 %v5793_v20, %v864_v38  ;;  %v923_v20 = vsub.f32 %v5789_v28, %v867_v4 }
 0x2be   : > { %1062 = vrot.lane.b32.xlu2 %v5934_v48, %s5056_s12  ;;  %v972_v17 = vmul.f32 1.442695, %v922_v26  ;;  %v974_v5 = vmul.f32 1.442695, %v923_v20 }
 0x2c0   : > { %4593 = vpow2.f32 %v972_v17  ;;  %v1087_v46 = vpop.permute.xlu2 %1086 }
 0x2c1   : > { %4595 = vpow2.f32 %v974_v5 }
 0x2c4   : > { %1058 = vrot.lane.b32.xlu1 %v5939_v30, %s5056_s12 }
 0x2cc   : > { %1064 = vrot.lane.b32.xlu1 %v5943_v52, %s5056_s12 }
 0x2d3   : > { %v1041_v24 = vpop.permute.xlu1 %1040 }
 0x2d4   : > { %v1141_v38 = vsel %vm1128_vm1, %v1041_v24, 0.0 }
 0x2db   : > { %v1089_v28 = vpop.permute.xlu1 %1088 }
 0x2dc   : > { %v1213_v26 = vsel %vm1128_vm1, %v1089_v28, 0.0 }
 0x2e5   : > { %1130 = vadd.xlane.f32.xlu0 %v1129_v61  ;;  %v1207_v61 = vsel %vm1128_vm1, %v1085_v58, 0.0 }
 0x2e7   : > { %1133 = vadd.xlane.f32.xlu2 %v1132_v23  ;;  %v5955_v23 = vpop.eup %4591 }
 0x2e8   : > { %v5959_v45 = vpop.eup %4593 }
 0x2ed   : > { %1202 = vadd.xlane.f32.xlu0 %v1201_v12  ;;  %v5964_v12 = vpop.eup %4595 }
 0x2ef   : > { %1205 = vadd.xlane.f32.xlu2 %v1204_v16  ;;  %v1039_v16 = vpop.permute.xlu0 %1038 }
 0x2f0   : > { %v1138_v60 = vsel %vm1128_vm1, %v1039_v16, 0.0 }
 0x2f6   : > { %1136 = vadd.xlane.f32.xlu1 %v1135_v32  ;;  %v1210_v32 = vsel %vm1128_vm1, %v1087_v46, 0.0  ;;  %v1045_v46 = vpop.permute.xlu2 %1044 }
 0x2f7   : > { %v870_v21 = vpop.xlane.xlu0 %869 }
 0x2f8   : > { %v924_v58 = vsub.f32 %v5808_v11, %v870_v21 }
 0x2fe   : > { %1208 = vadd.xlane.f32.xlu1 %v1207_v61  ;;  %v976_v61 = vmul.f32 1.442695, %v924_v58 }
 0x2ff   : > { %v1043_v17 = vpop.permute.xlu0 %1042 }
 0x300   : > { %4597 = vpow2.f32 %v976_v61  ;;  %v1144_v20 = vsel %vm1128_vm1, %v1043_v17, 0.0 }
 0x301   : > { %1066 = vrot.lane.b32.xlu0 %v5955_v23, %s5056_s12 }
 0x306   : > { %v873_v4 = vpop.xlane.xlu1 %872 }
 0x307   : > { %1068 = vrot.lane.b32.xlu2 %v5959_v45, %s5056_s12  ;;  %v925_v5 = vsub.f32 %v5867_v43, %v873_v4  ;;  %v1091_v16 = vpop.permute.xlu0 %1090 }
 0x308   : > { %v1216_v11 = vsel %vm1128_vm1, %v1091_v16, 0.0 }
 0x309   : > { %v978_v24 = vmul.f32 1.442695, %v925_v5 }
 0x30b   : > { %4599 = vpow2.f32 %v978_v24 }
 0x30f   : > { %v879_v5 = vpop.xlane.xlu0 %878 }
 0x310   : > { %v927_v16 = vsub.f32 %v5875_v57, %v879_v5 }
 0x312   : > { %v982_v24 = vmul.f32 1.442695, %v927_v16 }
 0x317   : > { %1070 = vrot.lane.b32.xlu1 %v5964_v12, %s5056_s12 }
 0x31e   : > { %v1047_v58 = vpop.permute.xlu1 %1046 }
 0x326   : > { %v1095_v4 = vpop.permute.xlu1 %1094 }
 0x32b   : > { %1139 = vadd.xlane.f32.xlu0 %v1138_v60  ;;  %v5975_v60 = vpop.eup %4597 }
 0x330   : > { %1142 = vadd.xlane.f32.xlu2 %v1141_v38  ;;  %v5980_v38 = vpop.eup %4599 }
 0x331   : > { %8801 = vst [vmem:[#allocation62_spill] sm:$0xff] %v5980_v38 }
 0x333   : > { %1211 = vadd.xlane.f32.xlu0 %v1210_v32  ;;  %v876_v32 = vpop.xlane.xlu2 %875 }
 0x334   : > { %v926_v43 = vsub.f32 %v5853_v53, %v876_v32  ;;  %v1150_v53 = vsel %vm1128_vm1, %v1047_v58, 0.0 }
 0x336   : > { %v980_v21 = vmul.f32 1.442695, %v926_v43  ;;  %v1053_v43 = vpop.permute.xlu1 %1052 }
 0x337   : > { %v1159_v58 = vsel %vm1128_vm1, %v1053_v43, 0.0 }
 0x338   : > { %1214 = vadd.xlane.f32.xlu2 %v1213_v26  ;;  %4601 = vpow2.f32 %v980_v21  ;;  %v1147_v26 = vsel %vm1128_vm1, %v1045_v46, 0.0  ;;  %v1049_v46 = vpop.permute.xlu0 %1048 }
 0x339   : > { %4603 = vpow2.f32 %v982_v24 }
 0x33b   : > { %v1093_v17 = vpop.permute.xlu2 %1092 }
 0x33c   : > { %v1219_v61 = vsel %vm1128_vm1, %v1093_v17, 0.0 }
 0x33e   : > { %v5985_v28 = vpop.eup %4601  ;;  %v1059_v16 = vpop.permute.xlu1 %1058 }
 0x33f   : > { %8802 = vst [vmem:[#allocation63_spill] sm:$0xff] %v5985_v28  ;;  %v5999_v32 = vpop.eup %4603 }
 0x340   : > { %8803 = vst [vmem:[#allocation64_spill] sm:$0xff] %v5999_v32 }
 0x341   : > { %1145 = vadd.xlane.f32.xlu1 %v1144_v20  ;;  %v1222_v20 = vsel %vm1128_vm1, %v1095_v4, 0.0 }
 0x343   : > { %v1051_v57 = vpop.permute.xlu2 %1050 }
 0x344   : > { %v1156_v21 = vsel %vm1128_vm1, %v1051_v57, 0.0 }
 0x346   : > { %v1065_v43 = vpop.permute.xlu1 %1064 }
 0x347   : > { %1072 = vrot.lane.b32.xlu0 %v5975_v60, %s5056_s12 }
 0x349   : > { %1217 = vadd.xlane.f32.xlu1 %v1216_v11  ;;  %v1153_v11 = vsel %vm1128_vm1, %v1049_v46, 0.0 }
 0x34b   : > { %v1057_v17 = vpop.permute.xlu2 %1056 }
 0x350   : > { %1074 = vrot.lane.b32.xlu2 %v5980_v38, %s5056_s12 }
 0x362   : > { %1076 = vrot.lane.b32.xlu1 %v5985_v28, %s5056_s12 }
 0x369   : > { %v6020_v37 = vpop.xlane.xlu1 %1136 }
 0x36a   : > { %3728 = vrot.lane.b32.xlu1 %v5475_v35, %s5058_s22 }
 0x371   : > { %1148 = vadd.xlane.f32.xlu0 %v1147_v26  ;;  %v1055_v26 = vpop.permute.xlu0 %1054 }
 0x379   : > { %1220 = vadd.xlane.f32.xlu0 %v1219_v61  ;;  %1151 = vadd.xlane.f32.xlu2 %v1150_v53  ;;  %v1061_v61 = vpop.permute.xlu0 %1060  ;;  %v6009_v53 = vpop.permute.xlu2 %1062 }
 0x37a   : > { %v1171_v46 = vsel %vm1128_vm1, %v1061_v61, 0.0 }
 0x381   : > { %1223 = vadd.xlane.f32.xlu2 %v1222_v20  ;;  %v1131_v4 = vpop.xlane.xlu0 %1130  ;;  %v1162_v20 = vsel %vm1128_vm1, %v1055_v26, 0.0  ;;  %v1134_v5 = vpop.xlane.xlu2 %1133 }
 0x382   : > { %4605 = vrcp.f32 %v1134_v5  ;;  %vm1245_vm4 = vweird.f32 %v1134_v5  ;;  %v1236_v35 = vand.u32 2147483648, %v1131_v4  ;;  %vm1230_vm6 = vweird.f32 %v1131_v4 }
 0x383   : > { %4607 = vrcp.f32 %v1131_v4 }
 0x389   : > { %v6016_v24 = vpop.xlane.xlu0 %1202 }
 0x38a   : > { %vm1590_vm14 = vweird.f32 %v6016_v24 }
 0x38d   : > { %3726 = vrot.lane.b32.xlu0 %v5439_v9, %s5058_s22  ;;  %v6022_v9 = vpop.xlane.xlu2 %1205 }
 0x38e   : > { %4609 = vrcp.f32 %v6022_v9  ;;  %vm1605_vm12 = vweird.f32 %v6022_v9 }
 0x38f   : > { %4611 = vrcp.f32 %v6016_v24 }
 0x394   : > { %1154 = vadd.xlane.f32.xlu1 %v1153_v11  ;;  %v4606_v11 = vpop.eup %4605 }
 0x395   : > { %1078 = vrot.lane.b32.xlu0 %v5999_v32, %s5056_s12  ;;  %v4608_v57 = vpop.eup %4607  ;;  %vm1246_vm2 = vweird.f32 %v4606_v11 }
 0x396   : > { %v1226_v27 = vmul.f32 %v4608_v57, %v1131_v4  ;;  %vm1231_vm3 = vweird.f32 %v4608_v57  ;;  %vm1247_vm5 = vmor %vm1245_vm4, %vm1246_vm2 }
 0x397   : > { %vm1232_vm7 = vmor %vm1230_vm6, %vm1231_vm3  ;;  %vm1260_vm6 = vweird.f32 %v6020_v37 }
 0x398   : > { %v1227_v18 = vsub.f32 1.0, %v1226_v27 }
 0x399   : > { %3724 = vrot.lane.b32.xlu2 %v5425_v2, %s5058_s22 }
 0x3ad   : > { %3734 = vrot.lane.b32.xlu1 %v5546_v54, %s5058_s22  ;;  %v1228_v54 = vmul.f32 %v4608_v57, %v1227_v18 }
 0x3af   : > { %v1229_v61 = vadd.f32 %v4608_v57, %v1228_v54 }
 0x3b1   : > { %v1233_v18 = vsel %vm1232_vm7, %v4608_v57, %v1229_v61  ;;  %v1168_v57 = vsel %vm1128_vm1, %v1059_v16, 0.0 }
 0x3bf   : > { %1157 = vadd.xlane.f32.xlu0 %v1156_v21  ;;  %v1067_v21 = vpop.permute.xlu0 %1066 }
 0x3c0   : > { %v1180_v26 = vsel %vm1128_vm1, %v1067_v21, 0.0  ;;  %v1234_v21 = vand.u32 2147483647, %v1131_v4 }
 0x3c2   : > { %1160 = vadd.xlane.f32.xlu2 %v1159_v58  ;;  %v1241_v58 = vmul.f32 %v4606_v11, %v1134_v5  ;;  %vm1235_vm9 = vcmp.eq.f32.partialorder %v1234_v21, 8.507059e+37 }
 0x3d3   : > { %3732 = vrot.lane.b32.xlu0 %v5515_v13, %s5058_s22 }
 0x3d7   : > { %1163 = vadd.xlane.f32.xlu1 %v1162_v20  ;;  %v1242_v20 = vsub.f32 1.0, %v1241_v58  ;;  %v6024_v58 = vpop.xlane.xlu1 %1208 }
 0x3d9   : > { %v1243_v25 = vmul.f32 %v4606_v11, %v1242_v20 }
 0x3da   : > { %3730 = vrot.lane.b32.xlu2 %v5508_v31, %s5058_s22  ;;  %v1251_v31 = vand.u32 2147483648, %v1134_v5 }
 0x3db   : > { %v1244_v13 = vadd.f32 %v4606_v11, %v1243_v25  ;;  %v1237_v25 = vor.u32 1.1754944e-38, %v1236_v35 }
 0x3dc   : > { %v1252_v27 = vor.u32 1.1754944e-38, %v1251_v31 }
 0x3dd   : > { %v1238_v54 = vsel %vm1235_vm9, %v1237_v25, %v1233_v18  ;;  %v1177_v18 = vsel %vm1128_vm1, %v1065_v43, 0.0 }
 0x3de   : > { %v6032_v4 = vmul.f32 %v5684_v47, %v1238_v54  ;;  %v1174_v47 = vsel %vm1128_vm1, %v6009_v53, 0.0 }
 0x3df   : > { %1172 = vadd.xlane.f32.xlu1 %v1171_v46  ;;  %v1249_v46 = vand.u32 2147483647, %v1134_v5  ;;  %v1165_v5 = vsel %vm1128_vm1, %v1057_v17, 0.0  ;;  %v1071_v31 = vpop.permute.xlu1 %1070 }
 0x3e0   : > { %8805 = vst [vmem:[#allocation66_spill] sm:$0xff] %v6032_v4 }
 0x3e1   : > { %vm1250_vm8 = vcmp.eq.f32.partialorder %v1249_v46, 8.507059e+37 }
 0x3e7   : > { %1181 = vadd.xlane.f32.xlu1 %v1180_v26  ;;  %v1248_v26 = vsel %vm1247_vm5, %v4606_v11, %v1244_v13  ;;  %v1069_v13 = vpop.permute.xlu2 %1068  ;;  %v6038_v11 = vpop.xlane.xlu0 %1139 }
 0x3e8   : > { %v1253_v20 = vsel %vm1250_vm8, %v1252_v27, %v1248_v26  ;;  %4613 = vrcp.f32 %v6038_v11  ;;  %v6050_v21 = vpop.xlane.xlu1 %1145  ;;  %vm1275_vm5 = vweird.f32 %v6038_v11 }
 0x3e9   : > { %v6027_v2 = vmul.f32 %v5758_v51, %v1253_v20  ;;  %v4610_v51 = vpop.eup %4609  ;;  %4615 = vrcp.f32 %v6020_v37  ;;  %v1183_v20 = vsel %vm1128_vm1, %v1069_v13, 0.0 }
 0x3ea   : > { %v6041_v17 = vpop.eup %4611  ;;  %v1601_v61 = vmul.f32 %v4610_v51, %v6022_v9  ;;  %4617 = vrcp.f32 %v6050_v21  ;;  %vm1606_vm10 = vweird.f32 %v4610_v51 }
 0x3eb   : > { %8804 = vst [vmem:[#allocation65_spill] sm:$0xff] %v6027_v2  ;;  %v1705_v35 = vpack.c.bf16 %v6027_v2, %v6032_v4  ;;  %v1586_v16 = vmul.f32 %v6041_v17, %v6016_v24  ;;  %vm1591_vm11 = vweird.f32 %v6041_v17  ;;  %vm6081_vm13 = vmor %vm1605_vm12, %vm1606_vm10 }
 0x3ec   : > { %v1602_v26 = vsub.f32 1.0, %v1601_v61  ;;  %vm6091_vm15 = vmor %vm1590_vm14, %vm1591_vm11 }
 0x3ed   : > { %v1587_v53 = vsub.f32 1.0, %v1586_v16  ;;  %v1611_v16 = vand.u32 2147483648, %v6022_v9 }
 0x3ee   : > { %v6054_v27 = vpop.eup %4613  ;;  %v1603_v54 = vmul.f32 %v4610_v51, %v1602_v26 }
 0x3ef   : > { %v6048_v46 = vpop.xlane.xlu2 %1142  ;;  %v6057_v25 = vpop.eup %4615  ;;  %vm1276_vm4 = vweird.f32 %v6054_v27 }
 0x3f0   : > { %v6068_v43 = vpop.xlane.xlu1 %1217  ;;  %4619 = vrcp.f32 %v6048_v46  ;;  %v1604_v61 = vadd.f32 %v4610_v51, %v1603_v54  ;;  %v6077_v4 = vpop.eup %4617  ;;  %v1594_v54 = vand.u32 2147483647, %v6016_v24  ;;  %vm1261_vm3 = vweird.f32 %v6057_v25  ;;  %vm1277_vm7 = vmor %vm1275_vm5, %vm1276_vm4 }
 0x3f1   : > { %v1301_v28 = vmul.f32 %v6077_v4, %v6050_v21  ;;  %vm6125_vm8 = vmor %vm1260_vm6, %vm1261_vm3  ;;  %vm1306_vm11 = vweird.f32 %v6077_v4  ;;  %vm1290_vm14 = vweird.f32 %v6048_v46 }
 0x3f2   : > { %vm1595_vm2 = vcmp.eq.f32.partialorder %v1594_v54, 8.507059e+37 }
 0x3f8   : > { %v1077_v38 = vpop.permute.xlu1 %1076 }
 0x3fd   : > { %1166 = vadd.xlane.f32.xlu0 %v1165_v5  ;;  %v1271_v5 = vmul.f32 %v6054_v27, %v6038_v11 }
 0x3ff   : > { %v1272_v13 = vsub.f32 1.0, %v1271_v5  ;;  %v1596_v5 = vand.u32 2147483648, %v6016_v24 }
 0x400   : > { %1743 = vrot.lane.b32.xlu1 %v1705_v35, %s5056_s12  ;;  %v1256_v35 = vmul.f32 %v6057_v25, %v6020_v37 }
 0x401   : > { %v1597_v2 = vor.u32 1.1754944e-38, %v1596_v5  ;;  %v1279_v5 = vand.u32 2147483647, %v6038_v11 }
 0x402   : > { %v1257_v26 = vsub.f32 1.0, %v1256_v35  ;;  %v1608_v35 = vsel %vm6081_vm13, %v4610_v51, %v1604_v61  ;;  %v1266_v51 = vand.u32 2147483648, %v6020_v37  ;;  %vm1305_vm13 = vweird.f32 %v6050_v21 }
 0x403   : > { %1169 = vadd.xlane.f32.xlu2 %v1168_v57  ;;  %v1588_v57 = vmul.f32 %v6041_v17, %v1587_v53  ;;  %v1609_v53 = vand.u32 2147483647, %v6022_v9  ;;  %vm1280_vm9 = vcmp.eq.f32.partialorder %v1279_v5, 8.507059e+37  ;;  %v1309_v5 = vand.u32 2147483647, %v6050_v21 }
 0x404   : > { %v1258_v32 = vmul.f32 %v6057_v25, %v1257_v26 }
 0x405   : > { %1175 = vadd.xlane.f32.xlu0 %v1174_v47  ;;  %v6066_v47 = vpop.xlane.xlu2 %1214  ;;  %vm1610_vm0 = vcmp.eq.f32.partialorder %v1609_v53, 8.507059e+37 }
 0x406   : > { %v1259_v53 = vadd.f32 %v6057_v25, %v1258_v32  ;;  %v1264_v32 = vand.u32 2147483647, %v6020_v37 }
 0x408   : > { %v1263_v37 = vsel %vm6125_vm8, %v6057_v25, %v1259_v53  ;;  %vm1265_vm10 = vcmp.eq.f32.partialorder %v1264_v32, 8.507059e+37  ;;  %vm1620_vm8 = vweird.f32 %v6024_v58 }
 0x40b   : > { %1178 = vadd.xlane.f32.xlu2 %v1177_v18  ;;  %v1186_v18 = vsel %vm1128_vm1, %v1071_v31, 0.0  ;;  %v1273_v31 = vmul.f32 %v6054_v27, %v1272_v13 }
 0x40d   : > { %1184 = vadd.xlane.f32.xlu0 %v1183_v20  ;;  %v1589_v20 = vadd.f32 %v6041_v17, %v1588_v57  ;;  %v6089_v57 = vpop.eup %4619  ;;  %v1274_v13 = vadd.f32 %v6054_v27, %v1273_v31  ;;  %v6107_v26 = vpop.permute.xlu2 %1074  ;;  %v1302_v31 = vsub.f32 1.0, %v1301_v28 }
 0x40e   : > { %vm1291_vm12 = vweird.f32 %v6089_v57 }
 0x40f   : > { %v1593_v24 = vsel %vm6091_vm15, %v6041_v17, %v1589_v20  ;;  %v1281_v17 = vand.u32 2147483648, %v6038_v11  ;;  %v1195_v20 = vsel %vm1128_vm1, %v1077_v38, 0.0  ;;  %vm6164_vm15 = vmor %vm1305_vm13, %vm1306_vm11  ;;  %v1294_v38 = vand.u32 2147483647, %v6048_v46 }
 0x410   : > { %v1598_v54 = vsel %vm1595_vm2, %v1597_v2, %v1593_v24  ;;  %v1267_v24 = vor.u32 1.1754944e-38, %v1266_v51  ;;  %v1303_v2 = vmul.f32 %v6077_v4, %v1302_v31  ;;  %vm1310_vm2 = vcmp.eq.f32.partialorder %v1309_v5, 8.507059e+37 }
 0x411   : > { %v6130_v28 = vmul.f32 %v5754_v14, %v1598_v54  ;;  %vm1295_vm3 = vcmp.eq.f32.partialorder %v1294_v38, 8.507059e+37 }
 0x412   : > { %v1304_v25 = vadd.f32 %v6077_v4, %v1303_v2 }
 0x413   : > { %1187 = vadd.xlane.f32.xlu2 %v1186_v18  ;;  %v1612_v18 = vor.u32 1.1754944e-38, %v1611_v16  ;;  %v1286_v16 = vmul.f32 %v6089_v57, %v6048_v46  ;;  %8813 = vst [vmem:[#allocation68_spill] sm:$0xff] %v6130_v28 }
 0x415   : > { %v1613_v61 = vsel %vm1610_vm0, %v1612_v18, %v1608_v35  ;;  %v6114_v35 = vpop.xlane.xlu0 %1211  ;;  %v1287_v11 = vsub.f32 1.0, %v1286_v16  ;;  %v1282_v18 = vor.u32 1.1754944e-38, %v1281_v17  ;;  %v1268_v16 = vsel %vm1265_vm10, %v1267_v24, %v1263_v37  ;;  %vm6177_vm0 = vmor %vm1290_vm14, %vm1291_vm12 }
 0x416   : > { %v6117_v9 = vmul.f32 %v5767_v22, %v1613_v61  ;;  %v1278_v22 = vsel %vm1277_vm7, %v6054_v27, %v1274_v13  ;;  %4621 = vrcp.f32 %v6114_v35  ;;  %v6142_v13 = vpop.xlane.xlu2 %1151  ;;  %v1311_v17 = vand.u32 2147483648, %v6050_v21 }
 0x417   : > { %4623 = vrcp.f32 %v6024_v58  ;;  %v1283_v14 = vsel %vm1280_vm9, %v1282_v18, %v1278_v22  ;;  %v1288_v27 = vmul.f32 %v6089_v57, %v1287_v11  ;;  %v1308_v22 = vsel %vm6164_vm15, %v6077_v4, %v1304_v25 }
 0x418   : > { %8810 = vst [vmem:[#allocation67_spill] sm:$0xff] %v6117_v9  ;;  %v1717_v61 = vpack.c.bf16 %v6117_v9, %v6130_v28  ;;  %v6148_v51 = vmul.f32 %v5775_v19, %v1283_v14  ;;  %v1296_v19 = vand.u32 2147483648, %v6048_v46  ;;  %4625 = vrcp.f32 %v6068_v43 }
 0x419   : > { %v1289_v54 = vadd.f32 %v6089_v57, %v1288_v27  ;;  %4627 = vrcp.f32 %v6066_v47  ;;  %v1312_v37 = vor.u32 1.1754944e-38, %v1311_v17  ;;  %vm1635_vm6 = vweird.f32 %v6114_v35 }
 0x41a   : > { %8814 = vst [vmem:[#allocation69_spill] sm:$0xff] %v6148_v51  ;;  %v1297_v4 = vor.u32 1.1754944e-38, %v1296_v19  ;;  %vm1665_vm14 = vweird.f32 %v6068_v43 }
 0x41b   : > { %1196 = vadd.xlane.f32.xlu2 %v1195_v20  ;;  %v6154_v20 = vmul.f32 %v5763_v42, %v1268_v16  ;;  %v1293_v2 = vsel %vm6177_vm0, %v6089_v57, %v1289_v54  ;;  %vm1650_vm0 = vweird.f32 %v6066_v47 }
 0x41c   : > { %v6150_v53 = vpop.eup %4621  ;;  %v1298_v25 = vsel %vm1295_vm3, %v1297_v4, %v1293_v2  ;;  %v1626_v2 = vand.u32 2147483648, %v6024_v58  ;;  %v1624_v4 = vand.u32 2147483647, %v6024_v58 }
 0x41d   : > { %8815 = vst [vmem:[#allocation70_spill] sm:$0xff] %v6154_v20  ;;  %v6160_v31 = vpop.eup %4623  ;;  %v1073_v42 = vpop.permute.xlu0 %1072  ;;  %v1631_v11 = vmul.f32 %v6150_v53, %v6114_v35  ;;  %v1706_v21 = vpack.c.bf16 %v6148_v51, %v6154_v20  ;;  %v6202_v54 = vmul.f32 %v5822_v0, %v1298_v25  ;;  %vm1636_vm4 = vweird.f32 %v6150_v53 }
 0x41e   : > { %v1616_v46 = vmul.f32 %v6160_v31, %v6024_v58  ;;  %v1189_v24 = vsel %vm1128_vm1, %v1073_v42, 0.0  ;;  %v6189_v27 = vpop.xlane.xlu2 %1223  ;;  %v6191_v16 = vpop.eup %4625  ;;  %vm1621_vm5 = vweird.f32 %v6160_v31  ;;  %v1641_v0 = vand.u32 2147483648, %v6114_v35  ;;  %vm1637_vm7 = vmor %vm1635_vm6, %vm1636_vm4 }
 0x41f   : > { %v1632_v14 = vsub.f32 1.0, %v1631_v11  ;;  %v6196_v32 = vpop.eup %4627  ;;  %v1661_v57 = vmul.f32 %v6191_v16, %v6068_v43  ;;  %8821 = vst [vmem:[#allocation72_spill] sm:$0xff] %v6202_v54  ;;  %vm6226_vm9 = vmor %vm1620_vm8, %vm1621_vm5  ;;  %vm1625_vm11 = vcmp.eq.f32.partialorder %v1624_v4, 8.507059e+37  ;;  %vm1666_vm12 = vweird.f32 %v6191_v16 }
 0x420   : > { %v1617_v17 = vsub.f32 1.0, %v1616_v46  ;;  %v1646_v38 = vmul.f32 %v6196_v32, %v6066_v47  ;;  %vm1651_vm13 = vweird.f32 %v6196_v32  ;;  %vm1667_vm15 = vmor %vm1665_vm14, %vm1666_vm12 }
 0x421   : > { %1767 = vrot.lane.b32.xlu0 %v1717_v61, %s5056_s12  ;;  %v1313_v61 = vsel %vm1310_vm2, %v1312_v37, %v1308_v22  ;;  %v1633_v42 = vmul.f32 %v6150_v53, %v1632_v14  ;;  %v1662_v22 = vsub.f32 1.0, %v1661_v57  ;;  %v1639_v37 = vand.u32 2147483647, %v6114_v35  ;;  %vm1652_vm2 = vmor %vm1650_vm0, %vm1651_vm13 }
 0x422   : > { %v6194_v5 = vmul.f32 %v5826_v62, %v1313_v61  ;;  %v1618_v19 = vmul.f32 %v6160_v31, %v1617_v17  ;;  %v6209_v62 = vpop.permute.xlu1 %3728  ;;  %v1647_v46 = vsub.f32 1.0, %v1646_v38  ;;  %v1642_v17 = vor.u32 1.1754944e-38, %v1641_v0 }
 0x423   : > { %8822 = vst [vmem:[#allocation73_spill] sm:$0xff] %v6209_v62  ;;  %v1663_v61 = vmul.f32 %v6191_v16, %v1662_v22  ;;  %vm1640_vm10 = vcmp.eq.f32.partialorder %v1639_v37, 8.507059e+37  ;;  %v1627_v57 = vor.u32 1.1754944e-38, %v1626_v2  ;;  %v1669_v22 = vand.u32 2147483647, %v6068_v43 }
 0x424   : > { %8820 = vst [vmem:[#allocation71_spill] sm:$0xff] %v6194_v5  ;;  %v1707_v11 = vpack.c.bf16 %v6194_v5, %v6202_v54  ;;  %v1619_v18 = vadd.f32 %v6160_v31, %v1618_v19  ;;  %v1648_v35 = vmul.f32 %v6196_v32, %v1647_v46  ;;  %v1656_v37 = vand.u32 2147483648, %v6066_v47 }
 0x425   : > { %v1664_v38 = vadd.f32 %v6191_v16, %v1663_v61  ;;  %v1654_v46 = vand.u32 2147483647, %v6066_v47  ;;  %vm1670_vm3 = vcmp.eq.f32.partialorder %v1669_v22, 8.507059e+37 }
 0x427   : > { %v1668_v4 = vsel %vm1667_vm15, %v6191_v16, %v1664_v38  ;;  %vm1655_vm4 = vcmp.eq.f32.partialorder %v1654_v46, 8.507059e+37  ;;  %v1192_v46 = vsel %vm1128_vm1, %v6107_v26, 0.0  ;;  %vm1335_vm15 = vweird.f32 %v6142_v13 }
 0x429   : > { %1745 = vrot.lane.b32.xlu0 %v1706_v21, %s5056_s12  ;;  %v1634_v21 = vadd.f32 %v6150_v53, %v1633_v42  ;;  %v1623_v42 = vsel %vm6226_vm9, %v6160_v31, %v1619_v18  ;;  %v1649_v31 = vadd.f32 %v6196_v32, %v1648_v35 }
 0x42a   : > { %1190 = vadd.xlane.f32.xlu1 %v1189_v24  ;;  %v6219_v24 = vpop.permute.xlu2 %3724  ;;  %v6234_v19 = vpop.xlane.xlu1 %1154 }
 0x42b   : > { %8823 = vst [vmem:[#allocation74_spill] sm:$0xff] %v6219_v24  ;;  %v1638_v14 = vsel %vm1637_vm7, %v6150_v53, %v1634_v21  ;;  %v1671_v53 = vand.u32 2147483648, %v6068_v43  ;;  %v1628_v21 = vsel %vm1625_vm11, %v1627_v57, %v1623_v42  ;;  %v1653_v61 = vsel %vm1652_vm2, %v6196_v32, %v1649_v31 }
 0x42c   : > { %v1643_v58 = vsel %vm1640_vm10, %v1642_v17, %v1638_v14  ;;  %v6256_v2 = vmul.f32 %v5769_v15, %v1628_v21  ;;  %v1657_v14 = vor.u32 1.1754944e-38, %v1656_v37 }
 0x42d   : > { %v6250_v18 = vmul.f32 %v5817_v41, %v1643_v58  ;;  %v1672_v43 = vor.u32 1.1754944e-38, %v1671_v53 }
 0x42e   : > { %8827 = vst [vmem:[#allocation76_spill] sm:$0xff] %v6256_v2  ;;  %v1658_v15 = vsel %vm1655_vm4, %v1657_v14, %v1653_v61 }
 0x42f   : > { %8826 = vst [vmem:[#allocation75_spill] sm:$0xff] %v6250_v18  ;;  %v1718_v41 = vpack.c.bf16 %v6250_v18, %v6256_v2  ;;  %v1673_v47 = vsel %vm1670_vm3, %v1672_v43, %v1668_v4  ;;  %v6276_v42 = vmul.f32 %v5834_v36, %v1658_v15  ;;  %v4477_v36 = vld [vmem:[%s8578_s4] sm:$0xff] }
 0x430   : > { %v6271_v16 = vmul.f32 %v5838_v3, %v1673_v47  ;;  %1836 = vmatpush.bf16.msra.mxu1 %v4477_v36  ;;  %4490 = vmatpush.bf16.msrb.mxu3 %v4477_v36 }
 0x431   : > { %8830 = vst [vmem:[#allocation79_spill] sm:$0xff] %v6276_v42 }
 0x432   : > { %v6265_v25 = vpop.permute.xlu1 %3734  ;;  %8829 = vst [vmem:[#allocation78_spill] sm:$0xff] %v6271_v16  ;;  %v1719_v57 = vpack.c.bf16 %v6271_v16, %v6276_v42 }
 0x433   : > { %1747 = vrot.lane.b32.xlu2 %v1707_v11, %s5056_s12  ;;  %v6242_v11 = vpop.xlane.xlu0 %1148  ;;  %8828 = vst [vmem:[#allocation77_spill] sm:$0xff] %v6265_v25 }
 0x434   : > { %vm1320_vm2 = vweird.f32 %v6242_v11 }
 0x435   : > { %v6247_v0 = vpop.xlane.xlu2 %1160 }
 0x436   : > { %4629 = vrcp.f32 %v6247_v0  ;;  %v1386_v14 = vand.u32 2147483648, %v6247_v0  ;;  %vm1380_vm7 = vweird.f32 %v6247_v0  ;;  %v1384_v26 = vand.u32 2147483647, %v6247_v0 }
 0x437   : > { %4631 = vrcp.f32 %v6142_v13 }
 0x438   : > { %vm1385_vm11 = vcmp.eq.f32.partialorder %v1384_v26, 8.507059e+37 }
 0x43b   : > { %3736 = vrot.lane.b32.xlu2 %v5565_v6, %s5058_s22  ;;  %v6273_v35 = vpop.xlane.xlu0 %1220 }
 0x43c   : > { %v4630_v17 = vpop.eup %4629 }
 0x43d   : > { %v1376_v32 = vmul.f32 %v4630_v17, %v6247_v0  ;;  %v6291_v53 = vpop.eup %4631  ;;  %vm1381_vm5 = vweird.f32 %v4630_v17 }
 0x43e   : > { %v1331_v4 = vmul.f32 %v6291_v53, %v6142_v13  ;;  %vm1382_vm8 = vmor %vm1380_vm7, %vm1381_vm5  ;;  %vm1336_vm13 = vweird.f32 %v6291_v53 }
 0x43f   : > { %v1377_v3 = vsub.f32 1.0, %v1376_v32  ;;  %vm1337_vm0 = vmor %vm1335_vm15, %vm1336_vm13 }
 0x440   : > { %v1332_v32 = vsub.f32 1.0, %v1331_v4 }
 0x441   : > { %v1378_v31 = vmul.f32 %v4630_v17, %v1377_v3 }
 0x443   : > { %1769 = vrot.lane.b32.xlu1 %v1718_v41, %s5056_s12  ;;  %3742 = vrot.lane.b32.xlu2 %v5620_v40, %s5058_s22  ;;  %v6286_v38 = vpop.permute.xlu0 %3726  ;;  %v1379_v61 = vadd.f32 %v4630_v17, %v1378_v31 }
 0x444   : > { %8831 = vst [vmem:[#allocation80_spill] sm:$0xff] %v6286_v38 }
 0x445   : > { %v1383_v31 = vsel %vm1382_vm8, %v4630_v17, %v1379_v61  ;;  %v1326_v61 = vand.u32 2147483648, %v6242_v11  ;;  %vm1680_vm8 = vweird.f32 %v6273_v35 }
 0x447   : > { %v1327_v26 = vor.u32 1.1754944e-38, %v1326_v61 }
 0x44a   : > { %v1164_v58 = vpop.xlane.xlu1 %1163 }
 0x44b   : > { %4633 = vrcp.f32 %v1164_v58  ;;  %3740 = vrot.lane.b32.xlu1 %v5601_v33, %s5058_s22  ;;  %1771 = vrot.lane.b32.xlu2 %v1719_v57, %s5056_s12  ;;  %v1401_v15 = vand.u32 2147483648, %v1164_v58  ;;  %v1399_v57 = vand.u32 2147483647, %v1164_v58  ;;  %v6306_v3 = vpop.permute.xlu0 %1078  ;;  %vm1395_vm9 = vweird.f32 %v1164_v58 }
 0x44c   : > { %4635 = vrcp.f32 %v6242_v11 }
 0x44d   : > { %v1402_v25 = vor.u32 1.1754944e-38, %v1401_v15  ;;  %vm1400_vm12 = vcmp.eq.f32.partialorder %v1399_v57, 8.507059e+37  ;;  %4637 = vrcp.f32 %v6273_v35 }
 0x44e   : > { %4639 = vrcp.f32 %v6189_v27 }
 0x44f   : > { %4641 = vrcp.f32 %v6234_v19 }
 0x451   : > { %v4634_v21 = vpop.eup %4633 }
 0x452   : > { %v6293_v22 = vpop.eup %4635  ;;  %v1391_v37 = vmul.f32 %v4634_v21, %v1164_v58  ;;  %vm1396_vm6 = vweird.f32 %v4634_v21 }
 0x453   : > { %1193 = vadd.xlane.f32.xlu0 %v1192_v46  ;;  %3748 = vrot.lane.b32.xlu2 %v5698_v56, %s5058_s22  ;;  %v1316_v41 = vmul.f32 %v6293_v22, %v6242_v11  ;;  %vm1397_vm10 = vmor %vm1395_vm9, %vm1396_vm6  ;;  %v1387_v46 = vor.u32 1.1754944e-38, %v1386_v14  ;;  %vm1321_vm14 = vweird.f32 %v6293_v22  ;;  %v1324_v14 = vand.u32 2147483647, %v6242_v11 }
 0x454   : > { %v1392_v43 = vsub.f32 1.0, %v1391_v37  ;;  %vm1322_vm3 = vmor %vm1320_vm2, %vm1321_vm14 }
 0x455   : > { %v1317_v37 = vsub.f32 1.0, %v1316_v41  ;;  %v1388_v0 = vsel %vm1385_vm11, %v1387_v46, %v1383_v31  ;;  %v1339_v41 = vand.u32 2147483647, %v6142_v13  ;;  %vm1325_vm5 = vcmp.eq.f32.partialorder %v1324_v14, 8.507059e+37 }
 0x456   : > { %v1393_v47 = vmul.f32 %v4634_v21, %v1392_v43  ;;  %v1333_v43 = vmul.f32 %v6291_v53, %v1332_v32  ;;  %v6318_v17 = vmul.f32 %v5928_v1, %v1388_v0  ;;  %v6342_v32 = vpop.eup %4637 }
 0x457   : > { %v1318_v24 = vmul.f32 %v6293_v22, %v1317_v37  ;;  %vm1340_vm4 = vcmp.eq.f32.partialorder %v1339_v41, 8.507059e+37  ;;  %v6345_v11 = vpop.eup %4639  ;;  %v6371_v41 = vpop.permute.xlu2 %3730  ;;  %vm1681_vm6 = vweird.f32 %v6342_v32 }
 0x458   : > { %v1394_v36 = vadd.f32 %v4634_v21, %v1393_v47  ;;  %v1334_v58 = vadd.f32 %v6291_v53, %v1333_v43  ;;  %8833 = vst [vmem:[#allocation82_spill] sm:$0xff] %v6318_v17  ;;  %v1691_v31 = vmul.f32 %v6345_v11, %v6189_v27  ;;  %v6360_v43 = vpop.eup %4641  ;;  %vm1696_vm7 = vweird.f32 %v6345_v11  ;;  %vm6406_vm9 = vmor %vm1680_vm8, %vm1681_vm6 }
 0x459   : > { %8837 = vst [vmem:[#allocation86_spill] sm:$0xff] %v6371_v41  ;;  %vm1351_vm13 = vweird.f32 %v6360_v43 }
 0x45a   : > { %v1398_v62 = vsel %vm1397_vm10, %v4634_v21, %v1394_v36  ;;  %v6326_v21 = vpop.xlane.xlu1 %1172  ;;  %v1338_v15 = vsel %vm1337_vm0, %v6291_v53, %v1334_v58  ;;  %vm1695_vm10 = vweird.f32 %v6189_v27  ;;  %vm1350_vm0 = vweird.f32 %v6234_v19 }
 0x45b   : > { %3754 = vrot.lane.b32.xlu2 %v5716_v34, %s5058_s22  ;;  %v1403_v4 = vsel %vm1400_vm12, %v1402_v25, %v1398_v62  ;;  %v1341_v62 = vand.u32 2147483648, %v6142_v13  ;;  %v6324_v25 = vpop.xlane.xlu0 %1157  ;;  %vm6418_vm12 = vmor %vm1695_vm10, %vm1696_vm7 }
 0x45c   : > { %v6313_v47 = vmul.f32 %v5913_v50, %v1403_v4  ;;  %v1319_v50 = vadd.f32 %v6293_v22, %v1318_v24  ;;  %4643 = vrcp.f32 %v6324_v25  ;;  %v1371_v38 = vand.u32 2147483648, %v6324_v25  ;;  %vm6440_vm2 = vmor %vm1350_vm0, %vm1351_vm13 }
 0x45d   : > { %v1342_v13 = vor.u32 1.1754944e-38, %v1341_v62  ;;  %v1692_v62 = vsub.f32 1.0, %v1691_v31  ;;  %v1701_v31 = vand.u32 2147483648, %v6189_v27 }
 0x45e   : > { %8832 = vst [vmem:[#allocation81_spill] sm:$0xff] %v6313_v47  ;;  %v1710_v1 = vpack.c.bf16 %v6313_v47, %v6318_v17  ;;  %v1323_v24 = vsel %vm1322_vm3, %v6293_v22, %v1319_v50  ;;  %v1676_v22 = vmul.f32 %v6342_v32, %v6273_v35  ;;  %v1346_v50 = vmul.f32 %v6360_v43, %v6234_v19 }
 0x45f   : > { %v1343_v57 = vsel %vm1340_vm4, %v1342_v13, %v1338_v15  ;;  %v1328_v36 = vsel %vm1325_vm5, %v1327_v26, %v1323_v24  ;;  %v1693_v14 = vmul.f32 %v6345_v11, %v1692_v62  ;;  %vm1365_vm3 = vweird.f32 %v6324_v25 }
 0x460   : > { %v6352_v37 = vmul.f32 %v5900_v44, %v1343_v57  ;;  %v6363_v0 = vmul.f32 %v5828_v7, %v1328_v36  ;;  %v1677_v44 = vsub.f32 1.0, %v1676_v22  ;;  %v1347_v15 = vsub.f32 1.0, %v1346_v50 }
 0x461   : > { %v1198_v57 = vsel %vm1128_vm1, %v6306_v3, 0.0  ;;  %v1684_v36 = vand.u32 2147483647, %v6273_v35  ;;  %v1686_v22 = vand.u32 2147483648, %v6273_v35  ;;  %v1699_v35 = vand.u32 2147483647, %v6189_v27 }
 0x462   : > { %8835 = vst [vmem:[#allocation84_spill] sm:$0xff] %v6352_v37  ;;  %v6358_v46 = vpop.xlane.xlu1 %1181  ;;  %v6365_v4 = vpop.eup %4643  ;;  %v1708_v58 = vpack.c.bf16 %v6352_v37, %v6363_v0  ;;  %v1678_v61 = vmul.f32 %v6342_v32, %v1677_v44  ;;  %v1694_v44 = vadd.f32 %v6345_v11, %v1693_v14  ;;  %v1348_v62 = vmul.f32 %v6360_v43, %v1347_v15 }
 0x463   : > { %1753 = vrot.lane.b32.xlu2 %v1710_v1, %s5056_s12  ;;  %v6349_v53 = vpop.permute.xlu0 %3732  ;;  %8836 = vst [vmem:[#allocation85_spill] sm:$0xff] %v6363_v0  ;;  %4645 = vrcp.f32 %v6358_v46  ;;  %v1361_v1 = vmul.f32 %v6365_v4, %v6324_v25  ;;  %vm6414_vm11 = vcmp.eq.f32.partialorder %v1684_v36, 8.507059e+37  ;;  %vm1366_vm14 = vweird.f32 %v6365_v4  ;;  %v8914_v0 = vld [vmem:[#allocation14_spill] sm:$0xff] }
 0x464   : > { %8834 = vst [vmem:[#allocation83_spill] sm:$0xff] %v6349_v53  ;;  %v1349_v16 = vadd.f32 %v6360_v43, %v1348_v62  ;;  %v1698_v36 = vsel %vm6418_vm12, %v6345_v11, %v1694_v44  ;;  %vm1700_vm15 = vcmp.eq.f32.partialorder %v1699_v35, 8.507059e+37  ;;  %v1354_v62 = vand.u32 2147483647, %v6234_v19  ;;  %vm6448_vm4 = vmor %vm1365_vm3, %vm1366_vm14 }
 0x465   : > { %v1362_v24 = vsub.f32 1.0, %v1361_v1  ;;  %v1369_v11 = vand.u32 2147483647, %v6324_v25  ;;  %v1372_v2 = vor.u32 1.1754944e-38, %v1371_v38  ;;  %vm1485_vm8 = vweird.f32 %v6358_v46 }
 0x466   : > { %v1353_v25 = vsel %vm6440_vm2, %v6360_v43, %v1349_v16  ;;  %vm1355_vm5 = vcmp.eq.f32.partialorder %v1354_v62, 8.507059e+37 }
 0x467   : > { %3738 = vrot.lane.b32.xlu0 %v5568_v29, %s5058_s22  ;;  %v1363_v3 = vmul.f32 %v6365_v4, %v1362_v24  ;;  %vm1370_vm6 = vcmp.eq.f32.partialorder %v1369_v11, 8.507059e+37 }
 0x469   : > { %v6382_v26 = vpop.eup %4645  ;;  %v1364_v53 = vadd.f32 %v6365_v4, %v1363_v3 }
 0x46a   : > { %v1481_v1 = vmul.f32 %v6382_v26, %v6358_v46  ;;  %vm1486_vm7 = vweird.f32 %v6382_v26 }
 0x46f   : > { %1749 = vrot.lane.b32.xlu0 %v1708_v58, %s5056_s12  ;;  %v1679_v58 = vadd.f32 %v6342_v32, %v1678_v61 }
 0x470   : > { %v6377_v7 = vpop.xlane.xlu0 %1166 }
 0x471   : > { %4647 = vrcp.f32 %v6377_v7  ;;  %v1683_v27 = vsel %vm6406_vm9, %v6342_v32, %v1679_v58  ;;  %vm6493_vm9 = vmor %vm1485_vm8, %vm1486_vm7  ;;  %vm1410_vm0 = vweird.f32 %v6377_v7 }
 0x472   : > { %v1744_v13 = vpop.permute.xlu1 %1743 }
 0x473   : > { %4407 = vmatmul.msk.bf16.vlgmr.msra.gmra.mxu1 %vm1128_vm1, %v1744_v13  ;;  %v1687_v13 = vor.u32 1.1754944e-38, %v1686_v22  ;;  %v1356_v22 = vand.u32 2147483648, %v6234_v19 }
 0x475   : > { %1199 = vadd.xlane.f32.xlu1 %v1198_v57  ;;  %v1702_v57 = vor.u32 1.1754944e-38, %v1701_v31  ;;  %v1482_v31 = vsub.f32 1.0, %v1481_v1  ;;  %v1688_v35 = vsel %vm6414_vm11, %v1687_v13, %v1683_v27  ;;  %v1357_v24 = vor.u32 1.1754944e-38, %v1356_v22 }
 0x476   : > { %v6395_v50 = vpop.xlane.xlu2 %1169  ;;  %v1489_v22 = vand.u32 2147483647, %v6358_v46  ;;  %v6477_v32 = vmul.f32 %v5890_v63, %v1688_v35  ;;  %v1416_v35 = vand.u32 2147483648, %v6377_v7 }
 0x477   : > { %3744 = vrot.lane.b32.xlu0 %v5623_v39, %s5058_s22  ;;  %4649 = vrcp.f32 %v6395_v50  ;;  %v6422_v41 = vpop.eup %4647  ;;  %v1703_v44 = vsel %vm1700_vm15, %v1702_v57, %v1698_v36  ;;  %v1483_v18 = vmul.f32 %v6382_v26, %v1482_v31  ;;  %v8848_v57 = vld [vmem:[#allocation36_spill] sm:$0xff]  ;;  %v1368_v36 = vsel %vm6448_vm4, %v6365_v4, %v1364_v53 }
 0x478   : > { %v6412_v14 = vpop.xlane.xlu0 %1175  ;;  %v1406_v58 = vmul.f32 %v6422_v41, %v6377_v7  ;;  %v6471_v27 = vmul.f32 %v5915_v59, %v1703_v44  ;;  %v1358_v43 = vsel %vm1355_vm5, %v1357_v24, %v1353_v25  ;;  %v1491_v31 = vand.u32 2147483648, %v6358_v46  ;;  %8850 = vst [vmem:[#allocation87_spill] sm:$0xff] %v6477_v32 }
 0x479   : > { %v1373_v53 = vsel %vm1370_vm6, %v1372_v2, %v1368_v36  ;;  %v1484_v38 = vadd.f32 %v6382_v26, %v1483_v18  ;;  %v6485_v62 = vmul.f32 %v5898_v49, %v1358_v43  ;;  %vm6497_vm10 = vcmp.eq.f32.partialorder %v1489_v22, 8.507059e+37 }
 0x47a   : > { %8849 = vst [vmem:[#allocation36_spill] sm:$0xff] %v6471_v27  ;;  %v1407_v16 = vsub.f32 1.0, %v1406_v58  ;;  %v1720_v4 = vpack.c.bf16 %v6471_v27, %v6477_v32  ;;  %v6491_v2 = vmul.f32 %v5907_v10, %v1373_v53  ;;  %v1492_v49 = vor.u32 1.1754944e-38, %v1491_v31  ;;  %v8863_v58 = vld [vmem:[#allocation24_spill] sm:$0xff] }
 0x47b   : > { %8851 = vst [vmem:[#allocation88_spill] sm:$0xff] %v6485_v62  ;;  %v1431_v25 = vand.u32 2147483648, %v6395_v50  ;;  %vm1411_vm12 = vweird.f32 %v6422_v41  ;;  %vm1425_vm13 = vweird.f32 %v6395_v50 }
 0x47c   : > { %v1408_v63 = vmul.f32 %v6422_v41, %v1407_v16  ;;  %8852 = vst [vmem:[#allocation89_spill] sm:$0xff] %v6491_v2  ;;  %v1429_v16 = vand.u32 2147483647, %v6395_v50  ;;  %vm6537_vm2 = vmor %vm1410_vm0, %vm1411_vm12 }
 0x47d   : > { %v6438_v61 = vpop.eup %4649  ;;  %v1432_v18 = vor.u32 1.1754944e-38, %v1431_v25 }
 0x47e   : > { %v1421_v19 = vmul.f32 %v6438_v61, %v6395_v50  ;;  %v6454_v1 = vpop.xlane.xlu2 %1178  ;;  %vm1426_vm11 = vweird.f32 %v6438_v61  ;;  %vm1430_vm4 = vcmp.eq.f32.partialorder %v1429_v16, 8.507059e+37  ;;  %v8864_v16 = vld [vmem:[#allocation38_spill] sm:$0xff] }
 0x47f   : > { %3750 = vrot.lane.b32.xlu0 %v8848_v57, %s5058_s22  ;;  %4651 = vrcp.f32 %v6454_v1  ;;  %vm6522_vm14 = vmor %vm1425_vm13, %vm1426_vm11  ;;  %v1476_v22 = vand.u32 2147483648, %v6454_v1  ;;  %vm1470_vm3 = vweird.f32 %v6454_v1 }
 0x480   : > { %v1422_v15 = vsub.f32 1.0, %v1421_v19  ;;  %v6468_v13 = vpop.xlane.xlu0 %1184  ;;  %v1488_v19 = vsel %vm6493_vm9, %v6382_v26, %v1484_v38  ;;  %v1414_v38 = vand.u32 2147483647, %v6377_v7 }
 0x481   : > { %4653 = vrcp.f32 %v6468_v13  ;;  %v1477_v25 = vor.u32 1.1754944e-38, %v1476_v22 }
 0x482   : > { %v1423_v59 = vmul.f32 %v6438_v61, %v1422_v15  ;;  %4655 = vrcp.f32 %v6326_v21  ;;  %v1409_v15 = vadd.f32 %v6422_v41, %v1408_v63  ;;  %vm1415_vm6 = vcmp.eq.f32.partialorder %v1414_v38, 8.507059e+37 }
 0x483   : > { %4657 = vrcp.f32 %v6412_v14 }
 0x484   : > { %v1424_v10 = vadd.f32 %v6438_v61, %v1423_v59  ;;  %v1474_v59 = vand.u32 2147483647, %v6454_v1 }
 0x485   : > { %v4652_v11 = vpop.eup %4651 }
 0x486   : > { %v1466_v44 = vmul.f32 %v4652_v11, %v6454_v1  ;;  %v6503_v3 = vpop.xlane.xlu2 %1187  ;;  %vm1471_vm15 = vweird.f32 %v4652_v11  ;;  %v1428_v50 = vsel %vm6522_vm14, %v6438_v61, %v1424_v10  ;;  %v1413_v10 = vsel %vm6537_vm2, %v6422_v41, %v1409_v15 }
 0x487   : > { %v6505_v46 = vpop.eup %4653  ;;  %1773 = vrot.lane.b32.xlu0 %v1720_v4, %s5056_s12  ;;  %4659 = vrcp.f32 %v6503_v3  ;;  %vm6545_vm5 = vmor %vm1470_vm3, %vm1471_vm15  ;;  %vm1475_vm7 = vcmp.eq.f32.partialorder %v1474_v59, 8.507059e+37  ;;  %v1506_v59 = vand.u32 2147483648, %v6468_v13  ;;  %vm1515_vm12 = vweird.f32 %v6503_v3 }
 0x488   : > { %v1467_v24 = vsub.f32 1.0, %v1466_v44  ;;  %v1496_v36 = vmul.f32 %v6505_v46, %v6468_v13  ;;  %v6527_v53 = vpop.eup %4655  ;;  %vm1501_vm8 = vweird.f32 %v6505_v46  ;;  %vm1455_vm3 = vweird.f32 %v6412_v14 }
 0x489   : > { %v6535_v4 = vpop.eup %4657  ;;  %vm1441_vm2 = vweird.f32 %v6527_v53 }
 0x48a   : > { %v1468_v26 = vmul.f32 %v4652_v11, %v1467_v24  ;;  %v1497_v31 = vsub.f32 1.0, %v1496_v36  ;;  %v1493_v24 = vsel %vm6497_vm10, %v1492_v49, %v1488_v19  ;;  %v1417_v36 = vor.u32 1.1754944e-38, %v1416_v35 }
 0x48b   : > { %v1433_v19 = vsel %vm1430_vm4, %v1432_v18, %v1428_v50  ;;  %v1451_v35 = vmul.f32 %v6535_v4, %v6412_v14  ;;  %v6563_v41 = vmul.f32 %v5955_v23, %v1493_v24  ;;  %v1519_v23 = vand.u32 2147483647, %v6503_v3 }
 0x48c   : > { %v1469_v44 = vadd.f32 %v4652_v11, %v1468_v26  ;;  %v1498_v61 = vmul.f32 %v6505_v46, %v1497_v31  ;;  %v1521_v26 = vand.u32 2147483648, %v6503_v3  ;;  %v1418_v31 = vsel %vm1415_vm6, %v1417_v36, %v1413_v10 }
 0x48d   : > { %v4660_v7 = vpop.eup %4659  ;;  %8865 = vst [vmem:[#allocation24_spill] sm:$0xff] %v6563_v41  ;;  %v6572_v38 = vmul.f32 %v5939_v30, %v1433_v19  ;;  %vm1500_vm10 = vweird.f32 %v6468_v13  ;;  %v1504_v18 = vand.u32 2147483647, %v6468_v13  ;;  %v1436_v30 = vmul.f32 %v6527_v53, %v6326_v21 }
 0x48e   : > { %v1511_v1 = vmul.f32 %v4660_v7, %v6503_v3  ;;  %3746 = vrot.lane.b32.xlu1 %v8863_v58, %s5058_s22  ;;  %v1473_v49 = vsel %vm6545_vm5, %v4652_v11, %v1469_v44  ;;  %v1499_v63 = vadd.f32 %v6505_v46, %v1498_v61  ;;  %vm1516_vm9 = vweird.f32 %v4660_v7  ;;  %vm6587_vm11 = vmor %vm1500_vm10, %vm1501_vm8 }
 0x48f   : > { %3756 = vrot.lane.b32.xlu0 %v8864_v16, %s5058_s22  ;;  %v1478_v22 = vsel %vm1475_vm7, %v1477_v25, %v1473_v49  ;;  %8867 = vst [vmem:[#allocation90_spill] sm:$0xff] %v6572_v38  ;;  %v1709_v13 = vpack.c.bf16 %v6491_v2, %v6485_v62  ;;  %vm1517_vm13 = vmor %vm1515_vm12, %vm1516_vm9  ;;  %v1522_v61 = vor.u32 1.1754944e-38, %v1521_v26  ;;  %v1452_v25 = vsub.f32 1.0, %v1451_v35 }
 0x490   : > { %v1512_v15 = vsub.f32 1.0, %v1511_v1  ;;  %v6569_v11 = vmul.f32 %v5943_v52, %v1478_v22  ;;  %v6583_v52 = vmul.f32 %v5921_v8, %v1418_v31  ;;  %v1503_v10 = vsel %vm6587_vm11, %v6505_v46, %v1499_v63 }
 0x491   : > { %v1507_v1 = vor.u32 1.1754944e-38, %v1506_v59  ;;  %vm1520_vm14 = vcmp.eq.f32.partialorder %v1519_v23, 8.507059e+37  ;;  %vm1505_vm15 = vcmp.eq.f32.partialorder %v1504_v18, 8.507059e+37  ;;  %v1437_v19 = vsub.f32 1.0, %v1436_v30 }
 0x492   : > { %8866 = vst [vmem:[#allocation38_spill] sm:$0xff] %v6569_v11  ;;  %v1513_v50 = vmul.f32 %v4660_v7, %v1512_v15  ;;  %v1713_v24 = vpack.c.bf16 %v6563_v41, %v6569_v11  ;;  %v1711_v8 = vpack.c.bf16 %v6572_v38, %v6583_v52  ;;  %v1453_v22 = vmul.f32 %v6535_v4, %v1452_v25  ;;  %v8902_v41 = vld [vmem:[#allocation10_spill] sm:$0xff] }
 0x493   : > { %v6578_v44 = vpop.permute.xlu0 %1767  ;;  %8868 = vst [vmem:[#allocation91_spill] sm:$0xff] %v6583_v52  ;;  %v1508_v15 = vsel %vm1505_vm15, %v1507_v1, %v1503_v10  ;;  %v1438_v35 = vmul.f32 %v6527_v53, %v1437_v19  ;;  %vm1456_vm0 = vweird.f32 %v6535_v4  ;;  %v1459_v23 = vand.u32 2147483647, %v6412_v14 }
 0x494   : > { %v1514_v43 = vadd.f32 %v4660_v7, %v1513_v50  ;;  %1759 = vrot.lane.b32.xlu2 %v1713_v24, %s5056_s12  ;;  %v6607_v46 = vmul.f32 %v5959_v45, %v1508_v15  ;;  %v1454_v59 = vadd.f32 %v6535_v4, %v1453_v22  ;;  %v1461_v50 = vand.u32 2147483648, %v6412_v14  ;;  %vm1457_vm4 = vmor %vm1455_vm3, %vm1456_vm0 }
 0x495   : > { %v1439_v45 = vadd.f32 %v6527_v53, %v1438_v35  ;;  %v1446_v18 = vand.u32 2147483648, %v6326_v21  ;;  %vm1440_vm5 = vweird.f32 %v6326_v21  ;;  %v1444_v24 = vand.u32 2147483647, %v6326_v21 }
 0x496   : > { %1751 = vrot.lane.b32.xlu1 %v1709_v13, %s5056_s12  ;;  %v1518_v3 = vsel %vm1517_vm13, %v4660_v7, %v1514_v43  ;;  %8872 = vst [vmem:[#allocation93_spill] sm:$0xff] %v6607_v46  ;;  %v6611_v7 = vpop.xlane.xlu2 %1196  ;;  %v1458_v30 = vsel %vm1457_vm4, %v6535_v4, %v1454_v59  ;;  %vm1442_vm6 = vmor %vm1440_vm5, %vm1441_vm2  ;;  %v1462_v36 = vor.u32 1.1754944e-38, %v1461_v50  ;;  %vm1460_vm7 = vcmp.eq.f32.partialorder %v1459_v23, 8.507059e+37 }
 0x497   : > { %1755 = vrot.lane.b32.xlu0 %v1711_v8, %s5056_s12  ;;  %v1523_v49 = vsel %vm1520_vm14, %v1522_v61, %v1518_v3  ;;  %v1443_v43 = vsel %vm1442_vm6, %v6527_v53, %v1439_v45  ;;  %v1447_v13 = vor.u32 1.1754944e-38, %v1446_v18  ;;  %vm1445_vm8 = vcmp.eq.f32.partialorder %v1444_v24, 8.507059e+37  ;;  %v8874_v8 = vld [vmem:[#allocation41_spill] sm:$0xff] }
 0x498   : > { %v6603_v26 = vmul.f32 %v5964_v12, %v1523_v49  ;;  %v8873_v12 = vld [vmem:[#allocation26_spill] sm:$0xff]  ;;  %v1463_v61 = vsel %vm1460_vm7, %v1462_v36, %v1458_v30  ;;  %vm1560_vm3 = vweird.f32 %v6611_v7 }
 0x499   : > { %v1448_v10 = vsel %vm1445_vm8, %v1447_v13, %v1443_v43  ;;  %v6633_v25 = vmul.f32 %v5934_v48, %v1463_v61 }
 0x49a   : > { %8871 = vst [vmem:[#allocation92_spill] sm:$0xff] %v6603_v26  ;;  %v1714_v63 = vpack.c.bf16 %v6603_v26, %v6607_v46  ;;  %v6636_v21 = vmul.f32 %v5926_v55, %v1448_v10 }
 0x49b   : > { %v1746_v31 = vpop.permute.xlu0 %1745  ;;  %8875 = vst [vmem:[#allocation26_spill] sm:$0xff] %v6633_v25 }
 0x49c   : > { %4408 = vmatmul.msk.bf16.gmra.mxu1 %vm1128_vm1, %v1746_v31  ;;  %8876 = vst [vmem:[#allocation41_spill] sm:$0xff] %v6636_v21  ;;  %v1712_v4 = vpack.c.bf16 %v6633_v25, %v6636_v21  ;;  %v8911_v21 = vld [vmem:[#allocation13_spill] sm:$0xff] }
 0x49d   : > { %v1191_v53 = vpop.xlane.xlu1 %1190 }
 0x49e   : > { %3752 = vrot.lane.b32.xlu1 %v8873_v12, %s5058_s22  ;;  %v1748_v14 = vpop.permute.xlu2 %1747  ;;  %4661 = vrcp.f32 %v1191_v53  ;;  %v1536_v50 = vand.u32 2147483648, %v1191_v53  ;;  %vm1530_vm10 = vweird.f32 %v1191_v53  ;;  %v1534_v45 = vand.u32 2147483647, %v1191_v53 }
 0x49f   : > { %1761 = vrot.lane.b32.xlu0 %v1714_v63, %s5056_s12 }
 0x4a0   : > { %v1537_v43 = vor.u32 1.1754944e-38, %v1536_v50  ;;  %vm1535_vm13 = vcmp.eq.f32.partialorder %v1534_v45, 8.507059e+37  ;;  %v6669_v45 = vld [vmem:[%s8579_s5] ss:$0 sm:$0xff] }
 0x4a4   : > { %v4662_v48 = vpop.eup %4661 }
 0x4a5   : > { %v1526_v19 = vmul.f32 %v4662_v48, %v1191_v53  ;;  %vm1531_vm9 = vweird.f32 %v4662_v48  ;;  %v8880_v53 = vld [vmem:[#allocation62_spill] sm:$0xff] }
 0x4a6   : > { %3758 = vrot.lane.b32.xlu1 %v8874_v8, %s5058_s22  ;;  %v6642_v1 = vpop.permute.xlu2 %3736  ;;  %vm1532_vm11 = vmor %vm1530_vm10, %vm1531_vm9  ;;  %vm3980_vm10 = vcmask 523264  }
 0x4a7   : > { %8877 = vst [vmem:[#allocation94_spill] sm:$0xff] %v6642_v1  ;;  %v1527_v15 = vsub.f32 1.0, %v1526_v19 }
 0x4a9   : > { %v1528_v31 = vmul.f32 %v4662_v48, %v1527_v15 }
 0x4ab   : > { %v1529_v63 = vadd.f32 %v4662_v48, %v1528_v31 }
 0x4ac   : > { %4409 = vmatmul.msk.bf16.gmra.mxu1 %vm1128_vm1, %v1748_v14 }
 0x4ad   : > { %v1533_v36 = vsel %vm1532_vm11, %v4662_v48, %v1529_v63  ;;  %vm4013_vm11 = vcmask 785408  }
 0x4ae   : > { %1757 = vrot.lane.b32.xlu1 %v1712_v4, %s5056_s12  ;;  %v6645_v49 = vpop.permute.xlu2 %3742  ;;  %v1538_v14 = vsel %vm1535_vm13, %v1537_v43, %v1533_v36  ;;  %v1566_v36 = vand.u32 2147483648, %v6611_v7 }
 0x4af   : > { %8878 = vst [vmem:[#allocation95_spill] sm:$0xff] %v6645_v49  ;;  %v8886_v49 = vld [vmem:[#allocation63_spill] sm:$0xff] }
 0x4b5   : > { %v1770_v3 = vpop.permute.xlu1 %1769 }
 0x4b6   : > { %4420 = vmatmul.msk.bf16.vlgmr.msrb.gmra.mxu3 %vm1128_vm1, %v1770_v3  ;;  %v1772_v55 = vpop.permute.xlu2 %1771  ;;  %v6649_v3 = vmul.f32 %v5975_v60, %v1538_v14 }
 0x4b8   : > { %8879 = vst [vmem:[#allocation96_spill] sm:$0xff] %v6649_v3 }
 0x4bd   : > { %v6660_v15 = vpop.permute.xlu1 %3740 }
 0x4be   : > { %8883 = vst [vmem:[#allocation98_spill] sm:$0xff] %v6660_v15 }
 0x4c6   : > { %v1194_v22 = vpop.xlane.xlu0 %1193  ;;  %4421 = vmatmul.msk.bf16.gmra.mxu3 %vm1128_vm1, %v1772_v55 }
 0x4c7   : > { %4663 = vrcp.f32 %v1194_v22  ;;  %v1551_v18 = vand.u32 2147483648, %v1194_v22  ;;  %v1549_v30 = vand.u32 2147483647, %v1194_v22  ;;  %vm1545_vm14 = vweird.f32 %v1194_v22 }
 0x4c8   : > { %4665 = vrcp.f32 %v6611_v7 }
 0x4c9   : > { %v1552_v61 = vor.u32 1.1754944e-38, %v1551_v18  ;;  %vm1550_vm0 = vcmp.eq.f32.partialorder %v1549_v30, 8.507059e+37 }
 0x4cd   : > { %v4664_v35 = vpop.eup %4663 }
 0x4ce   : > { %v1541_v59 = vmul.f32 %v4664_v35, %v1194_v22  ;;  %vm1546_vm12 = vweird.f32 %v4664_v35  ;;  %v4666_v22 = vpop.eup %4665 }
 0x4cf   : > { %vm1547_vm15 = vmor %vm1545_vm14, %vm1546_vm12  ;;  %v1556_v60 = vmul.f32 %v4666_v22, %v6611_v7  ;;  %vm1561_vm2 = vweird.f32 %v4666_v22  ;;  %vm4078_vm12 = vcmask 392192  }
 0x4d0   : > { %v1542_v23 = vsub.f32 1.0, %v1541_v59  ;;  %vm1562_vm4 = vmor %vm1560_vm3, %vm1561_vm2 }
 0x4d2   : > { %v1543_v24 = vmul.f32 %v4664_v35, %v1542_v23 }
 0x4d4   : > { %v1544_v13 = vadd.f32 %v4664_v35, %v1543_v24 }
 0x4d6   : > { %v1548_v10 = vsel %vm1547_vm15, %v4664_v35, %v1544_v13  ;;  %v1557_v35 = vsub.f32 1.0, %v1556_v60 }
 0x4d7   : > { %v1553_v4 = vsel %vm1550_vm0, %v1552_v61, %v1548_v10  ;;  %v1564_v61 = vand.u32 2147483647, %v6611_v7 }
 0x4d8   : > { %v6652_v19 = vmul.f32 %v8880_v53, %v1553_v4  ;;  %v1558_v50 = vmul.f32 %v4666_v22, %v1557_v35 }
 0x4d9   : > { %v6654_v55 = vpop.permute.xlu0 %3738  ;;  %vm1565_vm6 = vcmp.eq.f32.partialorder %v1564_v61, 8.507059e+37 }
 0x4da   : > { %8881 = vst [vmem:[#allocation62_spill] sm:$0xff] %v6652_v19  ;;  %v1715_v48 = vpack.c.bf16 %v6652_v19, %v6649_v3  ;;  %v1559_v18 = vadd.f32 %v4666_v22, %v1558_v50 }
 0x4db   : > { %8882 = vst [vmem:[#allocation97_spill] sm:$0xff] %v6654_v55 }
 0x4dc   : > { %1763 = vrot.lane.b32.xlu1 %v1715_v48, %s5056_s12  ;;  %v1563_v48 = vsel %vm1562_vm4, %v4666_v22, %v1559_v18 }
 0x4e1   : > { %v1750_v31 = vpop.permute.xlu0 %1749 }
 0x4e2   : > { %4410 = vmatmul.msk.bf16.gmra.mxu1 %vm1128_vm1, %v1750_v31  ;;  %v1567_v31 = vor.u32 1.1754944e-38, %v1566_v36  ;;  %v6690_v36 = vpop.permute.xlu2 %3748 }
 0x4e3   : > { %8891 = vst [vmem:[#allocation102_spill] sm:$0xff] %v6690_v36 }
 0x4e4   : > { %v1568_v50 = vsel %vm1565_vm6, %v1567_v31, %v1563_v48 }
 0x4e5   : > { %v6680_v15 = vmul.f32 %v8886_v49, %v1568_v50 }
 0x4e7   : > { %8887 = vst [vmem:[#allocation63_spill] sm:$0xff] %v6680_v15 }
 0x4e8   : > { %v1200_v63 = vpop.xlane.xlu1 %1199 }
 0x4e9   : > { %4667 = vrcp.f32 %v1200_v63  ;;  %v6664_v59 = vpop.permute.xlu0 %3744  ;;  %v1581_v10 = vand.u32 2147483648, %v1200_v63  ;;  %v1579_v53 = vand.u32 2147483647, %v1200_v63  ;;  %vm1575_vm7 = vweird.f32 %v1200_v63 }
 0x4ea   : > { %8884 = vst [vmem:[#allocation99_spill] sm:$0xff] %v6664_v59  ;;  %v6695_v49 = vpop.permute.xlu2 %3754 }
 0x4eb   : > { %v1582_v35 = vor.u32 1.1754944e-38, %v1581_v10  ;;  %vm1580_vm9 = vcmp.eq.f32.partialorder %v1579_v53, 8.507059e+37  ;;  %8892 = vst [vmem:[#allocation103_spill] sm:$0xff] %v6695_v49  ;;  %v8893_v10 = vld [vmem:[#allocation5_spill] sm:$0xff] }
 0x4ef   : > { %v4668_v23 = vpop.eup %4667 }
 0x4f0   : > { %v1571_v24 = vmul.f32 %v4668_v23, %v1200_v63  ;;  %v1838_v30 = vpop.f32.mrf.mxu1  ;;  %vm1576_vm5 = vweird.f32 %v4668_v23 }
 0x4f1   : > { %v1839_v43 = vadd.f32 %v6669_v45, %v1838_v30  ;;  %v6673_v13 = vpop.permute.xlu0 %3750  ;;  %vm1577_vm8 = vmor %vm1575_vm7, %vm1576_vm5 }
 0x4f2   : > { %8885 = vst [vmem:[#allocation100_spill] sm:$0xff] %v6673_v13  ;;  %v1572_v14 = vsub.f32 1.0, %v1571_v24 }
 0x4f3   : > { %3468 = vrot.lane.b32.xlu1 %v1839_v43, %s5059_s13  ;;  %v6700_v53 = vadd.f32 0.25, %v1839_v43 }
 0x4f4   : > { %v1573_v4 = vmul.f32 %v4668_v23, %v1572_v14  ;;  %v8888_v14 = vld [vmem:[#allocation64_spill] sm:$0xff] }
 0x4f5   : > { %v2366_v31 = vand.u32 2147483647, %v6700_v53 }
 0x4f6   : > { %v1574_v60 = vadd.f32 %v4668_v23, %v1573_v4  ;;  %v6698_v4 = vadd.f32 %v1839_v43, %v8893_v10 }
 0x4f8   : > { %v1578_v30 = vsel %vm1577_vm8, %v4668_v23, %v1574_v60  ;;  %v1840_v18 = vpop.f32.mrf.mxu1  ;;  %v6703_v48 = vadd.f32 0.25, %v6698_v4  ;;  %v1754_v60 = vpop.permute.xlu2 %1753 }
 0x4f9   : > { %v1774_v7 = vpop.permute.xlu0 %1773  ;;  %v1583_v24 = vsel %vm1580_vm9, %v1582_v35, %v1578_v30  ;;  %v1841_v23 = vadd.f32 %v6669_v45, %v1840_v18  ;;  %v2398_v30 = vsub.f32 0.0, %v2366_v31 }
 0x4fa   : > { %4422 = vmatmul.msk.bf16.gmra.mxu3 %vm1128_vm1, %v1774_v7  ;;  %v6683_v1 = vmul.f32 %v8888_v14, %v1583_v24  ;;  %v2014_v50 = vand.u32 2147483647, %v6703_v48  ;;  %v8894_v14 = vld [vmem:[#allocation6_spill] sm:$0xff] }
 0x4fb   : > { %v6709_v24 = vadd.f32 0.25, %v1841_v23  ;;  %v2430_v18 = vmul.f32 1.442695, %v2398_v30 }
 0x4fc   : > { %8889 = vst [vmem:[#allocation64_spill] sm:$0xff] %v6683_v1  ;;  %v1716_v22 = vpack.c.bf16 %v6683_v1, %v6680_v15  ;;  %v2046_v43 = vsub.f32 0.0, %v2014_v50  ;;  %v8898_v50 = vld [vmem:[#allocation9_spill] sm:$0xff] }
 0x4fd   : > { %v2367_v10 = vand.u32 2147483647, %v6709_v24  ;;  %4669 = vpow2.f32 %v2430_v18 }
 0x4fe   : > { %1765 = vrot.lane.b32.xlu2 %v1716_v22, %s5056_s12  ;;  %v6712_v22 = vadd.f32 %v1841_v23, %v8894_v14  ;;  %v2078_v31 = vmul.f32 1.442695, %v2046_v43 }
 0x4ff   : > { %v2399_v36 = vsub.f32 0.0, %v2367_v10 }
 0x500   : > { %v6688_v63 = vpop.permute.xlu1 %3746  ;;  %8895 = vst [vmem:[#allocation5_spill] sm:$0xff] %v6712_v22  ;;  %4671 = vpow2.f32 %v2078_v31 }
 0x501   : > { %8890 = vst [vmem:[#allocation101_spill] sm:$0xff] %v6688_v63 }
 0x503   : > { %v4670_v32 = vpop.eup %4669 }
 0x504   : > { %v2494_v27 = vadd.f32 1.0, %v4670_v32  ;;  %v8900_v32 = vld [vmem:[#allocation11_spill] sm:$0xff] }
 0x506   : > { %3470 = vrot.lane.b32.xlu2 %v1841_v23, %s5059_s13 }
 0x508   : > { %v1752_v61 = vpop.permute.xlu1 %1751 }
 0x509   : > { %4411 = vmatmul.msk.bf16.gmra.mxu1 %vm1128_vm1, %v1752_v61  ;;  %v6715_v61 = vpop.permute.xlu0 %3756 }
 0x50a   : > { %8896 = vst [vmem:[#allocation6_spill] sm:$0xff] %v6715_v61  ;;  %v2432_v61 = vmul.f32 1.442695, %v2399_v36 }
 0x50c   : > { %4673 = vpow2.f32 %v2432_v61 }
 0x50d   : > { %4675 = vlog2.f32 %v2494_v27 }
 0x510   : > { %v6723_v14 = vpop.permute.xlu1 %3752 }
 0x511   : > { %8897 = vst [vmem:[#allocation104_spill] sm:$0xff] %v6723_v14  ;;  %v1756_v43 = vpop.permute.xlu0 %1755 }
 0x519   : > { %v1843_v35 = vpop.f32.mrf.mxu1  ;;  %4412 = vmatmul.msk.bf16.gmra.mxu1 %vm1128_vm1, %v1754_v60  ;;  %v6719_v60 = vadd.f32 0.25, %v6712_v22 }
 0x51a   : > { %v1844_v7 = vadd.f32 %v6669_v45, %v1843_v35 }
 0x51b   : > { %v2015_v23 = vand.u32 2147483647, %v6719_v60 }
 0x51c   : > { %3472 = vrot.lane.b32.xlu0 %v1844_v7, %s5059_s13  ;;  %v6725_v63 = vadd.f32 0.25, %v1844_v7  ;;  %v6729_v30 = vadd.f32 %v1844_v7, %v8898_v50  ;;  %v4672_v7 = vpop.eup %4671 }
 0x51d   : > { %v2047_v13 = vsub.f32 0.0, %v2015_v23  ;;  %v6742_v23 = vpop.permute.xlu1 %3758  ;;  %v2142_v59 = vadd.f32 1.0, %v4672_v7 }
 0x51e   : > { %v2368_v18 = vand.u32 2147483647, %v6725_v63  ;;  %8899 = vst [vmem:[#allocation9_spill] sm:$0xff] %v6742_v23 }
 0x51f   : > { %v2080_v50 = vmul.f32 1.442695, %v2047_v13 }
 0x520   : > { %v2400_v31 = vsub.f32 0.0, %v2368_v18 }
 0x521   : > { %v1845_v49 = vpop.f32.mrf.mxu1  ;;  %4677 = vpow2.f32 %v2080_v50 }
 0x522   : > { %v1846_v35 = vadd.f32 %v6669_v45, %v1845_v49  ;;  %v6733_v49 = vadd.f32 0.25, %v6729_v30  ;;  %v2434_v55 = vmul.f32 1.442695, %v2400_v31  ;;  %4679 = vlog2.f32 %v2142_v59 }
 0x524   : > { %3474 = vrot.lane.b32.xlu1 %v1846_v35, %s5059_s13  ;;  %v2016_v36 = vand.u32 2147483647, %v6733_v49  ;;  %4681 = vpow2.f32 %v2434_v55  ;;  %v6745_v61 = vadd.f32 %v1846_v35, %v8900_v32  ;;  %v6747_v13 = vadd.f32 0.25, %v1846_v35 }
 0x525   : > { %v1758_v19 = vpop.permute.xlu1 %1757 }
 0x526   : > { %v2048_v28 = vsub.f32 0.0, %v2016_v36  ;;  %v6750_v23 = vadd.f32 0.25, %v6745_v61  ;;  %v2369_v27 = vand.u32 2147483647, %v6747_v13 }
 0x528   : > { %v2082_v42 = vmul.f32 1.442695, %v2048_v28  ;;  %v2334_v28 = vmax.f32 %v6700_v53, 0.0  ;;  %v2017_v36 = vand.u32 2147483647, %v6750_v23 }
 0x529   : > { %v1848_v10 = vpop.f32.mrf.mxu1  ;;  %4413 = vmatmul.msk.bf16.gmra.mxu1 %vm1128_vm1, %v1756_v43  ;;  %v4674_v43 = vpop.eup %4673 }
 0x52a   : > { %v6737_v14 = vadd.f32 %v6669_v45, %v1848_v10  ;;  %v2495_v10 = vadd.f32 1.0, %v4674_v43  ;;  %v4676_v18 = vpop.eup %4675  ;;  %v2401_v43 = vsub.f32 0.0, %v2369_v27 }
 0x52b   : > { %v4678_v1 = vpop.eup %4677  ;;  %v2527_v59 = vmul.f32 0.6931472, %v4676_v18  ;;  %v2049_v18 = vsub.f32 0.0, %v2017_v36 }
 0x52c   : > { %3476 = vrot.lane.b32.xlu2 %v6737_v14, %s5059_s13  ;;  %4683 = vlog2.f32 %v2495_v10  ;;  %v4680_v7 = vpop.eup %4679  ;;  %v2143_v50 = vadd.f32 1.0, %v4678_v1  ;;  %v2436_v1 = vmul.f32 1.442695, %v2401_v43  ;;  %v1760_v43 = vpop.permute.xlu2 %1759 }
 0x52d   : > { %4685 = vpow2.f32 %v2082_v42  ;;  %v4682_v31 = vpop.eup %4681  ;;  %v2590_v9 = vadd.f32 %v2527_v59, %v2334_v28  ;;  %v2175_v10 = vmul.f32 0.6931472, %v4680_v7 }
 0x52e   : > { %v2496_v32 = vadd.f32 1.0, %v4682_v31  ;;  %4687 = vlog2.f32 %v2143_v50  ;;  %v2084_v31 = vmul.f32 1.442695, %v2049_v18 }
 0x530   : > { %4689 = vlog2.f32 %v2496_v32 }
 0x531   : > { %4691 = vpow2.f32 %v2436_v1 }
 0x532   : > { %v4684_v42 = vpop.eup %4683 }
 0x533   : > { %v4686_v3 = vpop.eup %4685  ;;  %v2529_v15 = vmul.f32 0.6931472, %v4684_v42 }
 0x534   : > { %v2144_v59 = vadd.f32 1.0, %v4686_v3  ;;  %v4688_v50 = vpop.eup %4687 }
 0x535   : > { %v2177_v36 = vmul.f32 0.6931472, %v4688_v50 }
 0x536   : > { %4693 = vlog2.f32 %v2144_v59  ;;  %v4690_v3 = vpop.eup %4689 }
 0x537   : > { %4695 = vpow2.f32 %v2084_v31  ;;  %v2531_v50 = vmul.f32 0.6931472, %v4690_v3  ;;  %v1984_v3 = vmax.f32 %v6733_v49, 0.0 }
 0x539   : > { %4414 = vmatmul.msk.bf16.gmra.mxu1 %vm1128_vm1, %v1758_v19  ;;  %v1903_v55 = vpop.f32.mrf.mxu3  ;;  %v1982_v19 = vmax.f32 %v6703_v48, 0.0  ;;  %v2335_v48 = vmax.f32 %v6709_v24, 0.0  ;;  %v1983_v24 = vmax.f32 %v6719_v60, 0.0  ;;  %v2336_v60 = vmax.f32 %v6725_v63, 0.0  ;;  %v8905_v63 = vld [vmem:[#allocation19_spill] sm:$0xff] }
 0x53a   : > { %v1904_v35 = vadd.f32 %v6669_v45, %v1903_v55  ;;  %v2622_v55 = vmax.f32 %v2590_v9, 0.001 }
 0x53b   : > { %v6759_v53 = vadd.f32 %v2175_v10, %v1982_v19  ;;  %v2591_v9 = vadd.f32 %v2529_v15, %v2335_v48  ;;  %v8903_v15 = vld [vmem:[#allocation28_spill] sm:$0xff]  ;;  %v4692_v19 = vpop.eup %4691  ;;  %v6787_v59 = vadd.f32 %v2177_v36, %v1983_v24  ;;  %v2592_v36 = vadd.f32 %v2531_v50, %v2336_v60 }
 0x53c   : > { %3520 = vrot.lane.b32.xlu0 %v1904_v35, %s5059_s13  ;;  %v6762_v27 = vadd.f32 %v1904_v35, %v8902_v41  ;;  %v6764_v25 = vadd.f32 0.25, %v1904_v35  ;;  %v4694_v48 = vpop.eup %4693  ;;  %v2497_v31 = vadd.f32 1.0, %v4692_v19 }
 0x53d   : > { %8901 = vst [vmem:[#allocation11_spill] sm:$0xff] %v6759_v53  ;;  %v8647_v28 = vmax.f32 %v6759_v53, 0.001  ;;  %v2623_v10 = vmax.f32 %v2591_v9, 0.001  ;;  %v4696_v9 = vpop.eup %4695 }
 0x53e   : > { %v6775_v35 = vadd.f32 0.25, %v6762_v27  ;;  %8904 = vst [vmem:[#allocation28_spill] sm:$0xff] %v6787_v59  ;;  %v2179_v24 = vmul.f32 0.6931472, %v4694_v48  ;;  %4697 = vlog2.f32 %v2497_v31  ;;  %v2624_v26 = vmax.f32 %v2592_v36, 0.001 }
 0x53f   : > { %v2750_v42 = vmul.f32 %v8903_v15, %v8647_v28  ;;  %v1850_v15 = vpop.f32.mrf.mxu1  ;;  %v6810_v48 = vadd.f32 0.25, %v6737_v14 }
 0x540   : > { %v2040_v18 = vand.u32 2147483647, %v6775_v35  ;;  %v2008_v17 = vmax.f32 %v6775_v35, 0.0 }
 0x541   : > { %v1905_v46 = vpop.f32.mrf.mxu3 }
 0x542   : > { %v6767_v7 = vadd.f32 %v6669_v45, %v1905_v46  ;;  %v2392_v46 = vand.u32 2147483647, %v6764_v25 }
 0x544   : > { %3522 = vrot.lane.b32.xlu1 %v6767_v7, %s5059_s13  ;;  %3596 = vrot.lane.b32.xlu0 %v2622_v55, %s5059_s13  ;;  %v2424_v1 = vsub.f32 0.0, %v2392_v46  ;;  %v4698_v50 = vpop.eup %4697  ;;  %v6837_v52 = vadd.f32 %v6767_v7, %v8911_v21  ;;  %v6841_v47 = vadd.f32 0.25, %v6767_v7 }
 0x546   : > { %v2482_v46 = vmul.f32 1.442695, %v2424_v1  ;;  %v8907_v1 = vld [vmem:[#allocation12_spill] sm:$0xff] }
 0x547   : > { %v6806_v49 = vadd.f32 %v6737_v14, %v8907_v1  ;;  %v8908_v14 = vld [vmem:[#allocation25_spill] sm:$0xff] }
 0x548   : > { %4699 = vpow2.f32 %v2482_v46 }
 0x549   : > { %4415 = vmatmul.msk.bf16.gmra.mxu1 %vm1128_vm1, %v1760_v43  ;;  %v1908_v32 = vpop.f32.mrf.mxu3  ;;  %v2072_v43 = vsub.f32 0.0, %v2040_v18  ;;  %v6800_v18 = vadd.f32 %v2179_v24, %v1984_v3  ;;  %v6814_v46 = vadd.f32 0.25, %v6806_v49 }
 0x54a   : > { %v6785_v55 = vadd.f32 %v6669_v45, %v1908_v32  ;;  %v8649_v32 = vmax.f32 %v6787_v59, 0.001 }
 0x54b   : > { %v2130_v28 = vmul.f32 1.442695, %v2072_v43  ;;  %8906 = vst [vmem:[#allocation19_spill] sm:$0xff] %v6800_v18  ;;  %v8650_v31 = vmax.f32 %v6800_v18, 0.001  ;;  %v1762_v43 = vpop.permute.xlu0 %1761 }
 0x54c   : > { %3598 = vrot.lane.b32.xlu1 %v2623_v10, %s5059_s13  ;;  %2814 = vrot.lane.b32.xlu0 %v2750_v42, %s5058_s22  ;;  %v2145_v10 = vadd.f32 1.0, %v4696_v9  ;;  %v1851_v42 = vadd.f32 %v6669_v45, %v1850_v15  ;;  %v2751_v19 = vmul.f32 %v8905_v63, %v8649_v32  ;;  %v2337_v63 = vmax.f32 %v6747_v13, 0.0 }
 0x54d   : > { %3524 = vrot.lane.b32.xlu2 %v6785_v55, %s5059_s13  ;;  %v2752_v3 = vmul.f32 %v8908_v14, %v8650_v31  ;;  %v1985_v13 = vmax.f32 %v6750_v23, 0.0 }
 0x54e   : > { %4701 = vlog2.f32 %v2145_v10  ;;  %v4700_v9 = vpop.eup %4699  ;;  %v6829_v1 = vadd.f32 0.25, %v1851_v42 }
 0x54f   : > { %4703 = vpow2.f32 %v2130_v28  ;;  %v2370_v28 = vand.u32 2147483647, %v6810_v48  ;;  %v2520_v24 = vadd.f32 1.0, %v4700_v9  ;;  %v8909_v9 = vld [vmem:[#allocation15_spill] sm:$0xff] }
 0x550   : > { %v6832_v32 = vadd.f32 %v1851_v42, %v8909_v9 }
 0x551   : > { %v1910_v60 = vpop.f32.mrf.mxu3  ;;  %4705 = vlog2.f32 %v2520_v24  ;;  %v6851_v24 = vadd.f32 0.25, %v6837_v52 }
 0x552   : > { %v6818_v15 = vadd.f32 %v6669_v45, %v1910_v60  ;;  %8910 = vst [vmem:[#allocation12_spill] sm:$0xff] %v6832_v32  ;;  %v6848_v23 = vadd.f32 0.25, %v6832_v32 }
 0x554   : > { %2816 = vrot.lane.b32.xlu1 %v2751_v19, %s5058_s22  ;;  %3478 = vrot.lane.b32.xlu0 %v1851_v42, %s5059_s13  ;;  %v4702_v36 = vpop.eup %4701  ;;  %v2018_v19 = vand.u32 2147483647, %v6814_v46 }
 0x555   : > { %3600 = vrot.lane.b32.xlu2 %v2624_v26, %s5059_s13  ;;  %v2533_v26 = vmul.f32 0.6931472, %v4698_v50  ;;  %v4704_v10 = vpop.eup %4703  ;;  %v2181_v60 = vmul.f32 0.6931472, %v4702_v36 }
 0x556   : > { %v2168_v31 = vadd.f32 1.0, %v4704_v10 }
 0x557   : > { %v2593_v50 = vadd.f32 %v2533_v26, %v2337_v63  ;;  %v2371_v26 = vand.u32 2147483647, %v6829_v1  ;;  %v6845_v36 = vadd.f32 %v2181_v60, %v1985_v13  ;;  %v4706_v10 = vpop.eup %4705  ;;  %v2393_v63 = vand.u32 2147483647, %v6841_v47 }
 0x558   : > { %4707 = vlog2.f32 %v2168_v31  ;;  %v2579_v13 = vmul.f32 0.6931472, %v4706_v10 }
 0x559   : > { %4416 = vmatmul.msk.bf16.gmra.mxu1 %vm1128_vm1, %v1762_v43  ;;  %v2402_v43 = vsub.f32 0.0, %v2370_v28  ;;  %v2625_v42 = vmax.f32 %v2593_v50, 0.001  ;;  %8912 = vst [vmem:[#allocation25_spill] sm:$0xff] %v6845_v36  ;;  %v8661_v9 = vmax.f32 %v6845_v36, 0.001 }
 0x55a   : > { %v2019_v50 = vand.u32 2147483647, %v6848_v23  ;;  %v8926_v36 = vld [vmem:[#allocation20_spill] sm:$0xff] }
 0x55b   : > { %v2438_v28 = vmul.f32 1.442695, %v2402_v43  ;;  %v2041_v43 = vand.u32 2147483647, %v6851_v24 }
 0x55c   : > { %3526 = vrot.lane.b32.xlu0 %v6818_v15, %s5059_s13  ;;  %v2051_v62 = vsub.f32 0.0, %v2019_v50 }
 0x55d   : > { %2818 = vrot.lane.b32.xlu2 %v2752_v3, %s5058_s22  ;;  %v2050_v3 = vsub.f32 0.0, %v2018_v19  ;;  %v2403_v19 = vsub.f32 0.0, %v2371_v26  ;;  %4709 = vpow2.f32 %v2438_v28  ;;  %v2360_v26 = vmax.f32 %v6764_v25, 0.0  ;;  %v8913_v28 = vld [vmem:[#allocation30_spill] sm:$0xff] }
 0x55e   : > { %v4708_v2 = vpop.eup %4707  ;;  %v2753_v38 = vmul.f32 %v8913_v28, %v8661_v9  ;;  %v2073_v10 = vsub.f32 0.0, %v2041_v43  ;;  %v6874_v25 = vadd.f32 0.25, %v6785_v55  ;;  %v2088_v28 = vmul.f32 1.442695, %v2051_v62 }
 0x55f   : > { %v1853_v14 = vpop.f32.mrf.mxu1  ;;  %v2086_v7 = vmul.f32 1.442695, %v2050_v3  ;;  %v2440_v3 = vmul.f32 1.442695, %v2403_v19 }
 0x560   : > { %v1854_v11 = vadd.f32 %v6669_v45, %v1853_v14  ;;  %v1764_v14 = vpop.permute.xlu1 %1763  ;;  %v2132_v51 = vmul.f32 1.442695, %v2073_v10 }
 0x561   : > { %4711 = vpow2.f32 %v2086_v7  ;;  %v2616_v7 = vadd.f32 %v2579_v13, %v2360_v26 }
 0x562   : > { %3480 = vrot.lane.b32.xlu1 %v1854_v11, %s5059_s13  ;;  %4713 = vpow2.f32 %v2440_v3  ;;  %v6895_v3 = vadd.f32 0.25, %v6818_v15 }
 0x563   : > { %v4710_v19 = vpop.eup %4709  ;;  %v2648_v43 = vmax.f32 %v2616_v7, 0.001 }
 0x564   : > { %3602 = vrot.lane.b32.xlu0 %v2625_v42, %s5059_s13  ;;  %v2425_v42 = vsub.f32 0.0, %v2393_v63  ;;  %v2227_v63 = vmul.f32 0.6931472, %v4708_v2  ;;  %v2498_v9 = vadd.f32 1.0, %v4710_v19  ;;  %v2394_v2 = vand.u32 2147483647, %v6874_v25 }
 0x565   : > { %v2395_v19 = vand.u32 2147483647, %v6895_v3 }
 0x566   : > { %v6880_v37 = vadd.f32 %v2227_v63, %v2008_v17 }
 0x567   : > { %v1855_v60 = vpop.f32.mrf.mxu1  ;;  %v4712_v5 = vpop.eup %4711 }
 0x568   : > { %v6859_v31 = vadd.f32 %v6669_v45, %v1855_v60  ;;  %v6870_v60 = vadd.f32 %v6785_v55, %v8914_v0  ;;  %8916 = vst [vmem:[#allocation30_spill] sm:$0xff] %v6880_v37  ;;  %v6886_v55 = vadd.f32 0.25, %v1854_v11  ;;  %v2146_v35 = vadd.f32 1.0, %v4712_v5  ;;  %v4714_v13 = vpop.eup %4713 }
 0x569   : > { %4417 = vmatmul.msk.bf16.gmra.mxu1 %vm1128_vm1, %v1764_v14  ;;  %v2484_v14 = vmul.f32 1.442695, %v2425_v42  ;;  %v8917_v42 = vld [vmem:[#allocation16_spill] sm:$0xff]  ;;  %v2499_v7 = vadd.f32 1.0, %v4714_v13 }
 0x56a   : > { %3482 = vrot.lane.b32.xlu2 %v6859_v31, %s5059_s13  ;;  %8915 = vst [vmem:[#allocation15_spill] sm:$0xff] %v6870_v60  ;;  %v6878_v50 = vadd.f32 0.25, %v6870_v60  ;;  %v6892_v17 = vadd.f32 %v6818_v15, %v8917_v42  ;;  %v2372_v5 = vand.u32 2147483647, %v6886_v55  ;;  %v1766_v15 = vpop.permute.xlu2 %1765 }
 0x56b   : > { %4715 = vpow2.f32 %v2484_v14  ;;  %v8919_v14 = vld [vmem:[#allocation53_spill] sm:$0xff] }
 0x56c   : > { %2820 = vrot.lane.b32.xlu0 %v2753_v38, %s5058_s22  ;;  %v6884_v38 = vadd.f32 %v1854_v11, %v5565_v6  ;;  %4717 = vpow2.f32 %v2088_v28  ;;  %v2042_v62 = vand.u32 2147483647, %v6878_v50  ;;  %8918 = vst [vmem:[#allocation105_spill] sm:$0xff] %v6892_v17  ;;  %v8667_v6 = vmax.f32 %v6880_v37, 0.001 }
 0x56d   : > { %4719 = vlog2.f32 %v2498_v9  ;;  %v2426_v11 = vsub.f32 0.0, %v2394_v2  ;;  %v6903_v63 = vadd.f32 0.25, %v6892_v17  ;;  %v2404_v20 = vsub.f32 0.0, %v2372_v5 }
 0x56e   : > { %4721 = vpow2.f32 %v2132_v51  ;;  %v6899_v26 = vadd.f32 0.25, %v6884_v38  ;;  %v2074_v9 = vsub.f32 0.0, %v2042_v62  ;;  %v2776_v51 = vmul.f32 %v8919_v14, %v8667_v6 }
 0x56f   : > { %4723 = vlog2.f32 %v2146_v35  ;;  %v2043_v0 = vand.u32 2147483647, %v6903_v63  ;;  %v2427_v37 = vsub.f32 0.0, %v2395_v19  ;;  %v6914_v14 = vadd.f32 0.25, %v6859_v31 }
 0x570   : > { %v2020_v2 = vand.u32 2147483647, %v6899_v26  ;;  %4725 = vlog2.f32 %v2499_v7  ;;  %v2134_v54 = vmul.f32 1.442695, %v2074_v9  ;;  %v2442_v5 = vmul.f32 1.442695, %v2404_v20 }
 0x571   : > { %v4716_v10 = vpop.eup %4715  ;;  %v2338_v7 = vmax.f32 %v6810_v48, 0.0  ;;  %v6920_v9 = vadd.f32 %v6859_v31, %v5568_v29  ;;  %v2075_v18 = vsub.f32 0.0, %v2043_v0  ;;  %v2488_v21 = vmul.f32 1.442695, %v2427_v37 }
 0x572   : > { %3648 = vrot.lane.b32.xlu2 %v2648_v43, %s5059_s13  ;;  %v4718_v28 = vpop.eup %4717  ;;  %v2486_v43 = vmul.f32 1.442695, %v2426_v11  ;;  %v2521_v13 = vadd.f32 1.0, %v4716_v10  ;;  %v2052_v6 = vsub.f32 0.0, %v2020_v2 }
 0x573   : > { %v4720_v35 = vpop.eup %4719  ;;  %v2147_v11 = vadd.f32 1.0, %v4718_v28  ;;  %8920 = vst [vmem:[#allocation53_spill] sm:$0xff] %v6920_v9  ;;  %v2373_v28 = vand.u32 2147483647, %v6914_v14  ;;  %v6926_v48 = vadd.f32 0.25, %v6920_v9 }
 0x574   : > { %v4722_v62 = vpop.eup %4721  ;;  %4727 = vpow2.f32 %v2486_v43  ;;  %v2090_v43 = vmul.f32 1.442695, %v2052_v6  ;;  %v2136_v31 = vmul.f32 1.442695, %v2075_v18  ;;  %v2339_v6 = vmax.f32 %v6829_v1, 0.0 }
 0x575   : > { %v4724_v42 = vpop.eup %4723  ;;  %4729 = vlog2.f32 %v2521_v13  ;;  %v2405_v37 = vsub.f32 0.0, %v2373_v28 }
 0x576   : > { %4731 = vpow2.f32 %v2134_v54  ;;  %v2183_v19 = vmul.f32 0.6931472, %v4724_v42  ;;  %v4726_v20 = vpop.eup %4725 }
 0x577   : > { %4733 = vlog2.f32 %v2147_v11  ;;  %v2537_v18 = vmul.f32 0.6931472, %v4726_v20  ;;  %v2444_v1 = vmul.f32 1.442695, %v2405_v37  ;;  %v2009_v37 = vmax.f32 %v6851_v24, 0.0 }
 0x578   : > { %4735 = vpow2.f32 %v2442_v5 }
 0x579   : > { %4418 = vmatmul.msk.bf16.gmra.mxu1 %vm1128_vm1, %v1766_v15  ;;  %v2535_v15 = vmul.f32 0.6931472, %v4720_v35  ;;  %v1987_v35 = vmax.f32 %v6848_v23, 0.0 }
 0x57a   : > { %2866 = vrot.lane.b32.xlu2 %v2776_v51, %s5058_s22  ;;  %v2169_v51 = vadd.f32 1.0, %v4722_v62  ;;  %v4728_v54 = vpop.eup %4727  ;;  %v2361_v62 = vmax.f32 %v6841_v47, 0.0 }
 0x57b   : > { %v2594_v2 = vadd.f32 %v2535_v15, %v2338_v7  ;;  %v4730_v29 = vpop.eup %4729  ;;  %v2021_v7 = vand.u32 2147483647, %v6926_v48 }
 0x57c   : > { %4737 = vlog2.f32 %v2169_v51  ;;  %v4732_v42 = vpop.eup %4731  ;;  %v2522_v51 = vadd.f32 1.0, %v4728_v54  ;;  %v2581_v23 = vmul.f32 0.6931472, %v4730_v29 }
 0x57d   : > { %v1913_v41 = vpop.f32.mrf.mxu3  ;;  %4739 = vpow2.f32 %v2488_v21  ;;  %v2626_v15 = vmax.f32 %v2594_v2, 0.001 }
 0x57e   : > { %v1914_v10 = vadd.f32 %v6669_v45, %v1913_v41  ;;  %v1986_v41 = vmax.f32 %v6814_v46, 0.0  ;;  %4741 = vpow2.f32 %v2090_v43  ;;  %v4734_v46 = vpop.eup %4733  ;;  %v2170_v43 = vadd.f32 1.0, %v4732_v42 }
 0x57f   : > { %v4736_v21 = vpop.eup %4735  ;;  %4743 = vpow2.f32 %v2136_v31  ;;  %v2595_v42 = vadd.f32 %v2537_v18, %v2339_v6  ;;  %v2617_v47 = vadd.f32 %v2581_v23, %v2361_v62 }
 0x580   : > { %3528 = vrot.lane.b32.xlu1 %v1914_v10, %s5059_s13  ;;  %v6928_v0 = vadd.f32 %v2183_v19, %v1986_v41  ;;  %v8922_v41 = vld [vmem:[#allocation17_spill] sm:$0xff]  ;;  %v6945_v2 = vadd.f32 0.25, %v1914_v10  ;;  %4745 = vlog2.f32 %v2522_v51 }
 0x581   : > { %v6943_v20 = vadd.f32 %v1914_v10, %v8922_v41  ;;  %v2053_v10 = vsub.f32 0.0, %v2021_v7  ;;  %4747 = vlog2.f32 %v2170_v43  ;;  %v2627_v18 = vmax.f32 %v2595_v42, 0.001 }
 0x582   : > { %8921 = vst [vmem:[#allocation106_spill] sm:$0xff] %v6928_v0  ;;  %v4738_v28 = vpop.eup %4737  ;;  %4749 = vpow2.f32 %v2444_v1  ;;  %v2396_v6 = vand.u32 2147483647, %v6945_v2  ;;  %v2649_v23 = vmax.f32 %v2617_v47, 0.001 }
 0x583   : > { %8923 = vst [vmem:[#allocation107_spill] sm:$0xff] %v6943_v20  ;;  %v4740_v31 = vpop.eup %4739  ;;  %v2229_v41 = vmul.f32 0.6931472, %v4738_v28  ;;  %v6964_v24 = vadd.f32 0.25, %v6943_v20  ;;  %v2092_v7 = vmul.f32 1.442695, %v2053_v10 }
 0x584   : > { %v2523_v53 = vadd.f32 1.0, %v4740_v31 }
 0x585   : > { %v1915_v13 = vpop.f32.mrf.mxu3  ;;  %v6969_v28 = vadd.f32 %v2229_v41, %v2009_v37  ;;  %v2044_v31 = vand.u32 2147483647, %v6964_v24 }
 0x586   : > { %v6934_v11 = vadd.f32 %v6669_v45, %v1915_v13  ;;  %v1858_v5 = vpop.f32.mrf.mxu1  ;;  %v2500_v13 = vadd.f32 1.0, %v4736_v21 }
 0x587   : > { %v1859_v19 = vadd.f32 %v6669_v45, %v1858_v5  ;;  %v2185_v5 = vmul.f32 0.6931472, %v4734_v46  ;;  %8928 = vst [vmem:[#allocation109_spill] sm:$0xff] %v6969_v28 }
 0x588   : > { %3604 = vrot.lane.b32.xlu1 %v2626_v15, %s5059_s13  ;;  %3530 = vrot.lane.b32.xlu2 %v6934_v11, %s5059_s13  ;;  %v4742_v15 = vpop.eup %4741  ;;  %4751 = vlog2.f32 %v2500_v13  ;;  %v2428_v13 = vsub.f32 0.0, %v2396_v6 }
 0x589   : > { %v6948_v54 = vadd.f32 %v1859_v19, %v5601_v33  ;;  %v6950_v29 = vadd.f32 0.25, %v1859_v19  ;;  %3484 = vrot.lane.b32.xlu0 %v1859_v19, %s5059_s13  ;;  %4419 = vmatmul.msk.bf16.gmra.mxu1 %vm1128_vm1, %v6578_v44  ;;  %v8925_v19 = vmax.f32 %v6928_v0, 0.001  ;;  %v4744_v46 = vpop.eup %4743  ;;  %v6967_v21 = vadd.f32 %v2185_v5, %v1987_v35 }
 0x58a   : > { %v2148_v51 = vadd.f32 1.0, %v4742_v15  ;;  %v4746_v1 = vpop.eup %4745  ;;  %4753 = vlog2.f32 %v2523_v53  ;;  %v2171_v35 = vadd.f32 1.0, %v4744_v46  ;;  %v6979_v5 = vadd.f32 0.25, %v6934_v11 }
 0x58b   : > { %8924 = vst [vmem:[#allocation108_spill] sm:$0xff] %v6948_v54  ;;  %v6957_v33 = vadd.f32 0.25, %v6948_v54  ;;  %v2374_v59 = vand.u32 2147483647, %v6950_v29  ;;  %v2754_v44 = vmul.f32 %v8926_v36, %v8925_v19  ;;  %v4748_v42 = vpop.eup %4747  ;;  %v8678_v47 = vmax.f32 %v6967_v21, 0.001 }
 0x58c   : > { %8927 = vst [vmem:[#allocation20_spill] sm:$0xff] %v6967_v21  ;;  %4755 = vlog2.f32 %v2148_v51  ;;  %v4750_v41 = vpop.eup %4749  ;;  %v2362_v19 = vmax.f32 %v6874_v25, 0.0  ;;  %v2490_v6 = vmul.f32 1.442695, %v2428_v13  ;;  %v2010_v46 = vmax.f32 %v6878_v50, 0.0  ;;  %v8929_v51 = vld [vmem:[#allocation29_spill] sm:$0xff] }
 0x58d   : > { %v2022_v36 = vand.u32 2147483647, %v6957_v33  ;;  %v2406_v43 = vsub.f32 0.0, %v2374_v59  ;;  %4757 = vpow2.f32 %v2092_v7  ;;  %v2755_v7 = vmul.f32 %v8929_v51, %v8678_v47 }
 0x58e   : > { %v1860_v62 = vpop.f32.mrf.mxu1  ;;  %v4752_v37 = vpop.eup %4751  ;;  %4759 = vlog2.f32 %v2171_v35  ;;  %v2231_v59 = vmul.f32 0.6931472, %v4748_v42  ;;  %v2501_v54 = vadd.f32 1.0, %v4750_v41  ;;  %v8932_v25 = vmax.f32 %v6969_v28, 0.001 }
 0x58f   : > { %v2054_v15 = vsub.f32 0.0, %v2022_v36  ;;  %v2446_v53 = vmul.f32 1.442695, %v2406_v43  ;;  %v1861_v10 = vadd.f32 %v6669_v45, %v1860_v62  ;;  %v8930_v36 = vld [vmem:[#allocation18_spill] sm:$0xff]  ;;  %v8933_v62 = vld [vmem:[#allocation57_spill] sm:$0xff]  ;;  %v7000_v42 = vpop.permute.xlu2 %3470  ;;  %vm2978_vm1 = vcmask 261120  }
 0x590   : > { %2822 = vrot.lane.b32.xlu1 %v2754_v44, %s5058_s22  ;;  %3606 = vrot.lane.b32.xlu2 %v2627_v18, %s5059_s13  ;;  %v2076_v44 = vsub.f32 0.0, %v2044_v31  ;;  %v4754_v0 = vpop.eup %4753  ;;  %v6989_v43 = vadd.f32 %v6934_v11, %v8930_v36  ;;  %v2777_v31 = vmul.f32 %v8933_v62, %v8932_v25  ;;  %v2539_v13 = vmul.f32 0.6931472, %v4752_v37  ;;  %8934 = vst [vmem:[#allocation57_spill] sm:$0xff] %v7000_v42 }
 0x591   : > { %3650 = vrot.lane.b32.xlu0 %v2649_v23, %s5059_s13  ;;  %v2583_v23 = vmul.f32 0.6931472, %v4746_v1  ;;  %v2397_v50 = vand.u32 2147483647, %v6979_v5  ;;  %v2094_v20 = vmul.f32 1.442695, %v2054_v15  ;;  %4761 = vpow2.f32 %v2446_v53 }
 0x592   : > { %8931 = vst [vmem:[#allocation29_spill] sm:$0xff] %v6989_v43  ;;  %v4756_v35 = vpop.eup %4755  ;;  %v6995_v21 = vadd.f32 0.25, %v1861_v10  ;;  %v2340_v11 = vmax.f32 %v6886_v55, 0.0  ;;  %v2138_v41 = vmul.f32 1.442695, %v2076_v44  ;;  %4763 = vpow2.f32 %v2490_v6 }
 0x593   : > { %v4758_v1 = vpop.eup %4757  ;;  %v7003_v37 = vadd.f32 %v1861_v10, %v5620_v40  ;;  %v2363_v15 = vmax.f32 %v6895_v3, 0.0  ;;  %v2618_v53 = vadd.f32 %v2583_v23, %v2362_v19  ;;  %v7007_v51 = vadd.f32 %v2231_v59, %v2010_v46 }
 0x594   : > { %v2585_v25 = vmul.f32 0.6931472, %v4754_v0  ;;  %v4760_v62 = vpop.eup %4759  ;;  %4765 = vlog2.f32 %v2501_v54  ;;  %v2596_v55 = vadd.f32 %v2539_v13, %v2340_v11  ;;  %v2187_v47 = vmul.f32 0.6931472, %v4756_v35 }
 0x595   : > { %8935 = vst [vmem:[#allocation110_spill] sm:$0xff] %v7007_v51  ;;  %v2429_v44 = vsub.f32 0.0, %v2397_v50  ;;  %4767 = vpow2.f32 %v2094_v20  ;;  %v2375_v40 = vand.u32 2147483647, %v6995_v21  ;;  %v2011_v6 = vmax.f32 %v6903_v63, 0.0 }
 0x596   : > { %v1863_v18 = vpop.f32.mrf.mxu1  ;;  %v1988_v3 = vmax.f32 %v6899_v26, 0.0  ;;  %4769 = vpow2.f32 %v2138_v41  ;;  %v7016_v59 = vadd.f32 0.25, %v7003_v37  ;;  %v2650_v46 = vmax.f32 %v2618_v53, 0.001 }
 0x597   : > { %v4762_v0 = vpop.eup %4761  ;;  %v1864_v54 = vadd.f32 %v6669_v45, %v1863_v18  ;;  %v8679_v23 = vmax.f32 %v7007_v51, 0.001  ;;  %v2628_v63 = vmax.f32 %v2596_v55, 0.001  ;;  %v2492_v50 = vmul.f32 1.442695, %v2429_v44  ;;  %v7028_v53 = vpop.permute.xlu2 %3476 }
 0x598   : > { %3486 = vrot.lane.b32.xlu1 %v1861_v10, %s5059_s13  ;;  %2824 = vrot.lane.b32.xlu2 %v2755_v7, %s5058_s22  ;;  %v7010_v7 = vadd.f32 0.25, %v6989_v43  ;;  %v2149_v10 = vadd.f32 1.0, %v4758_v1  ;;  %v4764_v20 = vpop.eup %4763  ;;  %v7024_v26 = vadd.f32 %v2187_v47, %v1988_v3  ;;  %v2407_v1 = vsub.f32 0.0, %v2375_v40  ;;  %8937 = vst [vmem:[#allocation112_spill] sm:$0xff] %v7028_v53 }
 0x599   : > { %2868 = vrot.lane.b32.xlu0 %v2777_v31, %s5058_s22  ;;  %v2233_v31 = vmul.f32 0.6931472, %v4760_v62  ;;  %v2619_v18 = vadd.f32 %v2585_v25, %v2363_v15  ;;  %v2502_v41 = vadd.f32 1.0, %v4762_v0  ;;  %v2023_v62 = vand.u32 2147483647, %v7016_v59  ;;  %v8938_v25 = vld [vmem:[#allocation60_spill] sm:$0xff] }
 0x59a   : > { %v2045_v13 = vand.u32 2147483647, %v7010_v7  ;;  %8936 = vst [vmem:[#allocation111_spill] sm:$0xff] %v7024_v26  ;;  %4771 = vlog2.f32 %v2149_v10  ;;  %v4766_v11 = vpop.eup %4765  ;;  %v2524_v44 = vadd.f32 1.0, %v4764_v20  ;;  %v2778_v10 = vmul.f32 %v8938_v25, %v8679_v23  ;;  %v4479_v25 = vld [vmem:[%s8580_s6 + $0x8] sm:$0xff] }
 0x59b   : > { %v4768_v55 = vpop.eup %4767  ;;  %v7043_v0 = vadd.f32 %v2233_v31, %v2011_v6  ;;  %4773 = vpow2.f32 %v2492_v50  ;;  %v2055_v20 = vsub.f32 0.0, %v2023_v62  ;;  %v7054_v6 = vpop.permute.xlu0 %3472  ;;  %v7056_v31 = vadd.f32 0.25, %v1864_v54  ;;  %3033 = vmatpush.bf16.msra.mxu2 %v4479_v25  ;;  %4491 = vmatpush.bf16.msra.mxu3 %v4479_v25 }
 0x59c   : > { %v4770_v40 = vpop.eup %4769  ;;  %v2077_v15 = vsub.f32 0.0, %v2045_v13  ;;  %4775 = vlog2.f32 %v2502_v41  ;;  %v2651_v13 = vmax.f32 %v2619_v18, 0.001  ;;  %v2150_v53 = vadd.f32 1.0, %v4768_v55  ;;  %8940 = vst [vmem:[#allocation113_spill] sm:$0xff] %v7054_v6  ;;  %v8942_v18 = vld [vmem:[#allocation32_spill] sm:$0xff] }
 0x59d   : > { %8939 = vst [vmem:[#allocation60_spill] sm:$0xff] %v7043_v0  ;;  %4777 = vlog2.f32 %v2524_v44  ;;  %v2172_v3 = vadd.f32 1.0, %v4770_v40  ;;  %v2341_v51 = vmax.f32 %v6914_v14, 0.0  ;;  %v8941_v41 = vmax.f32 %v7024_v26, 0.001 }
 0x59e   : > { %v1865_v19 = vpop.f32.mrf.mxu1  ;;  %v2140_v36 = vmul.f32 1.442695, %v2077_v15  ;;  %v7063_v55 = vadd.f32 %v1864_v54, %v5623_v39  ;;  %v8683_v39 = vmax.f32 %v7043_v0, 0.001 }
 0x59f   : > { %v7022_v35 = vadd.f32 %v6669_v45, %v1865_v19  ;;  %v2756_v62 = vmul.f32 %v8942_v18, %v8941_v41 }
 0x5a0   : > { %3652 = vrot.lane.b32.xlu1 %v2650_v46, %s5059_s13  ;;  %3488 = vrot.lane.b32.xlu2 %v1864_v54, %s5059_s13  ;;  %v4772_v23 = vpop.eup %4771  ;;  %v4478_v54 = vld [vmem:[%s8580_s6] sm:$0xff] }
 0x5a1   : > { %v7033_v45 = vadd.f32 %v7022_v35, %v8863_v58  ;;  %v7036_v47 = vadd.f32 0.25, %v7022_v35  ;;  %3608 = vrot.lane.b32.xlu0 %v2628_v63, %s5059_s13  ;;  %v2448_v58 = vmul.f32 1.442695, %v2407_v1  ;;  %v7049_v63 = vpop.permute.xlu1 %3468  ;;  %v2541_v1 = vmul.f32 0.6931472, %v4766_v11  ;;  %v4774_v15 = vpop.eup %4773  ;;  %3034 = vmatpush.bf16.msra.mxu2 %v4478_v54 }
 0x5a2   : > { %v2096_v11 = vmul.f32 1.442695, %v2055_v20  ;;  %v2189_v40 = vmul.f32 0.6931472, %v4772_v23  ;;  %4492 = vmatpush.bf16.msra.mxu3 %v4478_v54  ;;  %v2525_v28 = vadd.f32 1.0, %v4774_v15 }
 0x5a3   : > { %v7046_v19 = vadd.f32 0.25, %v7033_v45  ;;  %v2377_v46 = vand.u32 2147483647, %v7036_v47  ;;  %4779 = vpow2.f32 %v2448_v58  ;;  %v2376_v58 = vand.u32 2147483647, %v7056_v31 }
 0x5a4   : > { %4781 = vlog2.f32 %v2150_v53  ;;  %v2597_v25 = vadd.f32 %v2541_v1, %v2341_v51  ;;  %v7083_v51 = vld [vmem:[%s8579_s5] ss:$0 sm:$0xff] }
 0x5a5   : > { %v2025_v44 = vand.u32 2147483647, %v7046_v19  ;;  %v2409_v6 = vsub.f32 0.0, %v2377_v46  ;;  %4783 = vlog2.f32 %v2172_v3  ;;  %v1989_v46 = vmax.f32 %v6926_v48, 0.0 }
 0x5a6   : > { %v1868_v50 = vpop.f32.mrf.mxu1  ;;  %4785 = vpow2.f32 %v2140_v36  ;;  %v2408_v41 = vsub.f32 0.0, %v2376_v58 }
 0x5a7   : > { %v7068_v14 = vpop.permute.xlu2 %3524  ;;  %v2057_v23 = vsub.f32 0.0, %v2025_v44  ;;  %v2452_v53 = vmul.f32 1.442695, %v2409_v6  ;;  %v7086_v3 = vadd.f32 %v7083_v51, %v1868_v50  ;;  %4787 = vpow2.f32 %v2096_v11  ;;  %v8947_v44 = vld [vmem:[#allocation58_spill] sm:$0xff] }
 0x5a8   : > { %2870 = vrot.lane.b32.xlu1 %v2778_v10, %s5058_s22  ;;  %3654 = vrot.lane.b32.xlu2 %v2651_v13, %s5059_s13  ;;  %8943 = vst [vmem:[#allocation32_spill] sm:$0xff] %v7068_v14  ;;  %v4776_v10 = vpop.eup %4775  ;;  %v7078_v13 = vadd.f32 0.25, %v7063_v55  ;;  %v7090_v48 = vadd.f32 %v2189_v40, %v1989_v46  ;;  %v2779_v14 = vmul.f32 %v8947_v44, %v8683_v39  ;;  %v2342_v11 = vmax.f32 %v6950_v29, 0.0 }
 0x5a9   : > { %2826 = vrot.lane.b32.xlu0 %v2756_v62, %s5058_s22  ;;  %v4778_v20 = vpop.eup %4777  ;;  %v7088_v1 = vpop.permute.xlu1 %3474  ;;  %v2629_v62 = vmax.f32 %v2597_v25, 0.001  ;;  %v2543_v50 = vmul.f32 0.6931472, %v4776_v10  ;;  %v2100_v46 = vmul.f32 1.442695, %v2057_v23  ;;  %4789 = vpow2.f32 %v2452_v53 }
 0x5aa   : > { %8944 = vst [vmem:[#allocation114_spill] sm:$0xff] %v7088_v1  ;;  %v4780_v36 = vpop.eup %4779  ;;  %v2587_v54 = vmul.f32 0.6931472, %v4778_v20  ;;  %v2024_v40 = vand.u32 2147483647, %v7078_v13  ;;  %v7102_v58 = vadd.f32 0.25, %v7086_v3  ;;  %v7109_v29 = vadd.f32 %v7086_v3, %v5698_v56 }
 0x5ab   : > { %8945 = vst [vmem:[#allocation115_spill] sm:$0xff] %v7090_v48  ;;  %v4782_v26 = vpop.eup %4781  ;;  %v2364_v10 = vmax.f32 %v6945_v2, 0.0  ;;  %v2503_v44 = vadd.f32 1.0, %v4780_v36  ;;  %v8685_v15 = vmax.f32 %v7090_v48, 0.001  ;;  %v2598_v23 = vadd.f32 %v2543_v50, %v2342_v11 }
 0x5ac   : > { %v4784_v42 = vpop.eup %4783  ;;  %v2450_v20 = vmul.f32 1.442695, %v2408_v41  ;;  %v2191_v53 = vmul.f32 0.6931472, %v4782_v26  ;;  %4791 = vlog2.f32 %v2525_v28  ;;  %v2056_v0 = vsub.f32 0.0, %v2024_v40  ;;  %v8949_v28 = vld [vmem:[#allocation21_spill] sm:$0xff] }
 0x5ad   : > { %v4786_v25 = vpop.eup %4785  ;;  %v2620_v2 = vadd.f32 %v2587_v54, %v2364_v10  ;;  %v2235_v36 = vmul.f32 0.6931472, %v4784_v42  ;;  %4793 = vpow2.f32 %v2100_v46  ;;  %v2378_v56 = vand.u32 2147483647, %v7102_v58 }
 0x5ae   : > { %v7092_v18 = vpop.permute.xlu0 %3520  ;;  %v7094_v6 = vpop.f32.mrf.mxu1  ;;  %4795 = vlog2.f32 %v2503_v44  ;;  %v7120_v41 = vadd.f32 0.25, %v7109_v29  ;;  %v2757_v26 = vmul.f32 %v8949_v28, %v8685_v15  ;;  %v2630_v11 = vmax.f32 %v2598_v23, 0.001 }
 0x5af   : > { %8946 = vst [vmem:[#allocation116_spill] sm:$0xff] %v7092_v18  ;;  %v4788_v39 = vpop.eup %4787  ;;  %v2173_v18 = vadd.f32 1.0, %v4786_v25  ;;  %4797 = vpow2.f32 %v2450_v20  ;;  %v2098_v10 = vmul.f32 1.442695, %v2056_v0  ;;  %v2410_v44 = vsub.f32 0.0, %v2378_v56 }
 0x5b0   : > { %3610 = vrot.lane.b32.xlu1 %v2629_v62, %s5059_s13  ;;  %2872 = vrot.lane.b32.xlu2 %v2779_v14, %s5058_s22  ;;  %v1990_v14 = vmax.f32 %v6957_v33, 0.0  ;;  %v7115_v62 = vpop.permute.xlu2 %3600  ;;  %v4790_v33 = vpop.eup %4789  ;;  %v2151_v40 = vadd.f32 1.0, %v4788_v39  ;;  %v2026_v23 = vand.u32 2147483647, %v7120_v41  ;;  %v2343_v48 = vmax.f32 %v6995_v21, 0.0 }
 0x5b1   : > { %3490 = vrot.lane.b32.xlu0 %v7022_v35, %s5059_s13  ;;  %8948 = vst [vmem:[#allocation58_spill] sm:$0xff] %v7115_v62  ;;  %v2012_v35 = vmax.f32 %v6964_v24, 0.0  ;;  %v2652_v24 = vmax.f32 %v2620_v2, 0.001  ;;  %4799 = vlog2.f32 %v2173_v18  ;;  %v2505_v28 = vadd.f32 1.0, %v4790_v33 }
 0x5b2   : > { %v7129_v54 = vadd.f32 %v2191_v53, %v1990_v14  ;;  %v4792_v20 = vpop.eup %4791  ;;  %4801 = vlog2.f32 %v2151_v40  ;;  %v7150_v18 = vadd.f32 %v7083_v51, %v7094_v6  ;;  %v2058_v33 = vsub.f32 0.0, %v2026_v23 }
 0x5b3   : > { %v7131_v25 = vadd.f32 %v2235_v36, %v2012_v35  ;;  %v4794_v39 = vpop.eup %4793  ;;  %4803 = vpow2.f32 %v2098_v10  ;;  %v2454_v35 = vmul.f32 1.442695, %v2410_v44  ;;  %v8956_v10 = vld [vmem:[#allocation31_spill] sm:$0xff]  ;;  %v2589_v36 = vmul.f32 0.6931472, %v4792_v20 }
 0x5b4   : > { %8952 = vst [vmem:[#allocation118_spill] sm:$0xff] %v7129_v54  ;;  %v8689_v14 = vmax.f32 %v7129_v54, 0.001  ;;  %v4796_v2 = vpop.eup %4795  ;;  %4805 = vlog2.f32 %v2505_v28  ;;  %v2153_v40 = vadd.f32 1.0, %v4794_v39  ;;  %v7167_v28 = vadd.f32 0.25, %v7150_v18 }
 0x5b5   : > { %8953 = vst [vmem:[#allocation119_spill] sm:$0xff] %v7131_v25  ;;  %v4798_v56 = vpop.eup %4797  ;;  %v8957_v39 = vmax.f32 %v7131_v25, 0.001  ;;  %4807 = vpow2.f32 %v2454_v35  ;;  %v2102_v21 = vmul.f32 1.442695, %v2058_v33  ;;  %v2013_v35 = vmax.f32 %v7010_v7, 0.0 }
 0x5b6   : > { %v7125_v50 = vpop.permute.xlu1 %3522  ;;  %v7127_v42 = vpop.permute.xlu0 %3596  ;;  %v2758_v44 = vmul.f32 %v8956_v10, %v8689_v14  ;;  %4809 = vlog2.f32 %v2153_v40  ;;  %v1991_v14 = vmax.f32 %v7016_v59, 0.0  ;;  %v2345_v40 = vmax.f32 %v7036_v47, 0.0 }
 0x5b7   : > { %8950 = vst [vmem:[#allocation21_spill] sm:$0xff] %v7125_v50  ;;  %v1873_v46 = vpop.f32.mrf.mxu1  ;;  %v2504_v50 = vadd.f32 1.0, %v4798_v56  ;;  %v2344_v25 = vmax.f32 %v7056_v31, 0.0 }
 0x5b8   : > { %8951 = vst [vmem:[#allocation117_spill] sm:$0xff] %v7127_v42  ;;  %v7134_v62 = vadd.f32 %v7083_v51, %v1873_v46  ;;  %2828 = vrot.lane.b32.xlu1 %v2757_v26, %s5058_s22  ;;  %3612 = vrot.lane.b32.xlu2 %v2630_v11, %s5059_s13  ;;  %v7157_v11 = vpop.permute.xlu2 %2818  ;;  %v4800_v46 = vpop.eup %4799  ;;  %v2545_v42 = vmul.f32 0.6931472, %v4796_v2 }
 0x5b9   : > { %3656 = vrot.lane.b32.xlu0 %v2652_v24, %s5059_s13  ;;  %v2365_v24 = vmax.f32 %v6979_v5, 0.0  ;;  %v4802_v1 = vpop.eup %4801  ;;  %v2237_v56 = vmul.f32 0.6931472, %v4800_v46  ;;  %4811 = vlog2.f32 %v2504_v50 }
 0x5ba   : > { %v7142_v53 = vadd.f32 %v7134_v62, %v8873_v12  ;;  %v7145_v0 = vadd.f32 0.25, %v7134_v62  ;;  %v2193_v54 = vmul.f32 0.6931472, %v4802_v1  ;;  %4813 = vpow2.f32 %v2102_v21 }
 0x5bb   : > { %v2621_v10 = vadd.f32 %v2589_v36, %v2365_v24 }
 0x5bc   : > { %8954 = vst [vmem:[#allocation120_spill] sm:$0xff] %v7142_v53  ;;  %v7154_v26 = vadd.f32 0.25, %v7142_v53  ;;  %v2380_v12 = vand.u32 2147483647, %v7145_v0  ;;  %v8958_v53 = vld [vmem:[#allocation59_spill] sm:$0xff] }
 0x5bd   : > { %v2780_v5 = vmul.f32 %v8958_v53, %v8957_v39  ;;  %v4804_v53 = vpop.eup %4803  ;;  %v2599_v39 = vadd.f32 %v2545_v42, %v2343_v48  ;;  %v7193_v48 = vadd.f32 %v2237_v56, %v2013_v35  ;;  %v2653_v1 = vmax.f32 %v2621_v10, 0.001 }
 0x5be   : > { %v7160_v6 = vpop.permute.xlu1 %3598  ;;  %v2815_v15 = vpop.permute.xlu0 %2814  ;;  %v2028_v20 = vand.u32 2147483647, %v7154_v26  ;;  %v2412_v2 = vsub.f32 0.0, %v2380_v12  ;;  %v2379_v12 = vand.u32 2147483647, %v7167_v28  ;;  %v2152_v59 = vadd.f32 1.0, %v4804_v53 }
 0x5bf   : > { %8955 = vst [vmem:[#allocation121_spill] sm:$0xff] %v7160_v6  ;;  %v1875_v23 = vpop.f32.mrf.mxu1  ;;  %v7174_v6 = vadd.f32 %v7150_v18, %v8848_v57  ;;  %v4806_v57 = vpop.eup %4805  ;;  %v2631_v24 = vmax.f32 %v2599_v39, 0.001 }
 0x5c0   : > { %3492 = vrot.lane.b32.xlu1 %v7086_v3, %s5059_s13  ;;  %2830 = vrot.lane.b32.xlu2 %v2758_v44, %s5058_s22  ;;  %v2060_v33 = vsub.f32 0.0, %v2028_v20  ;;  %v2458_v44 = vmul.f32 1.442695, %v2412_v2  ;;  %v7188_v46 = vadd.f32 %v7083_v51, %v1875_v23  ;;  %8960 = vst [vmem:[#allocation59_spill] sm:$0xff] %v7193_v48  ;;  %v4808_v50 = vpop.eup %4807  ;;  %v2411_v2 = vsub.f32 0.0, %v2379_v12 }
 0x5c1   : > { %2874 = vrot.lane.b32.xlu0 %v2780_v5, %s5058_s22  ;;  %v7185_v3 = vadd.f32 0.25, %v7174_v6  ;;  %v2549_v5 = vmul.f32 0.6931472, %v4806_v57  ;;  %v4810_v20 = vpop.eup %4809  ;;  %v7198_v23 = vadd.f32 %v2815_v15, %v6698_v4  ;;  %v2506_v39 = vadd.f32 1.0, %v4808_v50 }
 0x5c2   : > { %v2106_v53 = vmul.f32 1.442695, %v2060_v33  ;;  %4815 = vpow2.f32 %v2458_v44  ;;  %v7207_v35 = vadd.f32 0.25, %v7188_v46  ;;  %v4812_v15 = vpop.eup %4811  ;;  %v7214_v10 = vadd.f32 %v7188_v46, %v5716_v34 }
 0x5c3   : > { %v2027_v56 = vand.u32 2147483647, %v7185_v3  ;;  %4817 = vlog2.f32 %v2152_v59  ;;  %v2601_v57 = vadd.f32 %v2549_v5, %v2345_v40  ;;  %v2197_v12 = vmul.f32 0.6931472, %v4810_v20  ;;  %v4814_v33 = vpop.eup %4813  ;;  %v8963_v59 = vld [vmem:[#allocation61_spill] sm:$0xff] }
 0x5c4   : > { %v7191_v7 = vpop.permute.xlu2 %3482  ;;  %v2456_v44 = vmul.f32 1.442695, %v2411_v2  ;;  %v1993_v34 = vmax.f32 %v7046_v19, 0.0  ;;  %4819 = vpow2.f32 %v2106_v53  ;;  %v2547_v50 = vmul.f32 0.6931472, %v4812_v15  ;;  %v8966_v53 = vld [vmem:[#allocation34_spill] sm:$0xff] }
 0x5c5   : > { %8959 = vst [vmem:[#allocation31_spill] sm:$0xff] %v7191_v7  ;;  %v7203_v7 = vadd.f32 %v2193_v54, %v1991_v14  ;;  %v8694_v14 = vmax.f32 %v7193_v48, 0.001  ;;  %4821 = vlog2.f32 %v2506_v39  ;;  %v2633_v2 = vmax.f32 %v2601_v57, 0.001 }
 0x5c6   : > { %v2817_v42 = vpop.permute.xlu1 %2816  ;;  %v7195_v36 = vpop.permute.xlu0 %3478  ;;  %v2154_v19 = vadd.f32 1.0, %v4814_v33  ;;  %4823 = vpow2.f32 %v2456_v44  ;;  %v2600_v44 = vadd.f32 %v2547_v50, %v2344_v25  ;;  %v8969_v25 = vld [vmem:[#allocation33_spill] sm:$0xff] }
 0x5c7   : > { %8961 = vst [vmem:[#allocation122_spill] sm:$0xff] %v7195_v36  ;;  %v7201_v47 = vadd.f32 %v2817_v42, %v6712_v22  ;;  %v1878_v21 = vpop.f32.mrf.mxu1  ;;  %v2059_v42 = vsub.f32 0.0, %v2027_v56  ;;  %v2781_v40 = vmul.f32 %v8963_v59, %v8694_v14 }
 0x5c8   : > { %8962 = vst [vmem:[#allocation123_spill] sm:$0xff] %v7203_v7  ;;  %3658 = vrot.lane.b32.xlu1 %v2653_v1, %s5059_s13  ;;  %3494 = vrot.lane.b32.xlu2 %v7150_v18, %s5059_s13  ;;  %v8696_v18 = vmax.f32 %v7203_v7, 0.001  ;;  %v2381_v1 = vand.u32 2147483647, %v7207_v35  ;;  %v4816_v5 = vpop.eup %4815  ;;  %v7244_v57 = vadd.f32 %v7083_v51, %v1878_v21  ;;  %4825 = vlog2.f32 %v2154_v19 }
 0x5c9   : > { %v2942_v54 = vpack.c.bf16 %v7201_v47, %v7198_v23  ;;  %3614 = vrot.lane.b32.xlu0 %v2631_v24, %s5059_s13  ;;  %v7225_v24 = vadd.f32 0.25, %v7214_v10  ;;  %v4818_v56 = vpop.eup %4817  ;;  %v2104_v48 = vmul.f32 1.442695, %v2059_v42  ;;  %v2508_v15 = vadd.f32 1.0, %v4816_v5 }
 0x5ca   : > { %v2759_v36 = vmul.f32 %v8966_v53, %v8696_v18  ;;  %v2413_v22 = vsub.f32 0.0, %v2381_v1  ;;  %v4820_v33 = vpop.eup %4819  ;;  %v1992_v1 = vmax.f32 %v7078_v13, 0.0  ;;  %v2632_v13 = vmax.f32 %v2600_v44, 0.001 }
 0x5cb   : > { %4431 = vmatmul.msk.bf16.vlgmr.msra.gmra.mxu2 %vm2978_vm1, %v2942_v54  ;;  %v7232_v54 = vadd.f32 %v2197_v12, %v1993_v34  ;;  %v2029_v39 = vand.u32 2147483647, %v7225_v24  ;;  %v2195_v34 = vmul.f32 0.6931472, %v4818_v56  ;;  %v4822_v42 = vpop.eup %4821  ;;  %4827 = vpow2.f32 %v2104_v48 }
 0x5cc   : > { %v7238_v59 = vpop.permute.xlu2 %3648  ;;  %4829 = vlog2.f32 %v2508_v15  ;;  %v2156_v53 = vadd.f32 1.0, %v4820_v33  ;;  %v2551_v19 = vmul.f32 0.6931472, %v4822_v42 }
 0x5cd   : > { %8965 = vst [vmem:[#allocation124_spill] sm:$0xff] %v7232_v54  ;;  %v8695_v31 = vmax.f32 %v7232_v54, 0.001  ;;  %v2061_v21 = vsub.f32 0.0, %v2029_v39  ;;  %v7261_v48 = vadd.f32 %v2195_v34, %v1992_v1 }
 0x5ce   : > { %v7230_v20 = vpop.permute.xlu0 %3526  ;;  %8967 = vst [vmem:[#allocation34_spill] sm:$0xff] %v7238_v59 }
 0x5cf   : > { %8964 = vst [vmem:[#allocation61_spill] sm:$0xff] %v7230_v20  ;;  %v1880_v12 = vpop.f32.mrf.mxu1  ;;  %v2761_v50 = vmul.f32 %v8969_v25, %v8695_v31  ;;  %v2108_v33 = vmul.f32 1.442695, %v2061_v21  ;;  %v8698_v42 = vmax.f32 %v7261_v48, 0.001  ;;  %v7293_v31 = vadd.f32 %v7157_v11, %v6729_v30 }
 0x5d0   : > { %2876 = vrot.lane.b32.xlu1 %v2781_v40, %s5058_s22  ;;  %3618 = vrot.lane.b32.xlu2 %v2633_v2, %s5059_s13  ;;  %v2460_v40 = vmul.f32 1.442695, %v2413_v22  ;;  %v7250_v5 = vadd.f32 %v7083_v51, %v1880_v12  ;;  %v4824_v2 = vpop.eup %4823  ;;  %8970 = vst [vmem:[#allocation33_spill] sm:$0xff] %v7261_v48  ;;  %v7264_v22 = vadd.f32 0.25, %v7244_v57  ;;  %v2346_v12 = vmax.f32 %v7102_v58, 0.0 }
 0x5d1   : > { %2832 = vrot.lane.b32.xlu0 %v2759_v36, %s5058_s22  ;;  %v7254_v36 = vadd.f32 %v7244_v57, %v8864_v16  ;;  %v4826_v56 = vpop.eup %4825  ;;  %v2507_v15 = vadd.f32 1.0, %v4824_v2 }
 0x5d2   : > { %4831 = vpow2.f32 %v2460_v40  ;;  %v7268_v16 = vadd.f32 %v7250_v5, %v8874_v8  ;;  %v7271_v39 = vadd.f32 0.25, %v7250_v5  ;;  %v4828_v34 = vpop.eup %4827  ;;  %v2382_v40 = vand.u32 2147483647, %v7264_v22 }
 0x5d3   : > { %v7277_v44 = vadd.f32 0.25, %v7254_v36  ;;  %4833 = vlog2.f32 %v2156_v53  ;;  %v4830_v1 = vpop.eup %4829  ;;  %v2602_v2 = vadd.f32 %v2551_v19, %v2346_v12  ;;  %v2199_v25 = vmul.f32 0.6931472, %v4826_v56  ;;  %v8971_v19 = vld [vmem:[#allocation22_spill] sm:$0xff] }
 0x5d4   : > { %v7281_v8 = vpop.permute.xlu2 %2866  ;;  %4835 = vlog2.f32 %v2507_v15  ;;  %v7286_v58 = vadd.f32 0.25, %v7268_v16  ;;  %v2383_v21 = vand.u32 2147483647, %v7271_v39  ;;  %v2155_v53 = vadd.f32 1.0, %v4828_v34 }
 0x5d5   : > { %4837 = vpow2.f32 %v2108_v33  ;;  %v2760_v56 = vmul.f32 %v8971_v19, %v8698_v42  ;;  %v2555_v15 = vmul.f32 0.6931472, %v4830_v1  ;;  %v2414_v54 = vsub.f32 0.0, %v2382_v40 }
 0x5d6   : > { %v7256_v14 = vpop.permute.xlu0 %3602  ;;  %v2348_v34 = vmax.f32 %v7145_v0, 0.0  ;;  %v2415_v11 = vsub.f32 0.0, %v2383_v21  ;;  %4839 = vlog2.f32 %v2155_v53 }
 0x5d7   : > { %8968 = vst [vmem:[#allocation125_spill] sm:$0xff] %v7256_v14  ;;  %v2031_v14 = vand.u32 2147483647, %v7286_v58  ;;  %v1883_v1 = vpop.f32.mrf.mxu1  ;;  %v2462_v42 = vmul.f32 1.442695, %v2414_v54  ;;  %v8975_v54 = vld [vmem:[#allocation37_spill] sm:$0xff] }
 0x5d8   : > { %2836 = vrot.lane.b32.xlu2 %v2761_v50, %s5058_s22  ;;  %3616 = vrot.lane.b32.xlu1 %v2632_v13, %s5059_s13  ;;  %v1994_v50 = vmax.f32 %v7120_v41, 0.0  ;;  %v4832_v13 = vpop.eup %4831  ;;  %v2634_v41 = vmax.f32 %v2602_v2, 0.001  ;;  %v2604_v0 = vadd.f32 %v2555_v15, %v2348_v34  ;;  %v2464_v48 = vmul.f32 1.442695, %v2415_v11 }
 0x5d9   : > { %3496 = vrot.lane.b32.xlu0 %v7134_v62, %s5059_s13  ;;  %v2030_v62 = vand.u32 2147483647, %v7277_v44  ;;  %v4834_v12 = vpop.eup %4833  ;;  %v2509_v2 = vadd.f32 1.0, %v4832_v13  ;;  %v7317_v7 = vadd.f32 %v7083_v51, %v1883_v1  ;;  %v7336_v1 = vpop.permute.xlu1 %3480 }
 0x5da   : > { %v7301_v33 = vadd.f32 %v2199_v25, %v1994_v50  ;;  %v2203_v50 = vmul.f32 0.6931472, %v4834_v12  ;;  %v2636_v13 = vmax.f32 %v2604_v0, 0.001 }
 0x5db   : > { %v2062_v19 = vsub.f32 0.0, %v2030_v62  ;;  %v1996_v62 = vmax.f32 %v7154_v26, 0.0  ;;  %4841 = vlog2.f32 %v2509_v2  ;;  %v2347_v26 = vmax.f32 %v7167_v28, 0.0 }
 0x5dc   : > { %8972 = vst [vmem:[#allocation22_spill] sm:$0xff] %v7301_v33  ;;  %4843 = vpow2.f32 %v2462_v42  ;;  %v7326_v11 = vadd.f32 0.25, %v7317_v7 }
 0x5dd   : > { %v2110_v53 = vmul.f32 1.442695, %v2062_v19  ;;  %4845 = vpow2.f32 %v2464_v48  ;;  %v8976_v19 = vld [vmem:[#allocation46_spill] sm:$0xff] }
 0x5de   : > { %v2821_v18 = vpop.permute.xlu0 %2820  ;;  %v7333_v42 = vadd.f32 %v7317_v7, %v8976_v19  ;;  %v2384_v0 = vand.u32 2147483647, %v7326_v11 }
 0x5df   : > { %v7299_v59 = vadd.f32 %v2821_v18, %v6745_v61  ;;  %v4836_v18 = vpop.eup %4835  ;;  %4847 = vpow2.f32 %v2110_v53  ;;  %v8978_v53 = vld [vmem:[#allocation35_spill] sm:$0xff] }
 0x5e0   : > { %2834 = vrot.lane.b32.xlu1 %v2760_v56, %s5058_s22  ;;  %3500 = vrot.lane.b32.xlu2 %v7244_v57, %s5059_s13  ;;  %v4838_v21 = vpop.eup %4837  ;;  %v8701_v57 = vmax.f32 %v7301_v33, 0.001  ;;  %v2063_v56 = vsub.f32 0.0, %v2031_v14 }
 0x5e1   : > { %v2943_v40 = vpack.c.bf16 %v7299_v59, %v7293_v31  ;;  %3620 = vrot.lane.b32.xlu0 %v2634_v41, %s5059_s13  ;;  %v2553_v41 = vmul.f32 0.6931472, %v4836_v18  ;;  %v2157_v15 = vadd.f32 1.0, %v4838_v21  ;;  %v4840_v12 = vpop.eup %4839  ;;  %v7344_v21 = vadd.f32 0.25, %v7333_v42 }
 0x5e2   : > { %v7311_v25 = vpop.permute.xlu2 %3530  ;;  %v2762_v34 = vmul.f32 %v8975_v54, %v8701_v57  ;;  %v2112_v14 = vmul.f32 1.442695, %v2063_v56  ;;  %v2201_v18 = vmul.f32 0.6931472, %v4840_v12  ;;  %v4842_v2 = vpop.eup %4841 }
 0x5e3   : > { %8973 = vst [vmem:[#allocation126_spill] sm:$0xff] %v7311_v25  ;;  %4432 = vmatmul.msk.bf16.gmra.mxu2 %vm2978_vm1, %v2943_v40  ;;  %v7319_v25 = vadd.f32 %v2203_v50, %v1996_v62  ;;  %v2603_v48 = vadd.f32 %v2553_v41, %v2347_v26  ;;  %4849 = vlog2.f32 %v2157_v15  ;;  %v4844_v50 = vpop.eup %4843  ;;  %v1885_v15 = vpop.f32.mrf.mxu1  ;;  %v2557_v54 = vmul.f32 0.6931472, %v4842_v2 }
 0x5e4   : > { %4851 = vpow2.f32 %v2112_v14  ;;  %v4846_v62 = vpop.eup %4845  ;;  %v2416_v26 = vsub.f32 0.0, %v2384_v0  ;;  %v2349_v14 = vmax.f32 %v7207_v35, 0.0 }
 0x5e5   : > { %8974 = vst [vmem:[#allocation127_spill] sm:$0xff] %v7319_v25  ;;  %v8702_v40 = vmax.f32 %v7319_v25, 0.001  ;;  %v2635_v56 = vmax.f32 %v2603_v48, 0.001  ;;  %v4848_v12 = vpop.eup %4847  ;;  %v2511_v57 = vadd.f32 1.0, %v4846_v62 }
 0x5e6   : > { %v2032_v48 = vand.u32 2147483647, %v7344_v21  ;;  %v8981_v25 = vld [vmem:[#allocation23_spill] sm:$0xff] }
 0x5e7   : > { %v2764_v41 = vmul.f32 %v8978_v53, %v8702_v40  ;;  %v2158_v40 = vadd.f32 1.0, %v4848_v12 }
 0x5e8   : > { %3498 = vrot.lane.b32.xlu1 %v7188_v46, %s5059_s13  ;;  %3624 = vrot.lane.b32.xlu2 %v2636_v13, %s5059_s13  ;;  %v1995_v46 = vmax.f32 %v7185_v3, 0.0  ;;  %v2510_v3 = vadd.f32 1.0, %v4844_v50  ;;  %v2605_v50 = vadd.f32 %v2557_v54, %v2349_v14  ;;  %v2064_v35 = vsub.f32 0.0, %v2032_v48 }
 0x5e9   : > { %2838 = vrot.lane.b32.xlu0 %v2762_v34, %s5058_s22  ;;  %v4850_v34 = vpop.eup %4849 }
 0x5ea   : > { %v7338_v28 = vpop.permute.xlu2 %3606  ;;  %v7349_v13 = vadd.f32 %v2201_v18, %v1995_v46  ;;  %v4852_v18 = vpop.eup %4851  ;;  %v2205_v0 = vmul.f32 0.6931472, %v4850_v34  ;;  %4853 = vlog2.f32 %v2510_v3  ;;  %v2637_v33 = vmax.f32 %v2605_v50, 0.001 }
 0x5eb   : > { %8977 = vst [vmem:[#allocation37_spill] sm:$0xff] %v7338_v28  ;;  %4855 = vlog2.f32 %v2511_v57  ;;  %v2159_v62 = vadd.f32 1.0, %v4852_v18  ;;  %v2114_v12 = vmul.f32 1.442695, %v2064_v35  ;;  %v1888_v57 = vpop.f32.mrf.mxu1  ;;  %v8987_v35 = vld [vmem:[#allocation40_spill] sm:$0xff] }
 0x5ec   : > { %8979 = vst [vmem:[#allocation46_spill] sm:$0xff] %v7349_v13  ;;  %v8705_v2 = vmax.f32 %v7349_v13, 0.001  ;;  %4857 = vlog2.f32 %v2158_v40  ;;  %v7379_v14 = vadd.f32 %v7083_v51, %v1888_v57  ;;  %v8988_v57 = vld [vmem:[#allocation47_spill] sm:$0xff] }
 0x5f0   : > { %3622 = vrot.lane.b32.xlu1 %v2635_v56, %s5059_s13  ;;  %2842 = vrot.lane.b32.xlu2 %v2764_v41, %s5058_s22  ;;  %v2466_v56 = vmul.f32 1.442695, %v2416_v26  ;;  %v1997_v41 = vmax.f32 %v7225_v24, 0.0  ;;  %v1886_v24 = vadd.f32 %v7083_v51, %v1885_v15  ;;  %v4854_v54 = vpop.eup %4853  ;;  %v8986_v15 = vld [vmem:[#allocation45_spill] sm:$0xff] }
 0x5f1   : > { %3502 = vrot.lane.b32.xlu0 %v7250_v5, %s5059_s13  ;;  %v2763_v5 = vmul.f32 %v8981_v25, %v8705_v2  ;;  %v4856_v3 = vpop.eup %4855  ;;  %v7396_v2 = vadd.f32 0.25, %v7379_v14 }
 0x5f2   : > { %v7357_v46 = vpop.permute.xlu1 %3528  ;;  %v2825_v53 = vpop.permute.xlu2 %2824  ;;  %v7364_v28 = vadd.f32 %v2205_v0, %v1997_v41  ;;  %4859 = vpow2.f32 %v2466_v56  ;;  %v7382_v48 = vadd.f32 %v1886_v24, %v8986_v15  ;;  %v2561_v50 = vmul.f32 0.6931472, %v4856_v3 }
 0x5f3   : > { %8980 = vst [vmem:[#allocation35_spill] sm:$0xff] %v7357_v46  ;;  %4861 = vlog2.f32 %v2159_v62  ;;  %v2350_v56 = vmax.f32 %v7264_v22, 0.0  ;;  %v7385_v41 = vadd.f32 0.25, %v1886_v24  ;;  %v1890_v20 = vpop.f32.mrf.mxu1  ;;  %v9025_v46 = vld [vmem:[#allocation7_spill] sm:$0xff] }
 0x5f4   : > { %8982 = vst [vmem:[#allocation23_spill] sm:$0xff] %v7364_v28  ;;  %v8706_v26 = vmax.f32 %v7364_v28, 0.001  ;;  %4863 = vpow2.f32 %v2114_v12  ;;  %v7393_v12 = vadd.f32 %v7379_v14, %v8988_v57  ;;  %v7402_v22 = vadd.f32 0.25, %v7382_v48 }
 0x5f6   : > { %v2765_v62 = vmul.f32 %v8987_v35, %v8706_v26  ;;  %8989 = vst [vmem:[#allocation45_spill] sm:$0xff] %v7393_v12 }
 0x5f8   : > { %2840 = vrot.lane.b32.xlu1 %v2763_v5, %s5058_s22  ;;  %3340 = vrot.lane.b32.xlu2 %v7198_v23, %s5056_s12  ;;  %v4858_v23 = vpop.eup %4857  ;;  %v2351_v5 = vmax.f32 %v7271_v39, 0.0 }
 0x5f9   : > { %3626 = vrot.lane.b32.xlu0 %v2637_v33, %s5059_s13  ;;  %v2559_v33 = vmul.f32 0.6931472, %v4854_v54  ;;  %v4860_v18 = vpop.eup %4859  ;;  %v2207_v3 = vmul.f32 0.6931472, %v4858_v23  ;;  %v1999_v23 = vmax.f32 %v7286_v58, 0.0 }
 0x5fa   : > { %v7371_v34 = vpop.permute.xlu1 %3604  ;;  %v7373_v25 = vpop.permute.xlu2 %3488  ;;  %v2512_v39 = vadd.f32 1.0, %v4860_v18  ;;  %v2607_v13 = vadd.f32 %v2561_v50, %v2351_v5  ;;  %v2386_v18 = vand.u32 2147483647, %v7396_v2  ;;  %v2033_v50 = vand.u32 2147483647, %v7402_v22 }
 0x5fb   : > { %8983 = vst [vmem:[#allocation128_spill] sm:$0xff] %v7371_v34  ;;  %v7375_v40 = vpop.permute.xlu0 %3484  ;;  %v4862_v0 = vpop.eup %4861  ;;  %v2606_v54 = vadd.f32 %v2559_v33, %v2350_v56  ;;  %v7419_v33 = vadd.f32 0.25, %v7393_v12 }
 0x5fc   : > { %8984 = vst [vmem:[#allocation129_spill] sm:$0xff] %v7373_v25  ;;  %v2209_v28 = vmul.f32 0.6931472, %v4862_v0  ;;  %v4864_v34 = vpop.eup %4863  ;;  %v1998_v25 = vmax.f32 %v7277_v44, 0.0  ;;  %4865 = vlog2.f32 %v2512_v39  ;;  %v2639_v56 = vmax.f32 %v2607_v13, 0.001 }
 0x5fd   : > { %8985 = vst [vmem:[#allocation130_spill] sm:$0xff] %v7375_v40  ;;  %v2638_v0 = vmax.f32 %v2606_v54, 0.001  ;;  %v2034_v58 = vand.u32 2147483647, %v7419_v33 }
 0x5fe   : > { %v7427_v5 = vadd.f32 %v2209_v28, %v1999_v23 }
 0x5ff   : > { %v2066_v23 = vsub.f32 0.0, %v2034_v58 }
 0x600   : > { %3504 = vrot.lane.b32.xlu1 %v7317_v7, %s5059_s13  ;;  %3506 = vrot.lane.b32.xlu2 %v1886_v24, %s5059_s13  ;;  %v2385_v7 = vand.u32 2147483647, %v7385_v41  ;;  %v7410_v24 = vadd.f32 %v2825_v53, %v6832_v32  ;;  %v7425_v53 = vadd.f32 %v2207_v3, %v1998_v25  ;;  %8993 = vst [vmem:[#allocation132_spill] sm:$0xff] %v7427_v5  ;;  %v2065_v25 = vsub.f32 0.0, %v2033_v50 }
 0x601   : > { %2844 = vrot.lane.b32.xlu0 %v2765_v62, %s5058_s22  ;;  %v8711_v13 = vmax.f32 %v7427_v5, 0.001 }
 0x602   : > { %v2823_v35 = vpop.permute.xlu1 %2822  ;;  %v7405_v26 = vpop.permute.xlu2 %3654  ;;  %8992 = vst [vmem:[#allocation131_spill] sm:$0xff] %v7425_v53  ;;  %v2116_v50 = vmul.f32 1.442695, %v2065_v25  ;;  %v2352_v25 = vmax.f32 %v7326_v11, 0.0 }
 0x603   : > { %8990 = vst [vmem:[#allocation40_spill] sm:$0xff] %v7405_v26  ;;  %v7413_v40 = vadd.f32 %v2823_v35, %v6806_v49  ;;  %v7415_v62 = vpop.permute.xlu0 %3650  ;;  %v2160_v35 = vadd.f32 1.0, %v4864_v34  ;;  %v2417_v26 = vsub.f32 0.0, %v2385_v7  ;;  %v4866_v7 = vpop.eup %4865 }
 0x604   : > { %8991 = vst [vmem:[#allocation47_spill] sm:$0xff] %v7415_v62  ;;  %v2418_v62 = vsub.f32 0.0, %v2386_v18 }
 0x605   : > { %v2944_v44 = vpack.c.bf16 %v7410_v24, %v7413_v40  ;;  %4867 = vlog2.f32 %v2160_v35  ;;  %v2468_v3 = vmul.f32 1.442695, %v2417_v26  ;;  %v8996_v26 = vmax.f32 %v7425_v53, 0.001  ;;  %v8997_v35 = vld [vmem:[#allocation27_spill] sm:$0xff] }
 0x606   : > { %v2470_v18 = vmul.f32 1.442695, %v2418_v62  ;;  %v2563_v62 = vmul.f32 0.6931472, %v4866_v7 }
 0x607   : > { %4433 = vmatmul.msk.bf16.gmra.mxu2 %vm2978_vm1, %v2944_v44  ;;  %v1891_v44 = vadd.f32 %v7083_v51, %v1890_v20  ;;  %4869 = vpow2.f32 %v2468_v3 }
 0x608   : > { %3630 = vrot.lane.b32.xlu2 %v2639_v56, %s5059_s13  ;;  %3628 = vrot.lane.b32.xlu1 %v2638_v0, %s5059_s13  ;;  %v7442_v0 = vadd.f32 %v7281_v8, %v6762_v27  ;;  %v8995_v56 = vld [vmem:[#allocation39_spill] sm:$0xff]  ;;  %v2118_v8 = vmul.f32 1.442695, %v2066_v23  ;;  %4871 = vpow2.f32 %v2470_v18 }
 0x609   : > { %3342 = vrot.lane.b32.xlu0 %v7201_v47, %s5056_s12  ;;  %v2767_v34 = vmul.f32 %v8995_v56, %v8711_v13  ;;  %v7455_v12 = vadd.f32 0.25, %v1891_v44  ;;  %4873 = vpow2.f32 %v2116_v50 }
 0x60a   : > { %v7435_v54 = vpop.permute.xlu1 %3486  ;;  %v2873_v28 = vpop.permute.xlu2 %2872  ;;  %4875 = vpow2.f32 %v2118_v8 }
 0x60b   : > { %8994 = vst [vmem:[#allocation133_spill] sm:$0xff] %v7435_v54  ;;  %v2869_v39 = vpop.permute.xlu0 %2868  ;;  %v2766_v54 = vmul.f32 %v8997_v35, %v8996_v26  ;;  %v4868_v58 = vpop.eup %4867  ;;  %v2387_v11 = vand.u32 2147483647, %v7455_v12  ;;  %v2000_v26 = vmax.f32 %v7344_v21, 0.0 }
 0x60c   : > { %v7445_v47 = vadd.f32 %v2869_v39, %v6837_v52  ;;  %v8998_v39 = vld [vmem:[#allocation54_spill] sm:$0xff]  ;;  %v2211_v18 = vmul.f32 0.6931472, %v4868_v58 }
 0x60d   : > { %v7461_v56 = vadd.f32 %v1891_v44, %v8998_v39 }
 0x60e   : > { %v2955_v20 = vpack.c.bf16 %v7445_v47, %v7442_v0  ;;  %v7477_v13 = vadd.f32 %v2211_v18, %v2000_v26 }
 0x60f   : > { %8999 = vst [vmem:[#allocation39_spill] sm:$0xff] %v7461_v56  ;;  %v7475_v35 = vadd.f32 0.25, %v7461_v56  ;;  %v2001_v56 = vmax.f32 %v7402_v22, 0.0 }
 0x610   : > { %2848 = vrot.lane.b32.xlu2 %v2767_v34, %s5058_s22  ;;  %2846 = vrot.lane.b32.xlu1 %v2766_v54, %s5058_s22  ;;  %v2608_v34 = vadd.f32 %v2563_v62, %v2352_v25  ;;  %v4870_v54 = vpop.eup %4869  ;;  %9003 = vst [vmem:[#allocation135_spill] sm:$0xff] %v7477_v13 }
 0x611   : > { %4444 = vmatmul.msk.bf16.vlgmr.msra.gmra.mxu3 %vm2978_vm1, %v2955_v20  ;;  %3508 = vrot.lane.b32.xlu0 %v7379_v14, %s5059_s13  ;;  %v4872_v20 = vpop.eup %4871  ;;  %v1893_v14 = vpop.f32.mrf.mxu1  ;;  %v2513_v53 = vadd.f32 1.0, %v4870_v54  ;;  %v2035_v21 = vand.u32 2147483647, %v7475_v35 }
 0x612   : > { %v7466_v3 = vpop.permute.xlu1 %3652  ;;  %v7468_v7 = vpop.permute.xlu2 %3612  ;;  %v2640_v50 = vmax.f32 %v2608_v34, 0.001  ;;  %v2514_v62 = vadd.f32 1.0, %v4872_v20  ;;  %v7488_v34 = vadd.f32 %v2873_v28, %v6892_v17  ;;  %v9004_v28 = vld [vmem:[#allocation44_spill] sm:$0xff] }
 0x613   : > { %9000 = vst [vmem:[#allocation27_spill] sm:$0xff] %v7466_v3  ;;  %v7470_v23 = vpop.permute.xlu0 %3608  ;;  %v4874_v5 = vpop.eup %4873  ;;  %v2419_v3 = vsub.f32 0.0, %v2387_v11  ;;  %4877 = vlog2.f32 %v2513_v53  ;;  %v2067_v26 = vsub.f32 0.0, %v2035_v21 }
 0x614   : > { %9001 = vst [vmem:[#allocation54_spill] sm:$0xff] %v7468_v7  ;;  %v4876_v58 = vpop.eup %4875  ;;  %v2161_v54 = vadd.f32 1.0, %v4874_v5  ;;  %4879 = vlog2.f32 %v2514_v62  ;;  %v1894_v7 = vadd.f32 %v7083_v51, %v1893_v14 }
 0x615   : > { %9002 = vst [vmem:[#allocation134_spill] sm:$0xff] %v7470_v23  ;;  %v2120_v53 = vmul.f32 1.442695, %v2067_v26 }
 0x616   : > { %4881 = vlog2.f32 %v2161_v54  ;;  %v7514_v26 = vadd.f32 0.25, %v1894_v7 }
 0x618   : > { %3346 = vrot.lane.b32.xlu2 %v7299_v59, %s5056_s12  ;;  %3344 = vrot.lane.b32.xlu1 %v7293_v31, %s5056_s12  ;;  %v8714_v59 = vmax.f32 %v7477_v13, 0.001  ;;  %v2472_v31 = vmul.f32 1.442695, %v2419_v3 }
 0x619   : > { %3632 = vrot.lane.b32.xlu0 %v2640_v50, %s5059_s13  ;;  %v2162_v50 = vadd.f32 1.0, %v4876_v58  ;;  %v1895_v5 = vpop.f32.mrf.mxu1  ;;  %v4878_v3 = vpop.eup %4877 }
 0x61a   : > { %v2871_v8 = vpop.permute.xlu1 %2870  ;;  %v7485_v25 = vpop.permute.xlu2 %2830  ;;  %v2768_v23 = vmul.f32 %v9004_v28, %v8714_v59  ;;  %4883 = vpow2.f32 %v2472_v31  ;;  %v2353_v59 = vmax.f32 %v7385_v41, 0.0 }
 0x61b   : > { %v7491_v18 = vadd.f32 %v2871_v8, %v6870_v60  ;;  %v2827_v11 = vpop.permute.xlu0 %2826  ;;  %4885 = vlog2.f32 %v2162_v50  ;;  %v4880_v21 = vpop.eup %4879  ;;  %v9008_v8 = vld [vmem:[#allocation52_spill] sm:$0xff] }
 0x61c   : > { %v7511_v54 = vadd.f32 %v1894_v7, %v9008_v8  ;;  %v4882_v31 = vpop.eup %4881  ;;  %4887 = vpow2.f32 %v2120_v53  ;;  %v2567_v50 = vmul.f32 0.6931472, %v4880_v21 }
 0x61d   : > { %v2956_v20 = vpack.c.bf16 %v7488_v34, %v7491_v18  ;;  %v2213_v41 = vmul.f32 0.6931472, %v4882_v31 }
 0x61e   : > { %9009 = vst [vmem:[#allocation52_spill] sm:$0xff] %v7511_v54  ;;  %v7519_v13 = vadd.f32 0.25, %v7511_v54 }
 0x620   : > { %3512 = vrot.lane.b32.xlu2 %v1894_v7, %s5059_s13  ;;  %3510 = vrot.lane.b32.xlu1 %v1891_v44, %s5059_s13  ;;  %v1896_v44 = vadd.f32 %v7083_v51, %v1895_v5  ;;  %v2388_v51 = vand.u32 2147483647, %v7514_v26 }
 0x621   : > { %4445 = vmatmul.msk.bf16.gmra.mxu3 %vm2978_vm1, %v2956_v20  ;;  %2850 = vrot.lane.b32.xlu0 %v2768_v23, %s5058_s22  ;;  %v2565_v20 = vmul.f32 0.6931472, %v4878_v3  ;;  %v4884_v23 = vpop.eup %4883 }
 0x622   : > { %v7504_v62 = vpop.permute.xlu1 %3610  ;;  %v7506_v14 = vpop.permute.xlu2 %3494  ;;  %v7524_v17 = vadd.f32 0.25, %v1896_v44  ;;  %v2515_v7 = vadd.f32 1.0, %v4884_v23  ;;  %v7552_v23 = vadd.f32 %v2213_v41, %v2001_v56 }
 0x623   : > { %9005 = vst [vmem:[#allocation44_spill] sm:$0xff] %v7504_v62  ;;  %v7508_v58 = vpop.permute.xlu0 %3490  ;;  %v4886_v28 = vpop.eup %4885 }
 0x624   : > { %9006 = vst [vmem:[#allocation136_spill] sm:$0xff] %v7506_v14  ;;  %v2354_v14 = vmax.f32 %v7396_v2, 0.0  ;;  %v2609_v2 = vadd.f32 %v2565_v20, %v2353_v59  ;;  %v2215_v21 = vmul.f32 0.6931472, %v4886_v28  ;;  %v4888_v54 = vpop.eup %4887  ;;  %v2036_v59 = vand.u32 2147483647, %v7519_v13 }
 0x625   : > { %9007 = vst [vmem:[#allocation137_spill] sm:$0xff] %v7508_v58  ;;  %v9010_v58 = vld [vmem:[#allocation56_spill] sm:$0xff]  ;;  %v2420_v20 = vsub.f32 0.0, %v2388_v51  ;;  %4889 = vlog2.f32 %v2515_v7  ;;  %v8726_v41 = vmax.f32 %v7552_v23, 0.001 }
 0x626   : > { %v7522_v62 = vadd.f32 %v1896_v44, %v9010_v58  ;;  %v2610_v3 = vadd.f32 %v2567_v50, %v2354_v14  ;;  %v2389_v14 = vand.u32 2147483647, %v7524_v17  ;;  %9014 = vst [vmem:[#allocation140_spill] sm:$0xff] %v7552_v23  ;;  %v2068_v51 = vsub.f32 0.0, %v2036_v59  ;;  %v4990_v7 = vld [vmem:[%s8579_s5] ss:$0 sm:$0xff] }
 0x628   : > { %9011 = vst [vmem:[#allocation56_spill] sm:$0xff] %v7522_v62  ;;  %3394 = vrot.lane.b32.xlu2 %v7445_v47, %s5056_s12  ;;  %3392 = vrot.lane.b32.xlu1 %v7442_v0, %s5056_s12  ;;  %v7537_v47 = vadd.f32 %v2827_v11, %v6884_v38  ;;  %v7547_v31 = vadd.f32 0.25, %v7522_v62  ;;  %v2641_v11 = vmax.f32 %v2609_v2, 0.001  ;;  %v2642_v50 = vmax.f32 %v2610_v3, 0.001 }
 0x629   : > { %3348 = vrot.lane.b32.xlu0 %v7413_v40, %s5056_s12  ;;  %v2002_v40 = vmax.f32 %v7419_v33, 0.0  ;;  %v1898_v33 = vpop.f32.mrf.mxu1  ;;  %v2474_v62 = vmul.f32 1.442695, %v2420_v20  ;;  %v9017_v20 = vld [vmem:[#allocation42_spill] sm:$0xff] }
 0x62a   : > { %v2829_v53 = vpop.permute.xlu1 %2828  ;;  %v7533_v5 = vpop.permute.xlu2 %3618  ;;  %v7570_v3 = vadd.f32 %v4990_v7, %v1898_v33 }
 0x62b   : > { %9012 = vst [vmem:[#allocation138_spill] sm:$0xff] %v7533_v5  ;;  %v7540_v0 = vadd.f32 %v2829_v53, %v6920_v9  ;;  %v7542_v32 = vpop.permute.xlu0 %3656  ;;  %v7554_v28 = vadd.f32 %v2215_v21, %v2002_v40  ;;  %v2163_v53 = vadd.f32 1.0, %v4888_v54  ;;  %v2421_v5 = vsub.f32 0.0, %v2389_v14  ;;  %v4890_v40 = vpop.eup %4889 }
 0x62c   : > { %9013 = vst [vmem:[#allocation139_spill] sm:$0xff] %v7542_v32  ;;  %v2037_v32 = vand.u32 2147483647, %v7547_v31 }
 0x62d   : > { %v2945_v22 = vpack.c.bf16 %v7540_v0, %v7537_v47  ;;  %9015 = vst [vmem:[#allocation141_spill] sm:$0xff] %v7554_v28  ;;  %v8725_v54 = vmax.f32 %v7554_v28, 0.001  ;;  %4891 = vlog2.f32 %v2163_v53  ;;  %v2476_v14 = vmul.f32 1.442695, %v2421_v5 }
 0x62e   : > { %v2069_v59 = vsub.f32 0.0, %v2037_v32  ;;  %4893 = vpow2.f32 %v2474_v62  ;;  %v7579_v53 = vadd.f32 0.25, %v7570_v3  ;;  %v2355_v32 = vmax.f32 %v7455_v12, 0.0  ;;  %v9019_v62 = vld [vmem:[#allocation8_spill] sm:$0xff] }
 0x62f   : > { %4434 = vmatmul.msk.bf16.gmra.mxu2 %vm2978_vm1, %v2945_v22  ;;  %v2770_v22 = vmul.f32 %v9017_v20, %v8725_v54  ;;  %4895 = vpow2.f32 %v2476_v14  ;;  %v7586_v5 = vadd.f32 %v7570_v3, %v9019_v62 }
 0x630   : > { %3636 = vrot.lane.b32.xlu2 %v2642_v50, %s5059_s13  ;;  %3634 = vrot.lane.b32.xlu1 %v2641_v11, %s5059_s13  ;;  %v9018_v11 = vld [vmem:[#allocation43_spill] sm:$0xff]  ;;  %v2124_v9 = vmul.f32 1.442695, %v2069_v59  ;;  %v2390_v14 = vand.u32 2147483647, %v7579_v53 }
 0x631   : > { %3514 = vrot.lane.b32.xlu0 %v1896_v44, %s5059_s13  ;;  %v2122_v44 = vmul.f32 1.442695, %v2068_v51  ;;  %v2769_v50 = vmul.f32 %v9018_v11, %v8726_v41  ;;  %9020 = vst [vmem:[#allocation42_spill] sm:$0xff] %v7586_v5  ;;  %v1900_v51 = vpop.f32.mrf.mxu1  ;;  %v7599_v54 = vadd.f32 0.25, %v7586_v5 }
 0x632   : > { %v7561_v56 = vpop.permute.xlu1 %3492  ;;  %v7563_v2 = vpop.permute.xlu2 %2836  ;;  %v2422_v23 = vsub.f32 0.0, %v2390_v14 }
 0x633   : > { %9016 = vst [vmem:[#allocation142_spill] sm:$0xff] %v7561_v56  ;;  %v2875_v21 = vpop.permute.xlu0 %2874  ;;  %v2569_v56 = vmul.f32 0.6931472, %v4890_v40  ;;  %v4892_v33 = vpop.eup %4891  ;;  %4897 = vpow2.f32 %v2122_v44  ;;  %v1901_v44 = vadd.f32 %v4990_v7, %v1900_v51 }
 0x634   : > { %v4894_v59 = vpop.eup %4893  ;;  %v2217_v12 = vmul.f32 0.6931472, %v4892_v33  ;;  %4899 = vpow2.f32 %v2124_v9  ;;  %v2478_v51 = vmul.f32 1.442695, %v2422_v23 }
 0x635   : > { %v2611_v11 = vadd.f32 %v2569_v56, %v2355_v32  ;;  %v4896_v41 = vpop.eup %4895  ;;  %v7604_v60 = vadd.f32 %v1901_v44, %v9025_v46 }
 0x636   : > { %v2517_v9 = vadd.f32 1.0, %v4896_v41 }
 0x637   : > { %9026 = vst [vmem:[#allocation7_spill] sm:$0xff] %v7604_v60  ;;  %v7622_v41 = vadd.f32 0.25, %v7604_v60 }
 0x638   : > { %2854 = vrot.lane.b32.xlu2 %v2770_v22, %s5058_s22  ;;  %2852 = vrot.lane.b32.xlu1 %v2769_v50, %s5058_s22  ;;  %v2003_v50 = vmax.f32 %v7475_v35, 0.0  ;;  %v2038_v35 = vand.u32 2147483647, %v7599_v54 }
 0x639   : > { %3396 = vrot.lane.b32.xlu0 %v7491_v18, %s5056_s12  ;;  %v2516_v18 = vadd.f32 1.0, %v4894_v59  ;;  %v4898_v28 = vpop.eup %4897  ;;  %v9028_v59 = vld [vmem:[#allocation107_spill] sm:$0xff] }
 0x63a   : > { %v7590_v20 = vpop.permute.xlu1 %3658  ;;  %v7592_v40 = vpop.permute.xlu2 %3500  ;;  %v2164_v32 = vadd.f32 1.0, %v4898_v28  ;;  %v2940_v14 = vadd.f32 %v2875_v21, %v9028_v59  ;;  %v2070_v28 = vsub.f32 0.0, %v2038_v35 }
 0x63b   : > { %9021 = vst [vmem:[#allocation43_spill] sm:$0xff] %v7590_v20  ;;  %v7595_v22 = vpop.permute.xlu0 %3614  ;;  %v2643_v20 = vmax.f32 %v2611_v11, 0.001  ;;  %v4900_v56 = vpop.eup %4899  ;;  %4901 = vlog2.f32 %v2516_v18 }
 0x63c   : > { %9022 = vst [vmem:[#allocation8_spill] sm:$0xff] %v7592_v40  ;;  %v7601_v40 = vadd.f32 %v2217_v12, %v2003_v50  ;;  %v9029_v12 = vld [vmem:[#allocation108_spill] sm:$0xff]  ;;  %4903 = vlog2.f32 %v2517_v9  ;;  %v2165_v18 = vadd.f32 1.0, %v4900_v56  ;;  %v2126_v35 = vmul.f32 1.442695, %v2070_v28 }
 0x63d   : > { %9023 = vst [vmem:[#allocation143_spill] sm:$0xff] %v7595_v22  ;;  %v7606_v22 = vadd.f32 0.25, %v1901_v44  ;;  %v7627_v50 = vadd.f32 %v7485_v25, %v9029_v12  ;;  %4905 = vlog2.f32 %v2164_v32 }
 0x63e   : > { %9024 = vst [vmem:[#allocation144_spill] sm:$0xff] %v7601_v40  ;;  %4907 = vpow2.f32 %v2478_v51 }
 0x63f   : > { %4909 = vlog2.f32 %v2165_v18 }
 0x640   : > { %3352 = vrot.lane.b32.xlu2 %v7537_v47, %s5056_s12  ;;  %3350 = vrot.lane.b32.xlu1 %v7410_v24, %s5056_s12  ;;  %v8732_v24 = vmax.f32 %v7601_v40, 0.001  ;;  %4911 = vpow2.f32 %v2126_v35  ;;  %v2356_v40 = vmax.f32 %v7514_v26, 0.0 }
 0x641   : > { %3638 = vrot.lane.b32.xlu0 %v2643_v20, %s5059_s13  ;;  %v2391_v20 = vand.u32 2147483647, %v7606_v22  ;;  %v4902_v25 = vpop.eup %4901 }
 0x642   : > { %v2877_v7 = vpop.permute.xlu1 %2876  ;;  %v7614_v33 = vpop.permute.xlu2 %3624 }
 0x643   : > { %9027 = vst [vmem:[#allocation145_spill] sm:$0xff] %v7614_v33  ;;  %v7618_v11 = vadd.f32 %v2877_v7, %v6989_v43  ;;  %v2833_v47 = vpop.permute.xlu0 %2832  ;;  %v9030_v33 = vld [vmem:[#allocation49_spill] sm:$0xff]  ;;  %v2423_v9 = vsub.f32 0.0, %v2391_v20  ;;  %v4904_v32 = vpop.eup %4903  ;;  %v2357_v43 = vmax.f32 %v7524_v17, 0.0  ;;  %v2004_v17 = vmax.f32 %v7519_v13, 0.0 }
 0x644   : > { %v7630_v23 = vadd.f32 %v2833_v47, %v7003_v37  ;;  %v2771_v60 = vmul.f32 %v9030_v33, %v8732_v24  ;;  %v2039_v47 = vand.u32 2147483647, %v7622_v41  ;;  %v4906_v28 = vpop.eup %4905  ;;  %v2005_v13 = vmax.f32 %v7547_v31, 0.0 }
 0x645   : > { %v2957_v21 = vpack.c.bf16 %v7618_v11, %v2940_v14  ;;  %v2480_v20 = vmul.f32 1.442695, %v2423_v9  ;;  %v2219_v26 = vmul.f32 0.6931472, %v4906_v28 }
 0x646   : > { %v2946_v7 = vpack.c.bf16 %v7630_v23, %v7627_v50 }
 0x647   : > { %4446 = vmatmul.msk.bf16.gmra.mxu3 %vm2978_vm1, %v2957_v21  ;;  %v4908_v21 = vpop.eup %4907  ;;  %4913 = vpow2.f32 %v2480_v20 }
 0x648   : > { %3518 = vrot.lane.b32.xlu2 %v1901_v44, %s5059_s13  ;;  %3516 = vrot.lane.b32.xlu1 %v7570_v3, %s5059_s13  ;;  %v7657_v3 = vld [vmem:[%s8581_s7] ss:$0 sm:$0xff]  ;;  %v2071_v44 = vsub.f32 0.0, %v2039_v47  ;;  %v4910_v24 = vpop.eup %4909 }
 0x649   : > { %4435 = vmatmul.msk.bf16.gmra.mxu2 %vm2978_vm1, %v2946_v7  ;;  %2856 = vrot.lane.b32.xlu0 %v2771_v60, %s5058_s22  ;;  %v2571_v60 = vmul.f32 0.6931472, %v4902_v25  ;;  %v2573_v7 = vmul.f32 0.6931472, %v4904_v32  ;;  %v7677_v32 = vadd.f32 %v7563_v2, %v7033_v45 }
 0x64a   : > { %v7646_v56 = vpop.permute.xlu1 %3616  ;;  %v7648_v33 = vpop.permute.xlu2 %2842  ;;  %v2128_v47 = vmul.f32 1.442695, %v2071_v44  ;;  %v7691_v44 = vadd.f32 %v2219_v26, %v2004_v17 }
 0x64b   : > { %9031 = vst [vmem:[#allocation107_spill] sm:$0xff] %v7646_v56  ;;  %v7650_v51 = vpop.permute.xlu0 %3496  ;;  %v9033_v56 = vld [vmem:[#allocation11_spill] sm:$0xff]  ;;  %v2613_v35 = vadd.f32 %v2573_v7, %v2357_v43 }
 0x64c   : > { %9032 = vst [vmem:[#allocation49_spill] sm:$0xff] %v7650_v51  ;;  %v9034_v5 = vmax.f32 %v9033_v56, 0.001  ;;  %v4912_v56 = vpop.eup %4911 }
 0x64d   : > { %v4914_v20 = vpop.eup %4913 }
 0x64e   : > { %v3036_v18 = vpop.f32.mrf.mxu2  ;;  %v3948_v12 = vsel %vm2978_vm1, %v6698_v4, %v9034_v5  ;;  %v2612_v4 = vadd.f32 %v2571_v60, %v2356_v40  ;;  %v2518_v5 = vadd.f32 1.0, %v4908_v21  ;;  %v2166_v21 = vadd.f32 1.0, %v4912_v56 }
 0x64f   : > { %v3037_v51 = vadd.f32 %v7657_v3, %v3036_v18  ;;  %v2519_v18 = vadd.f32 1.0, %v4914_v20  ;;  %v2358_v20 = vmax.f32 %v7579_v53, 0.0 }
 0x650   : > { %3400 = vrot.lane.b32.xlu2 %v2940_v14, %s5056_s12  ;;  %3398 = vrot.lane.b32.xlu1 %v7488_v34, %s5056_s12  ;;  %v2221_v34 = vmul.f32 0.6931472, %v4910_v24  ;;  %v2644_v2 = vmax.f32 %v2612_v4, 0.001 }
 0x651   : > { %v3116_v25 = vmul.f32 0.5, %v3037_v51  ;;  %3244 = vst [vmem:[%s7669_s19] sm:$0xff] %v3037_v51  ;;  %3354 = vrot.lane.b32.xlu0 %v7540_v0, %s5056_s12 }
 0x652   : > { %v2835_v14 = vpop.permute.xlu1 %2834  ;;  %v3341_v9 = vpop.permute.xlu2 %3340  ;;  %v7693_v60 = vadd.f32 %v2221_v34, %v2005_v13 }
 0x653   : > { %4915 = vtanh.f32 %v3116_v25  ;;  %v7680_v51 = vadd.f32 %v2835_v14, %v7063_v55  ;;  %v3981_v0 = vsel %vm3980_vm10, %v3948_v12, %v3341_v9  ;;  %v7683_v40 = vpop.permute.xlu0 %3620  ;;  %v2645_v12 = vmax.f32 %v2613_v35, 0.001 }
 0x654   : > { %4917 = vpow2.f32 %v2128_v47  ;;  %v4014_v43 = vsel %vm4013_vm11, %v3981_v0, %v7049_v63  ;;  %9035 = vst [vmem:[#allocation11_spill] sm:$0xff] %v7693_v60  ;;  %v8737_v17 = vmax.f32 %v7693_v60, 0.001  ;;  %v9037_v0 = vld [vmem:[#allocation50_spill] sm:$0xff] }
 0x655   : > { %v2947_v24 = vpack.c.bf16 %v7677_v32, %v7680_v51  ;;  %4143 = vst [vmem:[%s7669_s19 + $0x10] sm:$0xff] %v4014_v43  ;;  %4919 = vlog2.f32 %v2518_v5  ;;  %v8739_v5 = vmax.f32 %v7691_v44, 0.001  ;;  %v9122_v60 = vld [vmem:[#allocation126_spill] sm:$0xff] }
 0x656   : > { %v3038_v28 = vpop.f32.mrf.mxu2  ;;  %4921 = vlog2.f32 %v2166_v21 }
 0x657   : > { %v3039_v31 = vadd.f32 %v7657_v3, %v3038_v28  ;;  %v2772_v13 = vmul.f32 %v9037_v0, %v8739_v5 }
 0x658   : > { %3642 = vrot.lane.b32.xlu2 %v2645_v12, %s5059_s13  ;;  %3640 = vrot.lane.b32.xlu1 %v2644_v2, %s5059_s13 }
 0x659   : > { %v4916_v63 = vpop.eup %4915  ;;  %v3117_v7 = vmul.f32 0.5, %v3039_v31  ;;  %3245 = vst [vmem:[%s7669_s19 + $0x20] sm:$0xff] %v3039_v31  ;;  %4436 = vmatmul.msk.bf16.gmra.mxu2 %vm2978_vm1, %v2947_v24  ;;  %3762 = vrot.lane.b32.xlu0 %v8986_v15, %s5058_s22  ;;  %v9036_v15 = vld [vmem:[#allocation48_spill] sm:$0xff] }
 0x65a   : > { %v4918_v47 = vpop.eup %4917  ;;  %v3180_v25 = vadd.f32 1.0, %v4916_v63  ;;  %v7702_v4 = vpop.permute.xlu1 %3498  ;;  %v2773_v56 = vmul.f32 %v9036_v15, %v8737_v17 }
 0x65b   : > { %v7704_v26 = vpop.permute.xlu2 %3506  ;;  %4923 = vtanh.f32 %v3117_v7  ;;  %v2839_v14 = vpop.permute.xlu0 %2838  ;;  %v2167_v34 = vadd.f32 1.0, %v4918_v47 }
 0x65c   : > { %v4920_v9 = vpop.eup %4919  ;;  %v3212_v35 = vmul.f32 0.5, %v3180_v25  ;;  %4925 = vlog2.f32 %v2519_v18  ;;  %v2006_v25 = vmax.f32 %v7599_v54, 0.0 }
 0x65d   : > { %v2575_v43 = vmul.f32 0.6931472, %v4920_v9  ;;  %v4922_v24 = vpop.eup %4921  ;;  %4927 = vlog2.f32 %v2167_v34 }
 0x65e   : > { %3276 = vst [vmem:[%s7669_s19 + $0x8] sm:$0xff] %v3212_v35  ;;  %v2223_v7 = vmul.f32 0.6931472, %v4922_v24 }
 0x65f   : > { %v2614_v18 = vadd.f32 %v2575_v43, %v2358_v20  ;;  %v2007_v20 = vmax.f32 %v7622_v41, 0.0 }
 0x660   : > { %2860 = vrot.lane.b32.xlu2 %v2773_v56, %s5058_s22  ;;  %2858 = vrot.lane.b32.xlu1 %v2772_v13, %s5058_s22  ;;  %v7729_v15 = vadd.f32 %v2223_v7, %v2006_v25  ;;  %v2359_v56 = vmax.f32 %v7606_v22, 0.0 }
 0x661   : > { %v4924_v2 = vpop.eup %4923  ;;  %3402 = vrot.lane.b32.xlu0 %v7618_v11, %s5056_s12  ;;  %v2646_v34 = vmax.f32 %v2614_v18, 0.001 }
 0x662   : > { %v3181_v28 = vadd.f32 1.0, %v4924_v2  ;;  %v7720_v12 = vpop.permute.xlu1 %3622  ;;  %v4926_v31 = vpop.eup %4925  ;;  %v7741_v2 = vadd.f32 %v2839_v14, %v7109_v29 }
 0x663   : > { %v7722_v21 = vpop.permute.xlu2 %3630  ;;  %v7724_v63 = vpop.permute.xlu0 %3502  ;;  %v2577_v9 = vmul.f32 0.6931472, %v4926_v31 }
 0x664   : > { %v3213_v47 = vmul.f32 0.5, %v3181_v28  ;;  %v4928_v35 = vpop.eup %4927 }
 0x665   : > { %v2615_v43 = vadd.f32 %v2577_v9, %v2359_v56  ;;  %v2225_v24 = vmul.f32 0.6931472, %v4928_v35 }
 0x666   : > { %3277 = vst [vmem:[%s7669_s19 + $0x28] sm:$0xff] %v3213_v47  ;;  %v3041_v53 = vpop.f32.mrf.mxu2  ;;  %v9038_v47 = vld [vmem:[#allocation51_spill] sm:$0xff] }
 0x667   : > { %v3042_v11 = vadd.f32 %v7657_v3, %v3041_v53  ;;  %v2647_v18 = vmax.f32 %v2615_v43, 0.001  ;;  %v7752_v7 = vadd.f32 %v2225_v24, %v2007_v20  ;;  %v9041_v20 = vld [vmem:[#allocation114_spill] sm:$0xff] }
 0x668   : > { %3760 = vrot.lane.b32.xlu2 %v8976_v19, %s5058_s22  ;;  %3356 = vrot.lane.b32.xlu1 %v7627_v50, %s5056_s12  ;;  %v8740_v50 = vmax.f32 %v7729_v15, 0.001 }
 0x669   : > { %v3118_v0 = vmul.f32 0.5, %v3042_v11  ;;  %3246 = vst [vmem:[%s7669_s19 + $0x40] sm:$0xff] %v3042_v11  ;;  %3644 = vrot.lane.b32.xlu0 %v2646_v34, %s5059_s13  ;;  %v9039_v11 = vld [vmem:[#allocation25_spill] sm:$0xff] }
 0x66a   : > { %v2841_v54 = vpop.permute.xlu1 %2840  ;;  %v2774_v25 = vmul.f32 %v9038_v47, %v8740_v50  ;;  %v9040_v34 = vmax.f32 %v9039_v11, 0.001 }
 0x66b   : > { %v7738_v13 = vpop.permute.xlu2 %2848  ;;  %4929 = vtanh.f32 %v3118_v0  ;;  %v7744_v22 = vadd.f32 %v2841_v54, %v7174_v6  ;;  %v7746_v19 = vpop.permute.xlu0 %3626 }
 0x66c   : > { %v3951_v56 = vsel %vm2978_vm1, %v6745_v61, %v9040_v34  ;;  %v9046_v34 = vld [vmem:[#allocation5_spill] sm:$0xff] }
 0x66d   : > { %v2948_v28 = vpack.c.bf16 %v7744_v22, %v7741_v2 }
 0x66e   : > { %v3043_v31 = vpop.f32.mrf.mxu2 }
 0x66f   : > { %v3044_v14 = vadd.f32 %v7657_v3, %v3043_v31  ;;  %4437 = vmatmul.msk.bf16.gmra.mxu2 %vm2978_vm1, %v2948_v28  ;;  %v9042_v31 = vld [vmem:[#allocation55_spill] sm:$0xff] }
 0x670   : > { %3358 = vrot.lane.b32.xlu2 %v7630_v23, %s5056_s12  ;;  %3646 = vrot.lane.b32.xlu1 %v2647_v18, %s5059_s13  ;;  %v8738_v23 = vmax.f32 %v7752_v7, 0.001 }
 0x671   : > { %v4930_v41 = vpop.eup %4929  ;;  %v3119_v53 = vmul.f32 0.5, %v3044_v14  ;;  %3247 = vst [vmem:[%s7669_s19 + $0x60] sm:$0xff] %v3044_v14  ;;  %2862 = vrot.lane.b32.xlu0 %v2774_v25, %s5058_s22 }
 0x672   : > { %v3182_v9 = vadd.f32 1.0, %v4930_v41  ;;  %v7764_v35 = vpop.permute.xlu1 %3504  ;;  %v2775_v18 = vmul.f32 %v9042_v31, %v8738_v23  ;;  %v9103_v23 = vld [vmem:[#allocation115_spill] sm:$0xff] }
 0x673   : > { %v3347_v0 = vpop.permute.xlu2 %3346  ;;  %4931 = vtanh.f32 %v3119_v53  ;;  %v2845_v43 = vpop.permute.xlu0 %2844  ;;  %v9043_v53 = vld [vmem:[#allocation120_spill] sm:$0xff]  ;;  %v9104_v5 = vmax.f32 %v9103_v23, 0.001 }
 0x674   : > { %v3984_v54 = vsel %vm3980_vm10, %v3951_v56, %v3347_v0  ;;  %v3214_v24 = vmul.f32 0.5, %v3182_v9  ;;  %v7783_v14 = vadd.f32 %v2845_v43, %v7214_v10  ;;  %v7793_v9 = vadd.f32 %v7648_v33, %v9043_v53 }
 0x675   : > { %v4017_v28 = vsel %vm4013_vm11, %v3984_v54, %v9041_v20 }
 0x676   : > { %4149 = vst [vmem:[%s7669_s19 + $0x70] sm:$0xff] %v4017_v28  ;;  %v9048_v28 = vld [vmem:[#allocation109_spill] sm:$0xff] }
 0x677   : > { %3278 = vst [vmem:[%s7669_s19 + $0x48] sm:$0xff] %v3214_v24  ;;  %v9047_v24 = vld [vmem:[#allocation57_spill] sm:$0xff]  ;;  %v9049_v31 = vmax.f32 %v9048_v28, 0.001 }
 0x678   : > { %3766 = vrot.lane.b32.xlu2 %v8998_v39, %s5058_s22  ;;  %2864 = vrot.lane.b32.xlu1 %v2775_v18, %s5058_s22  ;;  %v9044_v39 = vld [vmem:[#allocation28_spill] sm:$0xff] }
 0x679   : > { %v4932_v61 = vpop.eup %4931  ;;  %3360 = vrot.lane.b32.xlu0 %v7680_v51, %s5056_s12  ;;  %v9045_v11 = vmax.f32 %v9044_v39, 0.001  ;;  %v2949_v51 = vpack.c.bf16 %v7783_v14, %v7793_v9  ;;  %v3975_v18 = vsel %vm2978_vm1, %v6837_v52, %v9049_v31  ;;  %v9053_v52 = vld [vmem:[#allocation19_spill] sm:$0xff]  ;;  %v9057_v31 = vld [vmem:[#allocation10_spill] sm:$0xff] }
 0x67a   : > { %v3183_v47 = vadd.f32 1.0, %v4932_v61  ;;  %v7787_v25 = vpop.permute.xlu1 %3628 }
 0x67b   : > { %v7789_v41 = vpop.permute.xlu2 %3512  ;;  %v3949_v56 = vsel %vm2978_vm1, %v9046_v34, %v9045_v11  ;;  %v3343_v0 = vpop.permute.xlu0 %3342  ;;  %v9051_v11 = vld [vmem:[#allocation21_spill] sm:$0xff]  ;;  %v9054_v34 = vmax.f32 %v9053_v52, 0.001 }
 0x67c   : > { %v3215_v54 = vmul.f32 0.5, %v3183_v47  ;;  %v3982_v43 = vsel %vm3980_vm10, %v3949_v56, %v3343_v0 }
 0x67d   : > { %v4015_v20 = vsel %vm4013_vm11, %v3982_v43, %v9047_v24  ;;  %v3950_v56 = vsel %vm2978_vm1, %v6729_v30, %v9054_v34  ;;  %v7838_v43 = vadd.f32 %v7738_v13, %v7268_v16  ;;  %v9056_v13 = vld [vmem:[#allocation17_spill] sm:$0xff] }
 0x67e   : > { %3279 = vst [vmem:[%s7669_s19 + $0x68] sm:$0xff] %v3215_v54 }
 0x67f   : > { %4145 = vst [vmem:[%s7669_s19 + $0x30] sm:$0xff] %v4015_v20  ;;  %4438 = vmatmul.msk.bf16.gmra.mxu2 %vm2978_vm1, %v2949_v51 }
 0x680   : > { %3772 = vrot.lane.b32.xlu2 %v9019_v62, %s5058_s22  ;;  %3764 = vrot.lane.b32.xlu1 %v8988_v57, %s5058_s22  ;;  %v9052_v57 = vld [vmem:[#allocation13_spill] sm:$0xff] }
 0x681   : > { %3768 = vrot.lane.b32.xlu0 %v9008_v8, %s5058_s22 }
 0x682   : > { %v2847_v33 = vpop.permute.xlu1 %2846 }
 0x683   : > { %v3395_v61 = vpop.permute.xlu2 %3394  ;;  %v7818_v39 = vpop.permute.xlu0 %3508  ;;  %v7828_v8 = vadd.f32 %v2847_v33, %v7254_v36 }
 0x684   : > { %v4008_v47 = vsel %vm3980_vm10, %v3975_v18, %v3395_v61  ;;  %9050 = vst [vmem:[#allocation48_spill] sm:$0xff] %v7818_v39  ;;  %v9058_v18 = vld [vmem:[#allocation14_spill] sm:$0xff] }
 0x685   : > { %v4041_v62 = vsel %vm4013_vm11, %v4008_v47, %v9051_v11  ;;  %v2950_v30 = vpack.c.bf16 %v7838_v43, %v7828_v8 }
 0x686   : > { %4197 = vst [vmem:[%s7669_s19 + $0x370] sm:$0xff] %v4041_v62 }
 0x688   : > { %3778 = vrot.lane.b32.xlu2 %v9052_v57, %s5058_s22  ;;  %3770 = vrot.lane.b32.xlu1 %v9010_v58, %s5058_s22 }
 0x689   : > { %3774 = vrot.lane.b32.xlu0 %v9025_v46, %s5058_s22  ;;  %v9055_v46 = vld [vmem:[#allocation113_spill] sm:$0xff] }
 0x68a   : > { %v3345_v0 = vpop.permute.xlu1 %3344  ;;  %v3046_v54 = vpop.f32.mrf.mxu2 }
 0x68b   : > { %v3983_v51 = vsel %vm3980_vm10, %v3950_v56, %v3345_v0  ;;  %v3047_v58 = vadd.f32 %v7657_v3, %v3046_v54  ;;  %v7842_v24 = vpop.permute.xlu2 %3636  ;;  %v7844_v20 = vpop.permute.xlu0 %3632 }
 0x68c   : > { %v4016_v33 = vsel %vm4013_vm11, %v3983_v51, %v9055_v46  ;;  %v9059_v46 = vld [vmem:[#allocation65_spill] sm:$0xff] }
 0x68d   : > { %4147 = vst [vmem:[%s7669_s19 + $0x50] sm:$0xff] %v4016_v33  ;;  %v3120_v28 = vmul.f32 0.5, %v3047_v58  ;;  %v9060_v33 = vld [vmem:[#allocation16_spill] sm:$0xff] }
 0x68e   : > { %3248 = vst [vmem:[%s7669_s19 + $0x80] sm:$0xff] %v3047_v58 }
 0x68f   : > { %4933 = vtanh.f32 %v3120_v28  ;;  %4439 = vmatmul.msk.bf16.gmra.mxu2 %vm2978_vm1, %v2950_v30  ;;  %v9061_v30 = vld [vmem:[#allocation18_spill] sm:$0xff] }
 0x690   : > { %3784 = vrot.lane.b32.xlu2 %v9056_v13, %s5058_s22  ;;  %3776 = vrot.lane.b32.xlu1 %v9057_v31, %s5058_s22  ;;  %v9062_v28 = vld [vmem:[#allocation30_spill] sm:$0xff] }
 0x691   : > { %3780 = vrot.lane.b32.xlu0 %v9058_v18, %s5058_s22  ;;  %v9063_v13 = vmax.f32 %v9062_v28, 0.001 }
 0x692   : > { %v7859_v61 = vpop.permute.xlu1 %3510  ;;  %v3048_v47 = vpop.f32.mrf.mxu2 }
 0x693   : > { %v3049_v11 = vadd.f32 %v7657_v3, %v3048_v47  ;;  %v7862_v62 = vpop.permute.xlu2 %2854  ;;  %v7864_v57 = vpop.permute.xlu0 %2850  ;;  %v3974_v31 = vsel %vm2978_vm1, %v6762_v27, %v9063_v13 }
 0x694   : > { %v3101_v52 = vpop.f32.mrf.mxu3 }
 0x695   : > { %v4934_v34 = vpop.eup %4933  ;;  %v3121_v56 = vmul.f32 0.5, %v3049_v11  ;;  %3249 = vst [vmem:[%s7669_s19 + $0xa0] sm:$0xff] %v3049_v11  ;;  %v3102_v0 = vadd.f32 %v7657_v3, %v3101_v52  ;;  %v9064_v11 = vld [vmem:[#allocation111_spill] sm:$0xff] }
 0x696   : > { %v3184_v54 = vadd.f32 1.0, %v4934_v34  ;;  %v9065_v52 = vmax.f32 %v9064_v11, 0.001 }
 0x697   : > { %4935 = vtanh.f32 %v3121_v56  ;;  %v3142_v51 = vmul.f32 0.5, %v3102_v0  ;;  %3270 = vst [vmem:[%s7669_s19 + $0x340] sm:$0xff] %v3102_v0  ;;  %v9066_v0 = vld [vmem:[#allocation106_spill] sm:$0xff] }
 0x698   : > { %v3216_v58 = vmul.f32 0.5, %v3184_v54  ;;  %3854 = vrot.lane.b32.xlu2 %v9059_v46, %s5060_s20  ;;  %3782 = vrot.lane.b32.xlu1 %v9060_v33, %s5058_s22  ;;  %v3954_v34 = vsel %vm2978_vm1, %v6884_v38, %v9065_v52  ;;  %v9067_v54 = vmax.f32 %v9066_v0, 0.001  ;;  %v9068_v46 = vld [vmem:[#allocation116_spill] sm:$0xff] }
 0x699   : > { %4937 = vtanh.f32 %v3142_v51  ;;  %3786 = vrot.lane.b32.xlu0 %v9061_v30, %s5058_s22  ;;  %v9070_v0 = vld [vmem:[#allocation72_spill] sm:$0xff] }
 0x69a   : > { %3280 = vst [vmem:[%s7669_s19 + $0x88] sm:$0xff] %v3216_v58  ;;  %v3393_v18 = vpop.permute.xlu1 %3392  ;;  %v3952_v51 = vsel %vm2978_vm1, %v6806_v49, %v9067_v54  ;;  %v9072_v54 = vld [vmem:[#allocation70_spill] sm:$0xff] }
 0x69b   : > { %v4007_v47 = vsel %vm3980_vm10, %v3974_v31, %v3393_v18  ;;  %v3353_v56 = vpop.permute.xlu2 %3352  ;;  %v3349_v58 = vpop.permute.xlu0 %3348  ;;  %v9069_v31 = vld [vmem:[#allocation112_spill] sm:$0xff] }
 0x69c   : > { %v4040_v27 = vsel %vm4013_vm11, %v4007_v47, %v9068_v46  ;;  %v3987_v33 = vsel %vm3980_vm10, %v3954_v34, %v3353_v56  ;;  %v3985_v30 = vsel %vm3980_vm10, %v3952_v51, %v3349_v58  ;;  %v3103_v28 = vpop.f32.mrf.mxu3 }
 0x69d   : > { %v4936_v13 = vpop.eup %4935  ;;  %4195 = vst [vmem:[%s7669_s19 + $0x350] sm:$0xff] %v4040_v27  ;;  %v4020_v38 = vsel %vm4013_vm11, %v3987_v33, %v7336_v1  ;;  %v4018_v18 = vsel %vm4013_vm11, %v3985_v30, %v9069_v31  ;;  %v3104_v49 = vadd.f32 %v7657_v3, %v3103_v28  ;;  %v9071_v1 = vld [vmem:[#allocation66_spill] sm:$0xff]  ;;  %v9075_v31 = vld [vmem:[#allocation84_spill] sm:$0xff] }
 0x69e   : > { %v3185_v11 = vadd.f32 1.0, %v4936_v13  ;;  %4155 = vst [vmem:[%s7669_s19 + $0xd0] sm:$0xff] %v4020_v38 }
 0x69f   : > { %v4938_v47 = vpop.eup %4937  ;;  %4151 = vst [vmem:[%s7669_s19 + $0x90] sm:$0xff] %v4018_v18  ;;  %v3143_v52 = vmul.f32 0.5, %v3104_v49  ;;  %v9076_v18 = vld [vmem:[#allocation69_spill] sm:$0xff] }
 0x6a0   : > { %v3217_v34 = vmul.f32 0.5, %v3185_v11  ;;  %v3206_v56 = vadd.f32 1.0, %v4938_v47  ;;  %3271 = vst [vmem:[%s7669_s19 + $0x360] sm:$0xff] %v3104_v49  ;;  %3860 = vrot.lane.b32.xlu2 %v9070_v0, %s5060_s20  ;;  %3852 = vrot.lane.b32.xlu1 %v9071_v1, %s5060_s20  ;;  %v9077_v49 = vld [vmem:[#allocation71_spill] sm:$0xff] }
 0x6a1   : > { %4939 = vtanh.f32 %v3143_v52  ;;  %3856 = vrot.lane.b32.xlu0 %v9072_v54, %s5060_s20  ;;  %v7926_v52 = vadd.f32 %v7864_v57, %v7333_v42 }
 0x6a2   : > { %3281 = vst [vmem:[%s7669_s19 + $0xa8] sm:$0xff] %v3217_v34  ;;  %v3238_v51 = vmul.f32 0.5, %v3206_v56  ;;  %v7909_v58 = vpop.permute.xlu1 %3634  ;;  %v9078_v56 = vld [vmem:[#allocation119_spill] sm:$0xff] }
 0x6a3   : > { %v7911_v46 = vpop.permute.xlu2 %3518  ;;  %v7913_v27 = vpop.permute.xlu0 %3514  ;;  %v9079_v0 = vmax.f32 %v9078_v56, 0.001 }
 0x6a4   : > { %9073 = vst [vmem:[#allocation50_spill] sm:$0xff] %v7911_v46  ;;  %v3106_v33 = vpop.f32.mrf.mxu3 }
 0x6a5   : > { %9074 = vst [vmem:[#allocation51_spill] sm:$0xff] %v7913_v27  ;;  %v3107_v30 = vadd.f32 %v7657_v3, %v3106_v33  ;;  %v3978_v1 = vsel %vm2978_vm1, %v9028_v59, %v9079_v0  ;;  %v9106_v27 = vld [vmem:[#allocation61_spill] sm:$0xff] }
 0x6a6   : > { %3302 = vst [vmem:[%s7669_s19 + $0x348] sm:$0xff] %v3238_v51  ;;  %v9080_v51 = vld [vmem:[#allocation110_spill] sm:$0xff] }
 0x6a7   : > { %v4940_v28 = vpop.eup %4939  ;;  %v3144_v13 = vmul.f32 0.5, %v3107_v30  ;;  %3272 = vst [vmem:[%s7669_s19 + $0x380] sm:$0xff] %v3107_v30  ;;  %v9081_v33 = vmax.f32 %v9080_v51, 0.001  ;;  %v9082_v30 = vld [vmem:[#allocation15_spill] sm:$0xff] }
 0x6a8   : > { %v3207_v38 = vadd.f32 1.0, %v4940_v28  ;;  %3866 = vrot.lane.b32.xlu2 %v9075_v31, %s5060_s20  ;;  %3858 = vrot.lane.b32.xlu1 %v9076_v18, %s5060_s20 }
 0x6a9   : > { %4941 = vtanh.f32 %v3144_v13  ;;  %3862 = vrot.lane.b32.xlu0 %v9077_v49, %s5060_s20  ;;  %v3976_v28 = vsel %vm2978_vm1, %v9082_v30, %v9081_v33  ;;  %v9083_v49 = vld [vmem:[#allocation35_spill] sm:$0xff]  ;;  %v9086_v33 = vld [vmem:[#allocation85_spill] sm:$0xff]  ;;  %v9087_v30 = vld [vmem:[#allocation88_spill] sm:$0xff] }
 0x6aa   : > { %v3239_v11 = vmul.f32 0.5, %v3207_v38  ;;  %v2853_v47 = vpop.permute.xlu1 %2852 }
 0x6ab   : > { %v7929_v34 = vadd.f32 %v2853_v47, %v7382_v48  ;;  %v3401_v54 = vpop.permute.xlu2 %3400  ;;  %v3397_v13 = vpop.permute.xlu0 %3396  ;;  %v9084_v47 = vld [vmem:[#allocation32_spill] sm:$0xff] }
 0x6ac   : > { %3303 = vst [vmem:[%s7669_s19 + $0x368] sm:$0xff] %v3239_v11  ;;  %v4011_v57 = vsel %vm3980_vm10, %v3978_v1, %v3401_v54  ;;  %v4009_v38 = vsel %vm3980_vm10, %v3976_v28, %v3397_v13  ;;  %v3108_v31 = vpop.f32.mrf.mxu3  ;;  %v9085_v54 = vld [vmem:[#allocation82_spill] sm:$0xff]  ;;  %v9088_v13 = vld [vmem:[#allocation20_spill] sm:$0xff] }
 0x6ad   : > { %v2951_v18 = vpack.c.bf16 %v7929_v34, %v7926_v52  ;;  %v4044_v59 = vsel %vm4013_vm11, %v4011_v57, %v9083_v49  ;;  %v4042_v56 = vsel %vm4013_vm11, %v4009_v38, %v9084_v47  ;;  %v3109_v0 = vadd.f32 %v7657_v3, %v3108_v31  ;;  %v9090_v38 = vld [vmem:[#allocation12_spill] sm:$0xff] }
 0x6ae   : > { %4203 = vst [vmem:[%s7669_s19 + $0x3d0] sm:$0xff] %v4044_v59  ;;  %v9089_v57 = vmax.f32 %v9088_v13, 0.001  ;;  %v9093_v13 = vld [vmem:[#allocation89_spill] sm:$0xff] }
 0x6af   : > { %v4942_v51 = vpop.eup %4941  ;;  %4199 = vst [vmem:[%s7669_s19 + $0x390] sm:$0xff] %v4042_v56  ;;  %v3145_v11 = vmul.f32 0.5, %v3109_v0  ;;  %4440 = vmatmul.msk.bf16.gmra.mxu2 %vm2978_vm1, %v2951_v18 }
 0x6b0   : > { %v3208_v1 = vadd.f32 1.0, %v4942_v51  ;;  %3273 = vst [vmem:[%s7669_s19 + $0x3a0] sm:$0xff] %v3109_v0  ;;  %3872 = vrot.lane.b32.xlu2 %v9085_v54, %s5060_s20  ;;  %3864 = vrot.lane.b32.xlu1 %v9086_v33, %s5060_s20  ;;  %v3953_v31 = vsel %vm2978_vm1, %v9090_v38, %v9089_v57  ;;  %v9091_v51 = vld [vmem:[#allocation122_spill] sm:$0xff]  ;;  %v9094_v57 = vld [vmem:[#allocation81_spill] sm:$0xff] }
 0x6b1   : > { %4943 = vtanh.f32 %v3145_v11  ;;  %3868 = vrot.lane.b32.xlu0 %v9087_v30, %s5060_s20  ;;  %v9092_v30 = vld [vmem:[#allocation90_spill] sm:$0xff] }
 0x6b2   : > { %v3240_v28 = vmul.f32 0.5, %v3208_v1  ;;  %v3351_v18 = vpop.permute.xlu1 %3350  ;;  %v3051_v49 = vpop.f32.mrf.mxu2 }
 0x6b3   : > { %v3986_v59 = vsel %vm3980_vm10, %v3953_v31, %v3351_v18  ;;  %v3052_v47 = vadd.f32 %v7657_v3, %v3051_v49  ;;  %v7965_v56 = vpop.permute.xlu2 %3642  ;;  %v7967_v0 = vpop.permute.xlu0 %3638 }
 0x6b4   : > { %3304 = vst [vmem:[%s7669_s19 + $0x388] sm:$0xff] %v3240_v28  ;;  %v4019_v11 = vsel %vm4013_vm11, %v3986_v59, %v9091_v51 }
 0x6b5   : > { %4153 = vst [vmem:[%s7669_s19 + $0xb0] sm:$0xff] %v4019_v11  ;;  %v3122_v1 = vmul.f32 0.5, %v3052_v47  ;;  %v9096_v11 = vld [vmem:[#allocation39_spill] sm:$0xff] }
 0x6b6   : > { %3250 = vst [vmem:[%s7669_s19 + $0xc0] sm:$0xff] %v3052_v47  ;;  %v9095_v47 = vld [vmem:[#allocation45_spill] sm:$0xff] }
 0x6b7   : > { %v4944_v54 = vpop.eup %4943  ;;  %4945 = vtanh.f32 %v3122_v1  ;;  %v7985_v51 = vadd.f32 %v7862_v62, %v9095_v47  ;;  %v9098_v62 = vld [vmem:[#allocation91_spill] sm:$0xff] }
 0x6b8   : > { %v3209_v33 = vadd.f32 1.0, %v4944_v54  ;;  %3878 = vrot.lane.b32.xlu2 %v9092_v30, %s5060_s20  ;;  %3870 = vrot.lane.b32.xlu1 %v9093_v13, %s5060_s20 }
 0x6b9   : > { %3874 = vrot.lane.b32.xlu0 %v9094_v57, %s5060_s20 }
 0x6ba   : > { %v3241_v28 = vmul.f32 0.5, %v3209_v33  ;;  %v7980_v38 = vpop.permute.xlu1 %3516  ;;  %v3053_v31 = vpop.f32.mrf.mxu2 }
 0x6bb   : > { %v3054_v18 = vadd.f32 %v7657_v3, %v3053_v31  ;;  %v2861_v49 = vpop.permute.xlu2 %2860  ;;  %v2857_v59 = vpop.permute.xlu0 %2856  ;;  %v9097_v31 = vld [vmem:[#allocation38_spill] sm:$0xff] }
 0x6bc   : > { %3305 = vst [vmem:[%s7669_s19 + $0x3a8] sm:$0xff] %v3241_v28  ;;  %v7989_v1 = vadd.f32 %v2857_v59, %v9096_v11  ;;  %v9099_v28 = vld [vmem:[#allocation41_spill] sm:$0xff] }
 0x6bd   : > { %v4946_v54 = vpop.eup %4945  ;;  %v3123_v30 = vmul.f32 0.5, %v3054_v18  ;;  %3251 = vst [vmem:[%s7669_s19 + $0xe0] sm:$0xff] %v3054_v18  ;;  %v9100_v18 = vld [vmem:[#allocation60_spill] sm:$0xff] }
 0x6be   : > { %v3186_v33 = vadd.f32 1.0, %v4946_v54  ;;  %v2952_v13 = vpack.c.bf16 %v7989_v1, %v7985_v51  ;;  %v9101_v59 = vmax.f32 %v9100_v18, 0.001  ;;  %v9102_v54 = vld [vmem:[#allocation105_spill] sm:$0xff] }
 0x6bf   : > { %4947 = vtanh.f32 %v3123_v30 }
 0x6c0   : > { %v3218_v57 = vmul.f32 0.5, %v3186_v33  ;;  %3884 = vrot.lane.b32.xlu2 %v9097_v31, %s5060_s20  ;;  %3876 = vrot.lane.b32.xlu1 %v9098_v62, %s5060_s20  ;;  %v3977_v30 = vsel %vm2978_vm1, %v9102_v54, %v9101_v59  ;;  %v9105_v62 = vld [vmem:[#allocation53_spill] sm:$0xff]  ;;  %v9107_v54 = vld [vmem:[#allocation31_spill] sm:$0xff] }
 0x6c1   : > { %4441 = vmatmul.msk.bf16.gmra.mxu2 %vm2978_vm1, %v2952_v13  ;;  %3880 = vrot.lane.b32.xlu0 %v9099_v28, %s5060_s20  ;;  %v3955_v13 = vsel %vm2978_vm1, %v9105_v62, %v9104_v5  ;;  %v9108_v5 = vld [vmem:[#allocation92_spill] sm:$0xff]  ;;  %v9111_v62 = vld [vmem:[#allocation123_spill] sm:$0xff] }
 0x6c2   : > { %3282 = vst [vmem:[%s7669_s19 + $0xc8] sm:$0xff] %v3218_v57  ;;  %v3399_v33 = vpop.permute.xlu1 %3398 }
 0x6c3   : > { %v4010_v17 = vsel %vm3980_vm10, %v3977_v30, %v3399_v33  ;;  %v3761_v31 = vpop.permute.xlu2 %3760  ;;  %v3355_v50 = vpop.permute.xlu0 %3354 }
 0x6c4   : > { %v4043_v28 = vsel %vm4013_vm11, %v4010_v17, %v9106_v27  ;;  %v8015_v57 = vsel %vm2978_vm1, %v7844_v20, %v3761_v31  ;;  %v3988_v18 = vsel %vm3980_vm10, %v3955_v13, %v3355_v50  ;;  %v9109_v17 = vld [vmem:[#allocation26_spill] sm:$0xff]  ;;  %v9110_v20 = vld [vmem:[#allocation24_spill] sm:$0xff]  ;;  %v9112_v13 = vmax.f32 %v9111_v62, 0.001  ;;  %v9115_v62 = vld [vmem:[#allocation93_spill] sm:$0xff] }
 0x6c5   : > { %v4948_v59 = vpop.eup %4947  ;;  %4201 = vst [vmem:[%s7669_s19 + $0x3b0] sm:$0xff] %v4043_v28  ;;  %v4021_v30 = vsel %vm4013_vm11, %v3988_v18, %v9107_v54 }
 0x6c6   : > { %v3187_v33 = vadd.f32 1.0, %v4948_v59  ;;  %4157 = vst [vmem:[%s7669_s19 + $0xf0] sm:$0xff] %v4021_v30  ;;  %v3957_v28 = vsel %vm2978_vm1, %v7003_v37, %v9112_v13  ;;  %v9114_v37 = vld [vmem:[#allocation63_spill] sm:$0xff] }
 0x6c8   : > { %v3219_v23 = vmul.f32 0.5, %v3187_v33  ;;  %3890 = vrot.lane.b32.xlu2 %v9108_v5, %s5060_s20  ;;  %3882 = vrot.lane.b32.xlu1 %v9109_v17, %s5060_s20  ;;  %v9113_v5 = vld [vmem:[#allocation133_spill] sm:$0xff] }
 0x6c9   : > { %3886 = vrot.lane.b32.xlu0 %v9110_v20, %s5060_s20 }
 0x6ca   : > { %3283 = vst [vmem:[%s7669_s19 + $0xe8] sm:$0xff] %v3219_v23  ;;  %v8029_v50 = vpop.permute.xlu1 %3640  ;;  %v3111_v27 = vpop.f32.mrf.mxu3 }
 0x6cb   : > { %v3112_v31 = vadd.f32 %v7657_v3, %v3111_v27  ;;  %v3359_v18 = vpop.permute.xlu2 %3358  ;;  %v3763_v59 = vpop.permute.xlu0 %3762 }
 0x6cc   : > { %v3990_v54 = vsel %vm3980_vm10, %v3957_v28, %v3359_v18  ;;  %v8039_v30 = vsel %vm2978_vm1, %v7909_v58, %v3763_v59  ;;  %v3056_v33 = vpop.f32.mrf.mxu2  ;;  %v9116_v58 = vld [vmem:[#allocation96_spill] sm:$0xff] }
 0x6cd   : > { %v3146_v23 = vmul.f32 0.5, %v3112_v31  ;;  %3274 = vst [vmem:[%s7669_s19 + $0x3c0] sm:$0xff] %v3112_v31  ;;  %v4023_v17 = vsel %vm4013_vm11, %v3990_v54, %v9113_v5  ;;  %v3057_v20 = vadd.f32 %v7657_v3, %v3056_v33  ;;  %v9117_v28 = vld [vmem:[#allocation56_spill] sm:$0xff]  ;;  %v9119_v5 = vld [vmem:[#allocation59_spill] sm:$0xff] }
 0x6ce   : > { %4161 = vst [vmem:[%s7669_s19 + $0x130] sm:$0xff] %v4023_v17  ;;  %v8054_v18 = vadd.f32 %v2861_v49, %v9117_v28  ;;  %v9118_v59 = vld [vmem:[#allocation52_spill] sm:$0xff]  ;;  %v9120_v17 = vmax.f32 %v9119_v5, 0.001 }
 0x6cf   : > { %4949 = vtanh.f32 %v3146_v23  ;;  %v3124_v27 = vmul.f32 0.5, %v3057_v20  ;;  %3252 = vst [vmem:[%s7669_s19 + $0x100] sm:$0xff] %v3057_v20  ;;  %v9121_v20 = vld [vmem:[#allocation29_spill] sm:$0xff] }
 0x6d0   : > { %3896 = vrot.lane.b32.xlu2 %v9114_v37, %s5060_s20  ;;  %3888 = vrot.lane.b32.xlu1 %v9115_v62, %s5060_s20 }
 0x6d1   : > { %4951 = vtanh.f32 %v3124_v27  ;;  %3892 = vrot.lane.b32.xlu0 %v9116_v58, %s5060_s20  ;;  %v3979_v27 = vsel %vm2978_vm1, %v9121_v20, %v9120_v17 }
 0x6d2   : > { %v2859_v31 = vpop.permute.xlu1 %2858  ;;  %v3113_v13 = vpop.f32.mrf.mxu3 }
 0x6d3   : > { %v8057_v54 = vadd.f32 %v2859_v31, %v9118_v59  ;;  %v3114_v33 = vadd.f32 %v7657_v3, %v3113_v13  ;;  %v3767_v23 = vpop.permute.xlu2 %3766  ;;  %v3403_v37 = vpop.permute.xlu0 %3402 }
 0x6d4   : > { %v8066_v62 = vsel %vm2978_vm1, %v7967_v0, %v3767_v23  ;;  %v4012_v49 = vsel %vm3980_vm10, %v3979_v27, %v3403_v37  ;;  %v3058_v58 = vpop.f32.mrf.mxu2  ;;  %v9123_v37 = vld [vmem:[#allocation67_spill] sm:$0xff] }
 0x6d5   : > { %v4950_v28 = vpop.eup %4949  ;;  %v2953_v31 = vpack.c.bf16 %v8054_v18, %v8057_v54  ;;  %v3147_v13 = vmul.f32 0.5, %v3114_v33  ;;  %3275 = vst [vmem:[%s7669_s19 + $0x3e0] sm:$0xff] %v3114_v33  ;;  %v4045_v5 = vsel %vm4013_vm11, %v4012_v49, %v9122_v60  ;;  %v3059_v17 = vadd.f32 %v7657_v3, %v3058_v58  ;;  %v9124_v33 = vld [vmem:[#allocation62_spill] sm:$0xff]  ;;  %v9125_v60 = vld [vmem:[#allocation64_spill] sm:$0xff] }
 0x6d6   : > { %v3210_v20 = vadd.f32 1.0, %v4950_v28  ;;  %4205 = vst [vmem:[%s7669_s19 + $0x3f0] sm:$0xff] %v4045_v5  ;;  %v9126_v49 = vld [vmem:[#allocation118_spill] sm:$0xff] }
 0x6d7   : > { %v4952_v46 = vpop.eup %4951  ;;  %4953 = vtanh.f32 %v3147_v13  ;;  %v3125_v0 = vmul.f32 0.5, %v3059_v17  ;;  %3253 = vst [vmem:[%s7669_s19 + $0x120] sm:$0xff] %v3059_v17  ;;  %4442 = vmatmul.msk.bf16.gmra.mxu2 %vm2978_vm1, %v2953_v31  ;;  %v9127_v58 = vmax.f32 %v9126_v49, 0.001  ;;  %v9128_v13 = vld [vmem:[#allocation108_spill] sm:$0xff] }
 0x6d8   : > { %v3242_v23 = vmul.f32 0.5, %v3210_v20  ;;  %v3188_v27 = vadd.f32 1.0, %v4952_v46  ;;  %3902 = vrot.lane.b32.xlu2 %v9123_v37, %s5060_s20  ;;  %3894 = vrot.lane.b32.xlu1 %v9124_v33, %s5060_s20  ;;  %v9129_v37 = vld [vmem:[#allocation130_spill] sm:$0xff] }
 0x6d9   : > { %4955 = vtanh.f32 %v3125_v0  ;;  %3898 = vrot.lane.b32.xlu0 %v9125_v60, %s5060_s20  ;;  %v3956_v31 = vsel %vm2978_vm1, %v9128_v13, %v9127_v58 }
 0x6da   : > { %3306 = vst [vmem:[%s7669_s19 + $0x3c8] sm:$0xff] %v3242_v23  ;;  %v3220_v28 = vmul.f32 0.5, %v3188_v27  ;;  %v3357_v46 = vpop.permute.xlu1 %3356 }
 0x6db   : > { %v3989_v5 = vsel %vm3980_vm10, %v3956_v31, %v3357_v46  ;;  %v3773_v17 = vpop.permute.xlu2 %3772  ;;  %v3645_v20 = vpop.permute.xlu0 %3644  ;;  %v9130_v46 = vld [vmem:[#allocation79_spill] sm:$0xff] }
 0x6dc   : > { %3284 = vst [vmem:[%s7669_s19 + $0x108] sm:$0xff] %v3220_v28  ;;  %v4022_v0 = vsel %vm4013_vm11, %v3989_v5, %v9129_v37  ;;  %v8094_v33 = vsel %vm2978_vm1, %v3645_v20, %v3773_v17  ;;  %v3061_v23 = vpop.f32.mrf.mxu2  ;;  %v9131_v5 = vld [vmem:[#allocation68_spill] sm:$0xff] }
 0x6dd   : > { %v4954_v27 = vpop.eup %4953  ;;  %4159 = vst [vmem:[%s7669_s19 + $0x110] sm:$0xff] %v4022_v0  ;;  %v3062_v60 = vadd.f32 %v7657_v3, %v3061_v23  ;;  %v9132_v17 = vld [vmem:[#allocation76_spill] sm:$0xff] }
 0x6de   : > { %v3211_v49 = vadd.f32 1.0, %v4954_v27 }
 0x6df   : > { %v4956_v58 = vpop.eup %4955  ;;  %v3126_v13 = vmul.f32 0.5, %v3062_v60  ;;  %3254 = vst [vmem:[%s7669_s19 + $0x140] sm:$0xff] %v3062_v60 }
 0x6e0   : > { %v3243_v31 = vmul.f32 0.5, %v3211_v49  ;;  %v3189_v28 = vadd.f32 1.0, %v4956_v58  ;;  %3908 = vrot.lane.b32.xlu2 %v9130_v46, %s5060_s20  ;;  %3900 = vrot.lane.b32.xlu1 %v9131_v5, %s5060_s20  ;;  %v9134_v5 = vld [vmem:[#allocation42_spill] sm:$0xff] }
 0x6e1   : > { %4957 = vtanh.f32 %v3126_v13  ;;  %3904 = vrot.lane.b32.xlu0 %v9132_v17, %s5060_s20  ;;  %v9133_v13 = vld [vmem:[#allocation75_spill] sm:$0xff] }
 0x6e2   : > { %3307 = vst [vmem:[%s7669_s19 + $0x3e8] sm:$0xff] %v3243_v31  ;;  %v3221_v20 = vmul.f32 0.5, %v3189_v28  ;;  %v8106_v37 = vpop.permute.xlu1 %3646 }
 0x6e3   : > { %v8108_v0 = vpop.permute.xlu2 %3778  ;;  %v2863_v23 = vpop.permute.xlu0 %2862 }
 0x6e4   : > { %3285 = vst [vmem:[%s7669_s19 + $0x128] sm:$0xff] %v3221_v20  ;;  %v3063_v27 = vpop.f32.mrf.mxu2  ;;  %v8120_v17 = vadd.f32 %v2863_v23, %v9134_v5  ;;  %v9135_v20 = vld [vmem:[#allocation7_spill] sm:$0xff] }
 0x6e5   : > { %v3064_v60 = vadd.f32 %v7657_v3, %v3063_v27 }
 0x6e7   : > { %v4958_v49 = vpop.eup %4957  ;;  %v3127_v58 = vmul.f32 0.5, %v3064_v60  ;;  %3255 = vst [vmem:[%s7669_s19 + $0x160] sm:$0xff] %v3064_v60 }
 0x6e8   : > { %v3190_v46 = vadd.f32 1.0, %v4958_v49  ;;  %3364 = vrot.lane.b32.xlu2 %v7741_v2, %s5056_s12  ;;  %3906 = vrot.lane.b32.xlu1 %v9133_v13, %s5060_s20  ;;  %v9136_v49 = vld [vmem:[#allocation33_spill] sm:$0xff] }
 0x6e9   : > { %4959 = vtanh.f32 %v3127_v58  ;;  %3366 = vrot.lane.b32.xlu0 %v7744_v22, %s5056_s12  ;;  %v9137_v39 = vmax.f32 %v9136_v49, 0.001 }
 0x6ea   : > { %v3222_v31 = vmul.f32 0.5, %v3190_v46  ;;  %v2865_v28 = vpop.permute.xlu1 %2864  ;;  %v9138_v46 = vld [vmem:[#allocation129_spill] sm:$0xff] }
 0x6eb   : > { %v8123_v27 = vadd.f32 %v2865_v28, %v9135_v20  ;;  %v8125_v60 = vpop.permute.xlu2 %3784  ;;  %v3958_v2 = vsel %vm2978_vm1, %v7063_v55, %v9137_v39  ;;  %v3361_v13 = vpop.permute.xlu0 %3360 }
 0x6ec   : > { %3286 = vst [vmem:[%s7669_s19 + $0x148] sm:$0xff] %v3222_v31  ;;  %v3991_v58 = vsel %vm3980_vm10, %v3958_v2, %v3361_v13  ;;  %v9139_v2 = vld [vmem:[#allocation80_spill] sm:$0xff]  ;;  %v9140_v13 = vld [vmem:[#allocation121_spill] sm:$0xff] }
 0x6ed   : > { %v2954_v22 = vpack.c.bf16 %v8123_v27, %v8120_v17  ;;  %v4024_v23 = vsel %vm4013_vm11, %v3991_v58, %v9138_v46  ;;  %v4047_v58 = vsel %vm2978_vm1, %v9140_v13, %v9139_v2 }
 0x6ee   : > { %4163 = vst [vmem:[%s7669_s19 + $0x150] sm:$0xff] %v4024_v23 }
 0x6ef   : > { %v4960_v28 = vpop.eup %4959  ;;  %4443 = vmatmul.msk.bf16.gmra.mxu2 %vm2978_vm1, %v2954_v22 }
 0x6f0   : > { %v3191_v49 = vadd.f32 1.0, %v4960_v28  ;;  %3370 = vrot.lane.b32.xlu2 %v7783_v14, %s5056_s12  ;;  %3362 = vrot.lane.b32.xlu1 %v7677_v32, %s5056_s12 }
 0x6f1   : > { %3372 = vrot.lane.b32.xlu0 %v7828_v8, %s5056_s12 }
 0x6f2   : > { %v3223_v55 = vmul.f32 0.5, %v3191_v49  ;;  %v8145_v39 = vpop.permute.xlu1 %3764  ;;  %v3066_v31 = vpop.f32.mrf.mxu2 }
 0x6f3   : > { %v3067_v22 = vadd.f32 %v7657_v3, %v3066_v31  ;;  %v3855_v46 = vpop.permute.xlu2 %3854  ;;  %v8151_v14 = vpop.permute.xlu0 %3768  ;;  %v9142_v31 = vld [vmem:[#allocation128_spill] sm:$0xff] }
 0x6f4   : > { %3287 = vst [vmem:[%s7669_s19 + $0x168] sm:$0xff] %v3223_v55  ;;  %v4080_v32 = vsel %vm4078_vm12, %v4047_v58, %v3855_v46  ;;  %v9141_v55 = vld [vmem:[#allocation83_spill] sm:$0xff] }
 0x6f5   : > { %v3128_v23 = vmul.f32 0.5, %v3067_v22  ;;  %3256 = vst [vmem:[%s7669_s19 + $0x180] sm:$0xff] %v3067_v22  ;;  %v4112_v8 = vsel %vm3980_vm10, %v4080_v32, 0.0  ;;  %v4050_v2 = vsel %vm2978_vm1, %v9142_v31, %v9141_v55  ;;  %v9144_v55 = vld [vmem:[#allocation44_spill] sm:$0xff] }
 0x6f6   : > { %4146 = vst [vmem:[%s7669_s19 + $0x38] sm:$0xff] %v4112_v8 }
 0x6f7   : > { %4961 = vtanh.f32 %v3128_v23 }
 0x6f8   : > { %3376 = vrot.lane.b32.xlu2 %v7926_v52, %s5056_s12  ;;  %3368 = vrot.lane.b32.xlu1 %v7793_v9, %s5056_s12 }
 0x6f9   : > { %3378 = vrot.lane.b32.xlu0 %v7929_v34, %s5056_s12 }
 0x6fa   : > { %v3771_v28 = vpop.permute.xlu1 %3770  ;;  %v3068_v49 = vpop.f32.mrf.mxu2 }
 0x6fb   : > { %v8169_v13 = vsel %vm2978_vm1, %v7965_v56, %v3771_v28  ;;  %v3069_v52 = vadd.f32 %v7657_v3, %v3068_v49  ;;  %v3861_v58 = vpop.permute.xlu2 %3860  ;;  %v8172_v22 = vpop.permute.xlu0 %3774  ;;  %v9143_v49 = vld [vmem:[#allocation97_spill] sm:$0xff] }
 0x6fc   : > { %v4083_v9 = vsel %vm4078_vm12, %v4050_v2, %v3861_v58  ;;  %v4053_v31 = vsel %vm2978_vm1, %v9144_v55, %v9143_v49  ;;  %v8212_v49 = vld [vmem:[%s8581_s7] ss:$0 sm:$0xff] }
 0x6fd   : > { %v4962_v46 = vpop.eup %4961  ;;  %v3129_v34 = vmul.f32 0.5, %v3069_v52  ;;  %3257 = vst [vmem:[%s7669_s19 + $0x1a0] sm:$0xff] %v3069_v52  ;;  %v4115_v32 = vsel %vm3980_vm10, %v4083_v9, 0.0 }
 0x6fe   : > { %v3192_v23 = vadd.f32 1.0, %v4962_v46  ;;  %4152 = vst [vmem:[%s7669_s19 + $0x98] sm:$0xff] %v4115_v32 }
 0x6ff   : > { %4963 = vtanh.f32 %v3129_v34 }
 0x700   : > { %v3224_v8 = vmul.f32 0.5, %v3192_v23  ;;  %3382 = vrot.lane.b32.xlu2 %v7989_v1, %s5056_s12  ;;  %3374 = vrot.lane.b32.xlu1 %v7838_v43, %s5056_s12  ;;  %v9145_v23 = vld [vmem:[#allocation99_spill] sm:$0xff] }
 0x701   : > { %3384 = vrot.lane.b32.xlu0 %v8057_v54, %s5056_s12 }
 0x702   : > { %3288 = vst [vmem:[%s7669_s19 + $0x188] sm:$0xff] %v3224_v8  ;;  %v8185_v56 = vpop.permute.xlu1 %3776  ;;  %v3071_v28 = vpop.f32.mrf.mxu2  ;;  %v9146_v8 = vld [vmem:[#allocation107_spill] sm:$0xff] }
 0x703   : > { %v3072_v2 = vadd.f32 %v7657_v3, %v3071_v28  ;;  %v3867_v52 = vpop.permute.xlu2 %3866  ;;  %v8191_v1 = vpop.permute.xlu0 %3780  ;;  %v4056_v28 = vsel %vm2978_vm1, %v9146_v8, %v9145_v23 }
 0x704   : > { %v4086_v58 = vsel %vm4078_vm12, %v4053_v31, %v3867_v52 }
 0x705   : > { %v4964_v43 = vpop.eup %4963  ;;  %v3130_v9 = vmul.f32 0.5, %v3072_v2  ;;  %3258 = vst [vmem:[%s7669_s19 + $0x1c0] sm:$0xff] %v3072_v2  ;;  %v4118_v54 = vsel %vm3980_vm10, %v4086_v58, 0.0 }
 0x706   : > { %v3193_v46 = vadd.f32 1.0, %v4964_v43  ;;  %4158 = vst [vmem:[%s7669_s19 + $0xf8] sm:$0xff] %v4118_v54  ;;  %v9148_v54 = vld [vmem:[#allocation78_spill] sm:$0xff] }
 0x707   : > { %4965 = vtanh.f32 %v3130_v9  ;;  %v9147_v9 = vld [vmem:[#allocation36_spill] sm:$0xff] }
 0x708   : > { %v3225_v34 = vmul.f32 0.5, %v3193_v46  ;;  %3388 = vrot.lane.b32.xlu2 %v8120_v17, %s5056_s12  ;;  %3380 = vrot.lane.b32.xlu1 %v7985_v51, %s5056_s12  ;;  %v9149_v46 = vld [vmem:[#allocation74_spill] sm:$0xff] }
 0x709   : > { %3390 = vrot.lane.b32.xlu0 %v8123_v27, %s5056_s12 }
 0x70a   : > { %3289 = vst [vmem:[%s7669_s19 + $0x1a8] sm:$0xff] %v3225_v34  ;;  %v8204_v3 = vpop.permute.xlu1 %3782  ;;  %v3073_v32 = vpop.f32.mrf.mxu2  ;;  %v9150_v34 = vld [vmem:[#allocation117_spill] sm:$0xff] }
 0x70b   : > { %v3074_v17 = vadd.f32 %v8212_v49, %v3073_v32  ;;  %v3873_v51 = vpop.permute.xlu2 %3872  ;;  %v8215_v55 = vpop.permute.xlu0 %3786  ;;  %v4046_v32 = vsel %vm2978_vm1, %v9150_v34, %v9149_v46 }
 0x70c   : > { %v4089_v27 = vsel %vm4078_vm12, %v4056_v28, %v3873_v51  ;;  %v9151_v28 = vld [vmem:[#allocation73_spill] sm:$0xff] }
 0x70d   : > { %v4966_v31 = vpop.eup %4965  ;;  %v3131_v2 = vmul.f32 0.5, %v3074_v17  ;;  %3259 = vst [vmem:[%s7669_s19 + $0x1e0] sm:$0xff] %v3074_v17  ;;  %v4121_v52 = vsel %vm3980_vm10, %v4089_v27, 0.0  ;;  %v9152_v17 = vld [vmem:[#allocation58_spill] sm:$0xff]  ;;  %v9153_v27 = vld [vmem:[#allocation100_spill] sm:$0xff] }
 0x70e   : > { %v3194_v58 = vadd.f32 1.0, %v4966_v31  ;;  %4164 = vst [vmem:[%s7669_s19 + $0x158] sm:$0xff] %v4121_v52  ;;  %v4048_v51 = vsel %vm2978_vm1, %v9152_v17, %v9151_v28  ;;  %v9155_v17 = vld [vmem:[#allocation86_spill] sm:$0xff] }
 0x70f   : > { %4967 = vtanh.f32 %v3131_v2 }
 0x710   : > { %v3226_v43 = vmul.f32 0.5, %v3194_v58  ;;  %3914 = vrot.lane.b32.xlu2 %v9147_v9, %s5060_s20  ;;  %3386 = vrot.lane.b32.xlu1 %v8054_v18, %s5056_s12  ;;  %v4059_v18 = vsel %vm2978_vm1, %v7720_v12, %v9153_v27  ;;  %v9156_v27 = vld [vmem:[#allocation125_spill] sm:$0xff]  ;;  %s4481_s12 = sshll.u32 %s5128_s9, 10 }
 0x711   : > { %3910 = vrot.lane.b32.xlu0 %v9148_v54, %s5060_s20  ;;  %s4220_s23 = scalar_lea.hbm %s8582_s8, %s4481_s12  ;;  %s5012_s12 = scalar_lea.hbm %s8582_s8, 2048 }
 0x712   : > { %3290 = vst [vmem:[%s7669_s19 + $0x1c8] sm:$0xff] %v3226_v43  ;;  %v3853_v23 = vpop.permute.xlu1 %3852  ;;  %v3076_v8 = vpop.f32.mrf.mxu2  ;;  %s4223_s10 = sshll.u32 %s4220_s23, 4  ;;  %s4224_s10 = int_to_ptr.hbm [resolvable:$true] %s4223_s10 }
 0x713   : > { %v4079_v31 = vsel %vm4078_vm12, %v4046_v32, %v3853_v23  ;;  %v3077_v2 = vadd.f32 %v8212_v49, %v3076_v8  ;;  %v3879_v52 = vpop.permute.xlu2 %3878  ;;  %v3857_v58 = vpop.permute.xlu0 %3856  ;;  %v9154_v8 = vld [vmem:[#allocation87_spill] sm:$0xff]  ;;  %s5006_s18 = sshra.s32 %s4224_s10, 4  ;;  %s5007_s18 = int_to_ptr.hbm [resolvable:$true] %s5006_s18 }
 0x714   : > { %v4111_v43 = vsel %vm3980_vm10, %v4079_v31, 0.0  ;;  %v4092_v9 = vsel %vm4078_vm12, %v4059_v18, %v3879_v52  ;;  %v4081_v54 = vsel %vm4078_vm12, %v4048_v51, %v3857_v58  ;;  %v4049_v51 = vsel %vm2978_vm1, %v9156_v27, %v9155_v17  ;;  %v9157_v52 = vld [vmem:[#allocation77_spill] sm:$0xff]  ;;  %p5013_p0 = scmp.lt.s32.totalorder %s5007_s18, %s8582_s8 }
 0x715   : > { %v4968_v46 = vpop.eup %4967  ;;  %4144 = vst [vmem:[%s7669_s19 + $0x18] sm:$0xff] %v4111_v43  ;;  %v3132_v34 = vmul.f32 0.5, %v3077_v2  ;;  %v4124_v12 = vsel %vm3980_vm10, %v4092_v9, 0.0  ;;  %v4113_v28 = vsel %vm3980_vm10, %v4081_v54, 0.0  ;;  %v9158_v58 = vld [vmem:[#allocation37_spill] sm:$0xff]  ;;  %v9159_v43 = vld [vmem:[#allocation6_spill] sm:$0xff] }
 0x716   : > { %v3195_v32 = vadd.f32 1.0, %v4968_v46  ;;  %3260 = vst [vmem:[%s7669_s19 + $0x200] sm:$0xff] %v3077_v2  ;;  %v4051_v2 = vsel %vm2978_vm1, %v9158_v58, %v9157_v52  ;;  %v4062_v9 = vsel %vm2978_vm1, %v7787_v25, %v9159_v43  ;;  %v9161_v52 = vld [vmem:[#allocation134_spill] sm:$0xff] }
 0x717   : > { %4969 = vtanh.f32 %v3132_v34  ;;  %4170 = vst [vmem:[%s7669_s19 + $0x1b8] sm:$0xff] %v4124_v12  ;;  %v9162_v43 = vld [vmem:[#allocation98_spill] sm:$0xff] }
 0x718   : > { %v3227_v23 = vmul.f32 0.5, %v3195_v32  ;;  %4148 = vst [vmem:[%s7669_s19 + $0x58] sm:$0xff] %v4113_v28  ;;  %3912 = vrot.lane.b32.xlu1 %v9154_v8, %s5060_s20  ;;  %s5008_s20 = scalar_lea.hbm %s5007_s18, 1024 }
 0x719   : > { %p5009_p11 = scmp.ne.s32.totalorder %s5007_s18, %s5008_s20  ;;  %p5014_p1 = scmp.lt.s32.totalorder %s5012_s12, %s5008_s20 }
 0x71a   : > { %3291 = vst [vmem:[%s7669_s19 + $0x1e8] sm:$0xff] %v3227_v23  ;;  %v3859_v18 = vpop.permute.xlu1 %3858  ;;  %v3078_v31 = vpop.f32.mrf.mxu2 }
 0x71b   : > { %v4082_v54 = vsel %vm4078_vm12, %v4049_v51, %v3859_v18  ;;  %v3079_v46 = vadd.f32 %v8212_v49, %v3078_v31  ;;  %v3885_v34 = vpop.permute.xlu2 %3884  ;;  %v3863_v12 = vpop.permute.xlu0 %3862  ;;  %v9160_v31 = vld [vmem:[#allocation94_spill] sm:$0xff]  ;;  %p5010_p12 = pnand %p5009_p11, %p5145_p5  ;;  %p5015_p2 = por %p5014_p1, %p5013_p0 }
 0x71c   : > { %v4114_v28 = vsel %vm3980_vm10, %v4082_v54, 0.0  ;;  %v4095_v32 = vsel %vm4078_vm12, %v4062_v9, %v3885_v34  ;;  %v4084_v23 = vsel %vm4078_vm12, %v4051_v2, %v3863_v12  ;;  %v4052_v58 = vsel %vm2978_vm1, %v9161_v52, %v9160_v31  ;;  %v9163_v9 = vld [vmem:[#allocation54_spill] sm:$0xff]  ;;  %v9165_v31 = vld [vmem:[#allocation143_spill] sm:$0xff] }
 0x71d   : > { %v4970_v8 = vpop.eup %4969  ;;  %4150 = vst [vmem:[%s7669_s19 + $0x78] sm:$0xff] %v4114_v28  ;;  %v3133_v17 = vmul.f32 0.5, %v3079_v46  ;;  %v4127_v25 = vsel %vm3980_vm10, %v4095_v32, 0.0  ;;  %v4116_v27 = vsel %vm3980_vm10, %v4084_v23, 0.0  ;;  %v4054_v54 = vsel %vm2978_vm1, %v9163_v9, %v9162_v43  ;;  %p5011_p13 = pneg %p5010_p12 }
 0x71e   : > { %v3196_v51 = vadd.f32 1.0, %v4970_v8  ;;  %3261 = vst [vmem:[%s7669_s19 + $0x220] sm:$0xff] %v3079_v46  ;;  %v4068_v9 = vsel %vm2978_vm1, %v8029_v50, %v8151_v14 }
 0x71f   : > { %4971 = vtanh.f32 %v3133_v17  ;;  %4176 = vst [vmem:[%s7669_s19 + $0x218] sm:$0xff] %v4127_v25  ;;  %p5016_p3 = pnand %p5015_p2, %p5011_p13 }
 0x720   : > { %v3228_v18 = vmul.f32 0.5, %v3196_v51  ;;  %4154 = vst [vmem:[%s7669_s19 + $0xb8] sm:$0xff] %v4116_v27 }
 0x722   : > { %3292 = vst [vmem:[%s7669_s19 + $0x208] sm:$0xff] %v3228_v18  ;;  %v3865_v2 = vpop.permute.xlu1 %3864  ;;  %v9164_v18 = vld [vmem:[#allocation95_spill] sm:$0xff] }
 0x723   : > { %v4085_v46 = vsel %vm4078_vm12, %v4052_v58, %v3865_v2  ;;  %v3891_v34 = vpop.permute.xlu2 %3890  ;;  %v3869_v12 = vpop.permute.xlu0 %3868  ;;  %v4055_v52 = vsel %vm2978_vm1, %v9165_v31, %v9164_v18  ;;  %v9166_v58 = vld [vmem:[#allocation101_spill] sm:$0xff]  ;;  %v9167_v2 = vld [vmem:[#allocation138_spill] sm:$0xff]  ;;  %v4071_v31 = vsel %vm2978_vm1, %v8106_v37, %v8172_v22  ;;  %v9171_v37 = vld [vmem:[#allocation103_spill] sm:$0xff] }
 0x724   : > { %v4117_v28 = vsel %vm3980_vm10, %v4085_v46, 0.0  ;;  %v4098_v32 = vsel %vm4078_vm12, %v8039_v30, %v3891_v34  ;;  %v4087_v23 = vsel %vm4078_vm12, %v4054_v54, %v3869_v12  ;;  %v4057_v43 = vsel %vm2978_vm1, %v9167_v2, %v9166_v58 }
 0x725   : > { %v4972_v8 = vpop.eup %4971  ;;  %4156 = vst [vmem:[%s7669_s19 + $0xd8] sm:$0xff] %v4117_v28  ;;  %v4130_v17 = vsel %vm3980_vm10, %v4098_v32, 0.0  ;;  %v4119_v25 = vsel %vm3980_vm10, %v4087_v23, 0.0  ;;  %v4061_v22 = vsel %vm2978_vm1, %v7746_v19, %v9171_v37 }
 0x726   : > { %v3197_v27 = vadd.f32 1.0, %v4972_v8  ;;  %4182 = vst [vmem:[%s7669_s19 + $0x278] sm:$0xff] %v4130_v17  ;;  %v9168_v17 = vld [vmem:[#allocation102_spill] sm:$0xff] }
 0x727   : > { %4160 = vst [vmem:[%s7669_s19 + $0x118] sm:$0xff] %v4119_v25  ;;  %v4058_v50 = vsel %vm2978_vm1, %v7683_v40, %v9168_v17 }
 0x728   : > { %v3229_v51 = vmul.f32 0.5, %v3197_v27  ;;  %v9169_v27 = vld [vmem:[#allocation104_spill] sm:$0xff] }
 0x72a   : > { %3293 = vst [vmem:[%s7669_s19 + $0x228] sm:$0xff] %v3229_v51  ;;  %v3871_v30 = vpop.permute.xlu1 %3870  ;;  %v9170_v51 = vld [vmem:[#allocation145_spill] sm:$0xff] }
 0x72b   : > { %v4088_v54 = vsel %vm4078_vm12, %v4055_v52, %v3871_v30  ;;  %v3897_v46 = vpop.permute.xlu2 %3896  ;;  %v3875_v34 = vpop.permute.xlu0 %3874  ;;  %v4060_v18 = vsel %vm2978_vm1, %v9170_v51, %v9169_v27 }
 0x72c   : > { %v4120_v12 = vsel %vm3980_vm10, %v4088_v54, 0.0  ;;  %v4101_v28 = vsel %vm4078_vm12, %v4068_v9, %v3897_v46  ;;  %v4090_v32 = vsel %vm4078_vm12, %v4057_v43, %v3875_v34 }
 0x72d   : > { %4162 = vst [vmem:[%s7669_s19 + $0x138] sm:$0xff] %v4120_v12  ;;  %v4133_v23 = vsel %vm3980_vm10, %v4101_v28, 0.0  ;;  %v4122_v8 = vsel %vm3980_vm10, %v4090_v32, 0.0  ;;  %v9172_v32 = vld [vmem:[#allocation9_spill] sm:$0xff] }
 0x72e   : > { %4188 = vst [vmem:[%s7669_s19 + $0x2d8] sm:$0xff] %v4133_v23  ;;  %v4063_v23 = vsel %vm2978_vm1, %v7722_v21, %v9172_v32  ;;  %v9176_v32 = vld [vmem:[#allocation142_spill] sm:$0xff] }
 0x72f   : > { %4166 = vst [vmem:[%s7669_s19 + $0x178] sm:$0xff] %v4122_v8  ;;  %v9173_v8 = vld [vmem:[#allocation27_spill] sm:$0xff] }
 0x730   : > { %v4074_v17 = vsel %vm2978_vm1, %v9173_v8, %v8191_v1 }
 0x732   : > { %v3877_v14 = vpop.permute.xlu1 %3876  ;;  %v3081_v25 = vpop.f32.mrf.mxu2 }
 0x733   : > { %v4091_v52 = vsel %vm4078_vm12, %v4058_v50, %v3877_v14  ;;  %v3082_v30 = vadd.f32 %v8212_v49, %v3081_v25  ;;  %v3903_v58 = vpop.permute.xlu2 %3902  ;;  %v3881_v2 = vpop.permute.xlu0 %3880 }
 0x734   : > { %v4123_v40 = vsel %vm3980_vm10, %v4091_v52, 0.0  ;;  %v4104_v43 = vsel %vm4078_vm12, %v4071_v31, %v3903_v58  ;;  %v4093_v9 = vsel %vm4078_vm12, %v4060_v18, %v3881_v2 }
 0x735   : > { %4168 = vst [vmem:[%s7669_s19 + $0x198] sm:$0xff] %v4123_v40  ;;  %v3134_v54 = vmul.f32 0.5, %v3082_v30  ;;  %v4136_v46 = vsel %vm3980_vm10, %v4104_v43, 0.0  ;;  %v4125_v34 = vsel %vm3980_vm10, %v4093_v9, 0.0  ;;  %v4066_v40 = vsel %vm2978_vm1, %v7842_v24, %v8145_v39  ;;  %v9174_v9 = vld [vmem:[#allocation22_spill] sm:$0xff] }
 0x736   : > { %3262 = vst [vmem:[%s7669_s19 + $0x240] sm:$0xff] %v3082_v30 }
 0x737   : > { %4973 = vtanh.f32 %v3134_v54  ;;  %4194 = vst [vmem:[%s7669_s19 + $0x338] sm:$0xff] %v4136_v46  ;;  %v9175_v54 = vmax.f32 %v9174_v9, 0.001 }
 0x738   : > { %4172 = vst [vmem:[%s7669_s19 + $0x1d8] sm:$0xff] %v4125_v34 }
 0x739   : > { %v3960_v46 = vsel %vm2978_vm1, %v7109_v29, %v9175_v54  ;;  %v9179_v54 = vld [vmem:[#allocation34_spill] sm:$0xff] }
 0x73a   : > { %v3883_v12 = vpop.permute.xlu1 %3882  ;;  %v3083_v28 = vpop.f32.mrf.mxu2 }
 0x73b   : > { %v4094_v50 = vsel %vm4078_vm12, %v4061_v22, %v3883_v12  ;;  %v3084_v14 = vadd.f32 %v8212_v49, %v3083_v28  ;;  %v3909_v25 = vpop.permute.xlu2 %3908  ;;  %v3887_v19 = vpop.permute.xlu0 %3886 }
 0x73c   : > { %v4126_v27 = vsel %vm3980_vm10, %v4094_v50, 0.0  ;;  %v4107_v51 = vsel %vm4078_vm12, %v4074_v17, %v3909_v25  ;;  %v4096_v18 = vsel %vm4078_vm12, %v4063_v23, %v3887_v19  ;;  %v9177_v19 = vld [vmem:[#allocation23_spill] sm:$0xff] }
 0x73d   : > { %v4974_v21 = vpop.eup %4973  ;;  %4174 = vst [vmem:[%s7669_s19 + $0x1f8] sm:$0xff] %v4126_v27  ;;  %v3135_v31 = vmul.f32 0.5, %v3084_v14  ;;  %v4139_v1 = vsel %vm3980_vm10, %v4107_v51, 0.0  ;;  %v4128_v52 = vsel %vm3980_vm10, %v4096_v18, 0.0  ;;  %v9178_v27 = vmax.f32 %v9177_v19, 0.001 }
 0x73e   : > { %v3198_v30 = vadd.f32 1.0, %v4974_v21  ;;  %3263 = vst [vmem:[%s7669_s19 + $0x260] sm:$0xff] %v3084_v14 }
 0x73f   : > { %4975 = vtanh.f32 %v3135_v31  ;;  %4200 = vst [vmem:[%s7669_s19 + $0x398] sm:$0xff] %v4139_v1  ;;  %v3963_v51 = vsel %vm2978_vm1, %v7214_v10, %v9178_v27 }
 0x740   : > { %v3230_v58 = vmul.f32 0.5, %v3198_v30  ;;  %4178 = vst [vmem:[%s7669_s19 + $0x238] sm:$0xff] %v4128_v52 }
 0x742   : > { %3294 = vst [vmem:[%s7669_s19 + $0x248] sm:$0xff] %v3230_v58  ;;  %v3889_v2 = vpop.permute.xlu1 %3888 }
 0x743   : > { %v4097_v43 = vsel %vm4078_vm12, %v8015_v57, %v3889_v2  ;;  %v3365_v34 = vpop.permute.xlu2 %3364  ;;  %v3893_v37 = vpop.permute.xlu0 %3892 }
 0x744   : > { %v4129_v22 = vsel %vm3980_vm10, %v4097_v43, 0.0  ;;  %v3993_v12 = vsel %vm3980_vm10, %v3960_v46, %v3365_v34  ;;  %v4099_v28 = vsel %vm4078_vm12, %v4066_v40, %v3893_v37  ;;  %v3086_v24 = vpop.f32.mrf.mxu2  ;;  %v9180_v34 = vld [vmem:[#allocation135_spill] sm:$0xff] }
 0x745   : > { %v4976_v39 = vpop.eup %4975  ;;  %4180 = vst [vmem:[%s7669_s19 + $0x258] sm:$0xff] %v4129_v22  ;;  %v4026_v57 = vsel %vm4013_vm11, %v3993_v12, %v9176_v32  ;;  %v4131_v23 = vsel %vm3980_vm10, %v4099_v28, 0.0  ;;  %v3087_v29 = vadd.f32 %v8212_v49, %v3086_v24  ;;  %v9181_v37 = vmax.f32 %v9180_v34, 0.001  ;;  %v9191_v34 = vld [vmem:[#allocation131_spill] sm:$0xff] }
 0x746   : > { %v3199_v8 = vadd.f32 1.0, %v4976_v39  ;;  %4167 = vst [vmem:[%s7669_s19 + $0x190] sm:$0xff] %v4026_v57 }
 0x747   : > { %4184 = vst [vmem:[%s7669_s19 + $0x298] sm:$0xff] %v4131_v23  ;;  %v3136_v17 = vmul.f32 0.5, %v3087_v29  ;;  %v3966_v22 = vsel %vm2978_vm1, %v7333_v42, %v9181_v37  ;;  %v9182_v23 = vld [vmem:[#allocation47_spill] sm:$0xff]  ;;  %v9192_v37 = vmax.f32 %v9191_v34, 0.001 }
 0x748   : > { %v3231_v50 = vmul.f32 0.5, %v3199_v8  ;;  %3264 = vst [vmem:[%s7669_s19 + $0x280] sm:$0xff] %v3087_v29  ;;  %v4073_v29 = vsel %vm2978_vm1, %v9182_v23, %v8108_v0  ;;  %v9206_v34 = vmax.f32 %v7752_v7, 0.001 }
 0x749   : > { %4977 = vtanh.f32 %v3136_v17 }
 0x74a   : > { %3295 = vst [vmem:[%s7669_s19 + $0x268] sm:$0xff] %v3231_v50  ;;  %v3895_v14 = vpop.permute.xlu1 %3894 }
 0x74b   : > { %v4100_v25 = vsel %vm4078_vm12, %v8066_v62, %v3895_v14  ;;  %v3371_v18 = vpop.permute.xlu2 %3370  ;;  %v3899_v21 = vpop.permute.xlu0 %3898 }
 0x74c   : > { %v4132_v31 = vsel %vm3980_vm10, %v4100_v25, 0.0  ;;  %v3996_v1 = vsel %vm3980_vm10, %v3963_v51, %v3371_v18  ;;  %v4102_v52 = vsel %vm4078_vm12, %v8169_v13, %v3899_v21  ;;  %v3088_v30 = vpop.f32.mrf.mxu2  ;;  %v9183_v25 = vld [vmem:[#allocation144_spill] sm:$0xff]  ;;  %v9185_v18 = vld [vmem:[#allocation46_spill] sm:$0xff] }
 0x74d   : > { %4186 = vst [vmem:[%s7669_s19 + $0x2b8] sm:$0xff] %v4132_v31  ;;  %v4029_v62 = vsel %vm4013_vm11, %v3996_v1, %v7702_v4  ;;  %v4134_v58 = vsel %vm3980_vm10, %v4102_v52, 0.0  ;;  %v3089_v10 = vadd.f32 %v8212_v49, %v3088_v30  ;;  %v4072_v4 = vsel %vm2978_vm1, %v9179_v54, %v8185_v56 }
 0x74e   : > { %4173 = vst [vmem:[%s7669_s19 + $0x1f0] sm:$0xff] %v4029_v62  ;;  %v9184_v19 = vmax.f32 %v9183_v25, 0.001  ;;  %v9186_v21 = vmax.f32 %v9185_v18, 0.001 }
 0x74f   : > { %v4978_v2 = vpop.eup %4977  ;;  %4190 = vst [vmem:[%s7669_s19 + $0x2f8] sm:$0xff] %v4134_v58  ;;  %v3137_v40 = vmul.f32 0.5, %v3089_v10  ;;  %v9190_v54 = vmax.f32 %v7729_v15, 0.001 }
 0x750   : > { %v3200_v43 = vadd.f32 1.0, %v4978_v2  ;;  %3265 = vst [vmem:[%s7669_s19 + $0x2a0] sm:$0xff] %v3089_v10  ;;  %v3969_v27 = vsel %vm2978_vm1, %v9096_v11, %v9184_v19  ;;  %v3961_v0 = vsel %vm2978_vm1, %v7174_v6, %v9186_v21  ;;  %v9187_v11 = vld [vmem:[#allocation136_spill] sm:$0xff] }
 0x751   : > { %4979 = vtanh.f32 %v3137_v40  ;;  %v9188_v6 = vld [vmem:[#allocation124_spill] sm:$0xff] }
 0x752   : > { %v3232_v13 = vmul.f32 0.5, %v3200_v43  ;;  %v3901_v9 = vpop.permute.xlu1 %3900  ;;  %v9189_v2 = vmax.f32 %v9188_v6, 0.001 }
 0x753   : > { %v4103_v46 = vsel %vm4078_vm12, %v8094_v33, %v3901_v9  ;;  %v3377_v12 = vpop.permute.xlu2 %3376  ;;  %v3905_v28 = vpop.permute.xlu0 %3904 }
 0x754   : > { %3296 = vst [vmem:[%s7669_s19 + $0x288] sm:$0xff] %v3232_v13  ;;  %v4135_v24 = vsel %vm3980_vm10, %v4103_v46, 0.0  ;;  %v3999_v39 = vsel %vm3980_vm10, %v3966_v22, %v3377_v12  ;;  %v4105_v32 = vsel %vm4078_vm12, %v4072_v4, %v3905_v28  ;;  %v3959_v40 = vsel %vm2978_vm1, %v7033_v45, %v9189_v2  ;;  %v9193_v12 = vld [vmem:[#allocation137_spill] sm:$0xff] }
 0x755   : > { %4192 = vst [vmem:[%s7669_s19 + $0x318] sm:$0xff] %v4135_v24  ;;  %v4032_v56 = vsel %vm4013_vm11, %v3999_v39, %v7764_v35  ;;  %v4137_v33 = vsel %vm3980_vm10, %v4105_v32, 0.0  ;;  %v3972_v4 = vsel %vm2978_vm1, %v9134_v5, %v9190_v54  ;;  %v3964_v45 = vsel %vm2978_vm1, %v7254_v36, %v9192_v37 }
 0x756   : > { %4179 = vst [vmem:[%s7669_s19 + $0x250] sm:$0xff] %v4032_v56  ;;  %v9194_v56 = vld [vmem:[#allocation8_spill] sm:$0xff] }
 0x757   : > { %v4980_v57 = vpop.eup %4979  ;;  %4196 = vst [vmem:[%s7669_s19 + $0x358] sm:$0xff] %v4137_v33 }
 0x758   : > { %v3201_v42 = vadd.f32 1.0, %v4980_v57 }
 0x75a   : > { %v3233_v8 = vmul.f32 0.5, %v3201_v42  ;;  %v3907_v17 = vpop.permute.xlu1 %3906  ;;  %v3091_v50 = vpop.f32.mrf.mxu2  ;;  %v9195_v42 = vld [vmem:[#allocation127_spill] sm:$0xff] }
 0x75b   : > { %v4106_v14 = vsel %vm4078_vm12, %v4073_v29, %v3907_v17  ;;  %v3092_v35 = vadd.f32 %v8212_v49, %v3091_v50  ;;  %v3383_v51 = vpop.permute.xlu2 %3382  ;;  %v3367_v31 = vpop.permute.xlu0 %3366  ;;  %v9196_v23 = vmax.f32 %v9195_v42, 0.001 }
 0x75c   : > { %3297 = vst [vmem:[%s7669_s19 + $0x2a8] sm:$0xff] %v3233_v8  ;;  %v4138_v1 = vsel %vm3980_vm10, %v4106_v14, 0.0  ;;  %v4002_v52 = vsel %vm3980_vm10, %v3969_v27, %v3383_v51  ;;  %v3994_v30 = vsel %vm3980_vm10, %v3961_v0, %v3367_v31  ;;  %v9200_v51 = vld [vmem:[#allocation49_spill] sm:$0xff] }
 0x75d   : > { %4198 = vst [vmem:[%s7669_s19 + $0x378] sm:$0xff] %v4138_v1  ;;  %v3138_v62 = vmul.f32 0.5, %v3092_v35  ;;  %v4035_v58 = vsel %vm4013_vm11, %v4002_v52, %v7859_v61  ;;  %v4027_v10 = vsel %vm4013_vm11, %v3994_v30, %v9187_v11  ;;  %v3962_v29 = vsel %vm2978_vm1, %v9043_v53, %v9196_v23  ;;  %v9201_v52 = vld [vmem:[#allocation132_spill] sm:$0xff]  ;;  %v9213_v23 = vld [vmem:[#allocation51_spill] sm:$0xff] }
 0x75e   : > { %3266 = vst [vmem:[%s7669_s19 + $0x2c0] sm:$0xff] %v3092_v35  ;;  %v9198_v35 = vld [vmem:[#allocation140_spill] sm:$0xff]  ;;  %v9202_v30 = vmax.f32 %v9201_v52, 0.001 }
 0x75f   : > { %4981 = vtanh.f32 %v3138_v62  ;;  %4185 = vst [vmem:[%s7669_s19 + $0x2b0] sm:$0xff] %v4035_v58  ;;  %v9199_v25 = vmax.f32 %v9198_v35, 0.001 }
 0x760   : > { %4169 = vst [vmem:[%s7669_s19 + $0x1b0] sm:$0xff] %v4027_v10  ;;  %v3965_v62 = vsel %vm2978_vm1, %v7268_v16, %v9202_v30 }
 0x761   : > { %v3967_v19 = vsel %vm2978_vm1, %v7382_v48, %v9199_v25 }
 0x762   : > { %v3363_v43 = vpop.permute.xlu1 %3362  ;;  %v3093_v13 = vpop.f32.mrf.mxu2 }
 0x763   : > { %v3992_v9 = vsel %vm3980_vm10, %v3959_v40, %v3363_v43  ;;  %v3094_v61 = vadd.f32 %v8212_v49, %v3093_v13  ;;  %v3389_v46 = vpop.permute.xlu2 %3388  ;;  %v3373_v22 = vpop.permute.xlu0 %3372 }
 0x764   : > { %v4025_v28 = vsel %vm4013_vm11, %v3992_v9, %v9193_v12  ;;  %v4005_v24 = vsel %vm3980_vm10, %v3972_v4, %v3389_v46  ;;  %v3997_v15 = vsel %vm3980_vm10, %v3964_v45, %v3373_v22  ;;  %v9207_v45 = vld [vmem:[#allocation48_spill] sm:$0xff] }
 0x765   : > { %v4982_v39 = vpop.eup %4981  ;;  %4165 = vst [vmem:[%s7669_s19 + $0x170] sm:$0xff] %v4025_v28  ;;  %v3139_v32 = vmul.f32 0.5, %v3094_v61  ;;  %v4038_v5 = vsel %vm4013_vm11, %v4005_v24, %v7980_v38  ;;  %v4030_v33 = vsel %vm4013_vm11, %v3997_v15, %v9194_v56  ;;  %v9197_v38 = vld [vmem:[#allocation43_spill] sm:$0xff]  ;;  %v9208_v24 = vld [vmem:[#allocation50_spill] sm:$0xff] }
 0x766   : > { %v3202_v57 = vadd.f32 1.0, %v4982_v39  ;;  %3267 = vst [vmem:[%s7669_s19 + $0x2e0] sm:$0xff] %v3094_v61  ;;  %v4077_v17 = vsel %vm2978_vm1, %v9197_v38, %v8215_v55 }
 0x767   : > { %4983 = vtanh.f32 %v3139_v32  ;;  %4191 = vst [vmem:[%s7669_s19 + $0x310] sm:$0xff] %v4038_v5  ;;  %v9211_v32 = vld [vmem:[#allocation56_spill] sm:$0xff] }
 0x768   : > { %v3234_v36 = vmul.f32 0.5, %v3202_v57  ;;  %4175 = vst [vmem:[%s7669_s19 + $0x210] sm:$0xff] %v4030_v33  ;;  %v9212_v33 = vld [vmem:[#allocation40_spill] sm:$0xff] }
 0x769   : > { %v4075_v57 = vsel %vm2978_vm1, %v9212_v33, %v8204_v3 }
 0x76a   : > { %3298 = vst [vmem:[%s7669_s19 + $0x2c8] sm:$0xff] %v3234_v36  ;;  %v3369_v8 = vpop.permute.xlu1 %3368 }
 0x76b   : > { %v3995_v50 = vsel %vm3980_vm10, %v3962_v29, %v3369_v8  ;;  %v3915_v14 = vpop.permute.xlu2 %3914  ;;  %v3379_v27 = vpop.permute.xlu0 %3378 }
 0x76c   : > { %v4028_v18 = vsel %vm4013_vm11, %v3995_v50, %v9200_v51  ;;  %v4110_v53 = vsel %vm4078_vm12, %v4077_v17, %v3915_v14  ;;  %v4000_v21 = vsel %vm3980_vm10, %v3967_v19, %v3379_v27  ;;  %v9214_v14 = vld [vmem:[#allocation139_spill] sm:$0xff] }
 0x76d   : > { %v4984_v0 = vpop.eup %4983  ;;  %4171 = vst [vmem:[%s7669_s19 + $0x1d0] sm:$0xff] %v4028_v18  ;;  %v4142_v55 = vsel %vm3980_vm10, %v4110_v53, 0.0  ;;  %v4033_v31 = vsel %vm4013_vm11, %v4000_v21, %v7704_v26  ;;  %v9203_v26 = vmax.f32 %v7691_v44, 0.001  ;;  %v9204_v44 = vld [vmem:[#allocation141_spill] sm:$0xff]  ;;  %v4076_v35 = vsel %vm2978_vm1, %v9214_v14, %v8125_v60 }
 0x76e   : > { %v3203_v1 = vadd.f32 1.0, %v4984_v0  ;;  %4206 = vst [vmem:[%s7669_s19 + $0x3f8] sm:$0xff] %v4142_v55  ;;  %v9205_v61 = vmax.f32 %v9204_v44, 0.001 }
 0x76f   : > { %4181 = vst [vmem:[%s7669_s19 + $0x270] sm:$0xff] %v4033_v31  ;;  %v3970_v2 = vsel %vm2978_vm1, %v9118_v59, %v9203_v26 }
 0x770   : > { %v3235_v48 = vmul.f32 0.5, %v3203_v1  ;;  %v3968_v59 = vsel %vm2978_vm1, %v9095_v47, %v9205_v61 }
 0x772   : > { %3299 = vst [vmem:[%s7669_s19 + $0x2e8] sm:$0xff] %v3235_v48  ;;  %v3375_v58 = vpop.permute.xlu1 %3374  ;;  %v3096_v11 = vpop.f32.mrf.mxu2 }
 0x773   : > { %v3998_v10 = vsel %vm3980_vm10, %v3965_v62, %v3375_v58  ;;  %v3097_v6 = vadd.f32 %v8212_v49, %v3096_v11  ;;  %v3385_v40 = vpop.permute.xlu0 %3384 }
 0x774   : > { %v4031_v43 = vsel %vm4013_vm11, %v3998_v10, %v7724_v63  ;;  %v4003_v13 = vsel %vm3980_vm10, %v3970_v2, %v3385_v40 }
 0x775   : > { %4177 = vst [vmem:[%s7669_s19 + $0x230] sm:$0xff] %v4031_v43  ;;  %v3140_v16 = vmul.f32 0.5, %v3097_v6  ;;  %v4036_v9 = vsel %vm4013_vm11, %v4003_v13, %v7789_v41  ;;  %v3973_v41 = vsel %vm2978_vm1, %v9135_v20, %v9206_v34  ;;  %v9209_v20 = vld [vmem:[#allocation11_spill] sm:$0xff] }
 0x776   : > { %3268 = vst [vmem:[%s7669_s19 + $0x300] sm:$0xff] %v3097_v6  ;;  %v9210_v39 = vmax.f32 %v9209_v20, 0.001 }
 0x777   : > { %4985 = vtanh.f32 %v3140_v16  ;;  %4187 = vst [vmem:[%s7669_s19 + $0x2d0] sm:$0xff] %v4036_v9 }
 0x778   : > { %v3971_v5 = vsel %vm2978_vm1, %v9211_v32, %v9210_v39 }
 0x77a   : > { %v3381_v54 = vpop.permute.xlu1 %3380  ;;  %v3098_v63 = vpop.f32.mrf.mxu2 }
 0x77b   : > { %v4001_v4 = vsel %vm3980_vm10, %v3968_v59, %v3381_v54  ;;  %v3099_v46 = vadd.f32 %v8212_v49, %v3098_v63  ;;  %v3391_v37 = vpop.permute.xlu0 %3390 }
 0x77c   : > { %v4034_v22 = vsel %vm4013_vm11, %v4001_v4, %v9207_v45  ;;  %v4006_v47 = vsel %vm3980_vm10, %v3973_v41, %v3391_v37 }
 0x77d   : > { %v4986_v12 = vpop.eup %4985  ;;  %4183 = vst [vmem:[%s7669_s19 + $0x290] sm:$0xff] %v4034_v22  ;;  %v3141_v28 = vmul.f32 0.5, %v3099_v46  ;;  %v4039_v15 = vsel %vm4013_vm11, %v4006_v47, %v9208_v24 }
 0x77e   : > { %v3204_v49 = vadd.f32 1.0, %v4986_v12  ;;  %3269 = vst [vmem:[%s7669_s19 + $0x320] sm:$0xff] %v3099_v46 }
 0x77f   : > { %4987 = vtanh.f32 %v3141_v28  ;;  %4193 = vst [vmem:[%s7669_s19 + $0x330] sm:$0xff] %v4039_v15 }
 0x780   : > { %v3236_v7 = vmul.f32 0.5, %v3204_v49 }
 0x782   : > { %3300 = vst [vmem:[%s7669_s19 + $0x308] sm:$0xff] %v3236_v7  ;;  %v3387_v56 = vpop.permute.xlu1 %3386 }
 0x783   : > { %v4004_v36 = vsel %vm3980_vm10, %v3971_v5, %v3387_v56  ;;  %v3911_v42 = vpop.permute.xlu0 %3910 }
 0x784   : > { %v4037_v29 = vsel %vm4013_vm11, %v4004_v36, %v9213_v23  ;;  %v4108_v8 = vsel %vm4078_vm12, %v4075_v57, %v3911_v42 }
 0x785   : > { %v4988_v38 = vpop.eup %4987  ;;  %4189 = vst [vmem:[%s7669_s19 + $0x2f0] sm:$0xff] %v4037_v29  ;;  %v4140_v17 = vsel %vm3980_vm10, %v4108_v8, 0.0 }
 0x786   : > { %v3205_v50 = vadd.f32 1.0, %v4988_v38  ;;  %4202 = vst [vmem:[%s7669_s19 + $0x3b8] sm:$0xff] %v4140_v17 }
 0x788   : > { %v3237_v3 = vmul.f32 0.5, %v3205_v50 }
 0x78a   : > { %3301 = vst [vmem:[%s7669_s19 + $0x328] sm:$0xff] %v3237_v3  ;;  %v3913_v25 = vpop.permute.xlu1 %3912 }
 0x78b   : > { %v4109_v19 = vsel %vm4078_vm12, %v4076_v35, %v3913_v25 }
 0x78c   : > { %v4141_v27 = vsel %vm3980_vm10, %v4109_v19, 0.0 }
 0x78d   : > { %4204 = vst [vmem:[%s7669_s19 + $0x3d8] sm:$0xff] %v4141_v27 }
 0x78e   : > { %5019 = shalt.err (!%p5016_p3)
}
 0x78f   : > { %s5061_s26 = smov 512  }
 0x790   : > { %4493 = dma.vmem_to_hbm [thread:$0]  (%p5145_p5), %s4222_s24, 16384, %s4224_s10, %s4208_s17, %s5061_s26, %s5061_s26, %s5059_s13  }
 0x791 PF: > { %p4499_p4 = scmp.ge.s32.totalorder %s5054_s30, 2  ;;  %s4238_s19 = sand.u32 1, %s5042_s27  }
 0x792   : > { %s4239_s23 = scalar_lea.sflag [#allocation3], %s4238_s19 }
 0x793   : > { %p4496_p7 = pnand %p4499_p4, %p5149_p6 }
 0x795   : > { %p4497_p8 = pneg %p4496_p7 }
 0x797   : > { %5037 = dma.done.wait (%p4497_p8), %s4239_s23, 16384  }
 0x798   : > { %5039 = vsyncadd (%p4497_p8), %s4239_s23, 4294950912  ;;  %p18_p9 = scmp.ge.s32.totalorder %s5132_s11, 4   ;;  %s9215_s27 = smov %s5046_s28 }
 0x799   : > { %s9216_s28 = smov %s5050_s29  ;;  %s9217_s29 = smov %s5143_s14 }
 0x79a   : > { %s9218_s30 = smov %s5132_s11  ;;  %20 = sbr.rel (!%p18_p9) target bundleno = 3 (0x3), region = 90 }
 0x79f   :  { %4245 = vsyncpa [#allocation3], 1 }
 0x7a0   :  { %4247 = vsyncpa [#allocation3 + $0x1], 1 }

</bundles_post_ra>
